<compile_context>
chip_gen: v7x
topology: tpu7x:2x2x1
jax: 0.10.0
libtpu: 0.0.40
codegen_flags: <defaults>
</compile_context>

<pallas_src>
from functools import partial

import jax
import jax.numpy as jnp
from jax.experimental import pallas as pl
from jax.experimental.pallas import tpu as pltpu


# ------------------------------ fused kernel ----------------------------------

def _audio_proj_kernel(x_ref, w1_ref, b1_ref, w2_ref, b2_ref, w3_ref, b3_ref,
                       wc_ref, bc_ref, g_ref, beta_ref, o_ref, h_ref, *, eps):
    """Fused proj1/relu/proj2/relu/proj3 -> stride-2 Conv1d -> LayerNorm."""
    j = pl.program_id(1)
    tp = o_ref.shape[0]                 # frame pairs in this row tile
    cfull = h_ref.shape[1] // 2         # context_tokens * output_dim
    od = g_ref.shape[-1]                # output_dim (LayerNorm width)

    # ---- stage 1: MLP for this frame-pair tile (once per row tile) ----------
    @pl.when(j == 0)
    def _():
        x = x_ref[...]                                   # (tp, 2*input_dim) f32
        d = x.shape[1] // 2
        # Stack even/odd frames along rows (f32 concat is sublane-aligned),
        # then cast once to bf16 for the MXU.
        x2 = jnp.concatenate([x[:, :d], x[:, d:]], axis=0).astype(jnp.bfloat16)
        h1 = jnp.maximum(
            jnp.dot(x2, w1_ref[...], preferred_element_type=jnp.float32)
            + b1_ref[...], 0.0)
        h2 = jnp.maximum(
            jnp.dot(h1.astype(jnp.bfloat16), w2_ref[...],
                    preferred_element_type=jnp.float32) + b2_ref[...], 0.0)
        h3 = (jnp.dot(h2.astype(jnp.bfloat16), w3_ref[...],
                      preferred_element_type=jnp.float32) + b3_ref[...])
        # Pack [h_even | h_odd] along the lane axis so the stride-2 Conv1d is a
        # single (tp, 2*cfull) @ (2*cfull, tn) matmul per column tile.
        h_ref[:, :cfull] = h3[:tp].astype(jnp.bfloat16)
        h_ref[:, cfull:] = h3[tp:].astype(jnp.bfloat16)

    # ---- stage 2: conv column tile + LayerNorm -------------------------------
    y = (jnp.dot(h_ref[...], wc_ref[...], preferred_element_type=jnp.float32)
         + bc_ref[...])                                  # (tp, tn) f32
    tn = y.shape[1]
    y3 = y.reshape(tp, tn // od, od)                     # whole LN groups per tile
    mean = jnp.mean(y3, axis=-1, keepdims=True)
    var = jnp.mean(y3 * y3, axis=-1, keepdims=True) - mean * mean   # single pass
    yn = (y3 - mean) * jax.lax.rsqrt(var + eps)
    out = yn * g_ref[...].reshape(1, 1, od) + beta_ref[...].reshape(1, 1, od)
    o_ref[...] = out.reshape(tp, tn)                     # lane-dense store


# -------------------------------- wrapper --------------------------------------

def audio_proj_forward(audio_embeds, params, *, context_tokens, output_dim,
                       pair_tile=8, col_tile=512):
    B, F, S, K, C = audio_embeds.shape
    assert F % 2 == 0, "frame count must be even for the stride-2 Conv1d"
    d_in = S * K * C
    inter = params["w1"].shape[1]
    assert params["w1"].shape[0] == d_in
    cfull = context_tokens * output_dim
    num_pairs = B * (F // 2)

    # Row tile (frame pairs per grid step) and conv-output column tile.  The
    # column tile must contain whole LayerNorm groups and be lane-aligned.
    tp = pair_tile if num_pairs % pair_tile == 0 else num_pairs
    tn = col_tile if (cfull % col_tile == 0 and col_tile % output_dim == 0
                      and col_tile % 128 == 0) else cfull

    # Frame pairs become rows; the two Conv1d taps are the two contiguous halves
    # of each row (free reshape -- no strided HBM gather of the activations).
    x = audio_embeds.reshape(num_pairs, 2 * d_in)

    grid = (num_pairs // tp, cfull // tn)
    out = pl.pallas_call(
        partial(_audio_proj_kernel, eps=1e-5),
        out_shape=jax.ShapeDtypeStruct((num_pairs, cfull), jnp.float32),
        grid_spec=pltpu.PrefetchScalarGridSpec(
            num_scalar_prefetch=0,
            grid=grid,
            in_specs=[
                pl.BlockSpec((tp, 2 * d_in), lambda i, j: (i, 0)),   # x (row tiles)
                pl.BlockSpec((d_in, inter), lambda i, j: (0, 0)),    # w1 (resident)
                pl.BlockSpec((1, inter), lambda i, j: (0, 0)),       # b1
                pl.BlockSpec((inter, inter), lambda i, j: (0, 0)),   # w2
                pl.BlockSpec((1, inter), lambda i, j: (0, 0)),       # b2
                pl.BlockSpec((inter, cfull), lambda i, j: (0, 0)),   # w3
                pl.BlockSpec((1, cfull), lambda i, j: (0, 0)),       # b3
                pl.BlockSpec((2 * cfull, tn), lambda i, j: (0, j)),  # wcat (col tiles)
                pl.BlockSpec((1, tn), lambda i, j: (0, j)),          # bc
                pl.BlockSpec((1, output_dim), lambda i, j: (0, 0)),  # gamma
                pl.BlockSpec((1, output_dim), lambda i, j: (0, 0)),  # beta
            ],
            out_specs=pl.BlockSpec((tp, tn), lambda i, j: (i, j)),
            scratch_shapes=[pltpu.VMEM((tp, 2 * cfull), jnp.bfloat16)],
        ),
        compiler_params=pltpu.CompilerParams(
            # Row/frame-pair axis shards across TensorCores (v7x megacore); the
            # column axis is sequential because it reuses the per-row MLP scratch.
            dimension_semantics=("parallel", "arbitrary"),
            vmem_limit_bytes=48 * 1024 * 1024,   # fits v7x's 64 MiB physical VMEM
        ),
    )(x, params["w1"], params["b1"], params["w2"], params["b2"],
      params["w3"], params["b3"], params["wcat"], params["bc"],
      params["gamma"], params["beta"])

    return out.reshape(B, F // 2, context_tokens, output_dim)


# ------------------------------ parameter init ---------------------------------

def init_params(key, *, input_dim, intermediate_dim, context_tokens, output_dim):
    cfull = context_tokens * output_dim
    ks = jax.random.split(key, 10)
    s = 0.1
    f32 = jnp.float32

    def w(k, shape):  # matmul weights stored in bf16 (MXU dtype, half the HBM)
        return (s * jax.random.normal(k, shape, f32)).astype(jnp.bfloat16)

    return {
        # Linear layers stored transposed (in_features, out_features) for x @ W.
        "w1": w(ks[0], (input_dim, intermediate_dim)),
        "b1": s * jax.random.normal(ks[1], (1, intermediate_dim), f32),
        "w2": w(ks[2], (intermediate_dim, intermediate_dim)),
        "b2": s * jax.random.normal(ks[3], (1, intermediate_dim), f32),
        "w3": w(ks[4], (intermediate_dim, cfull)),
        "b3": s * jax.random.normal(ks[5], (1, cfull), f32),
        # Conv1d(kernel=2, stride=2) weight W[c_out, c_in, k] stored pre-packed as
        # Wcat = concat([W[:,:,0].T, W[:,:,1].T], axis=0)  -> (2*cfull, cfull).
        "wcat": w(ks[6], (2 * cfull, cfull)),
        "bc": s * jax.random.normal(ks[7], (1, cfull), f32),
        # LayerNorm affine params.
        "gamma": 1.0 + s * jax.random.normal(ks[8], (1, output_dim), f32),
        "beta": jnp.zeros((1, output_dim), f32),
    }


# -------------------------------- reference -------------------------------------

def reference_forward(audio_embeds, params, *, context_tokens, output_dim):
    B, F, S, K, C = audio_embeds.shape
    cfull = context_tokens * output_dim
    x = audio_embeds.reshape(B * F, S * K * C).astype(jnp.bfloat16)
    h = jnp.maximum(
        jnp.dot(x, params["w1"], preferred_element_type=jnp.float32)
        + params["b1"], 0.0)
    h = jnp.maximum(
        jnp.dot(h.astype(jnp.bfloat16), params["w2"],
                preferred_element_type=jnp.float32) + params["b2"], 0.0)
    h = (jnp.dot(h.astype(jnp.bfloat16), params["w3"],
                 preferred_element_type=jnp.float32) + params["b3"])
    h = h.astype(jnp.bfloat16).reshape(B, F // 2, 2 * cfull)   # [h_even | h_odd]
    y = (jnp.dot(h, params["wcat"], preferred_element_type=jnp.float32)
         + params["bc"].reshape(1, 1, cfull))
    y = y.reshape(B, F // 2, context_tokens, output_dim)
    mean = jnp.mean(y, axis=-1, keepdims=True)
    var = jnp.mean(y * y, axis=-1, keepdims=True) - mean * mean
    yn = (y - mean) * jax.lax.rsqrt(var + 1e-5)
    return (yn * params["gamma"].reshape(1, 1, 1, output_dim)
            + params["beta"].reshape(1, 1, 1, output_dim))


# ----------------------------------- main ----------------------------------------

if __name__ == "__main__":
    # Small but (8,128)-aligned shapes so the kernel exercises real tiles.
    B, F = 2, 16                          # batch, frames (F even) -> 16 frame pairs
    seq_len, blocks, channels = 2, 2, 64  # input_dim = 256
    intermediate_dim = 256
    context_tokens, output_dim = 8, 128   # cfull = 1024
    input_dim = seq_len * blocks * channels

    key = jax.random.PRNGKey(0)
    k_in, k_p = jax.random.split(key)
    audio_embeds = jax.random.normal(
        k_in, (B, F, seq_len, blocks, channels), jnp.float32)
    params = init_params(k_p, input_dim=input_dim,
                         intermediate_dim=intermediate_dim,
                         context_tokens=context_tokens, output_dim=output_dim)

    out = audio_proj_forward(audio_embeds, params,
                             context_tokens=context_tokens, output_dim=output_dim)
    out = jax.block_until_ready(out)

    ref = reference_forward(audio_embeds, params,
                            context_tokens=context_tokens, output_dim=output_dim)
    assert out.shape == (B, F // 2, context_tokens, output_dim), out.shape
    err = jnp.max(jnp.abs(out - ref))
    assert jnp.allclose(out, ref, rtol=2e-2, atol=2e-2), f"max abs err {err}"

    print("KERNEL_OK")
</pallas_src>

<mosaic_0001>
module attributes {stable_mosaic.version = 11 : i64} {
  func.func @_audio_proj_kernel(%arg0: i32, %arg1: i32, %arg2: memref<8x512xf32, #tpu.memory_space<vmem>>, %arg3: memref<256x256xbf16, #tpu.memory_space<vmem>>, %arg4: memref<1x256xf32, #tpu.memory_space<vmem>>, %arg5: memref<256x256xbf16, #tpu.memory_space<vmem>>, %arg6: memref<1x256xf32, #tpu.memory_space<vmem>>, %arg7: memref<256x1024xbf16, #tpu.memory_space<vmem>>, %arg8: memref<1x1024xf32, #tpu.memory_space<vmem>>, %arg9: memref<2048x512xbf16, #tpu.memory_space<vmem>>, %arg10: memref<1x512xf32, #tpu.memory_space<vmem>>, %arg11: memref<1x128xf32, #tpu.memory_space<vmem>>, %arg12: memref<1x128xf32, #tpu.memory_space<vmem>>, %arg13: memref<8x512xf32, #tpu.memory_space<vmem>>, %arg14: memref<8x2048xbf16, #tpu.memory_space<vmem>>) attributes {dimension_semantics = [#tpu.dimension_semantics<parallel>, #tpu.dimension_semantics<arbitrary>], iteration_bounds = array<i64: 2, 2>, scalar_prefetch = 0 : i64, scratch_operands = 1 : i64, tpu.core_type = #tpu.core_type<tc>, window_params = [{transform_indices = @transform_0, window_bounds = array<i64: 8, 512>}, {pipeline_mode = #tpu.pipeline_mode<synchronous>, transform_indices = @transform_1, window_bounds = array<i64: 256, 256>}, {pipeline_mode = #tpu.pipeline_mode<synchronous>, transform_indices = @transform_2, window_bounds = array<i64: 1, 256>}, {pipeline_mode = #tpu.pipeline_mode<synchronous>, transform_indices = @transform_3, window_bounds = array<i64: 256, 256>}, {pipeline_mode = #tpu.pipeline_mode<synchronous>, transform_indices = @transform_4, window_bounds = array<i64: 1, 256>}, {pipeline_mode = #tpu.pipeline_mode<synchronous>, transform_indices = @transform_5, window_bounds = array<i64: 256, 1024>}, {pipeline_mode = #tpu.pipeline_mode<synchronous>, transform_indices = @transform_6, window_bounds = array<i64: 1, 1024>}, {transform_indices = @transform_7, window_bounds = array<i64: 2048, 512>}, {transform_indices = @transform_8, window_bounds = array<i64: 1, 512>}, {pipeline_mode = #tpu.pipeline_mode<synchronous>, transform_indices = @transform_9, window_bounds = array<i64: 1, 128>}, {pipeline_mode = #tpu.pipeline_mode<synchronous>, transform_indices = @transform_10, window_bounds = array<i64: 1, 128>}, {transform_indices = @transform_11, window_bounds = array<i64: 8, 512>}]} {
    %c0_i32 = arith.constant 0 : i32
    %0 = arith.cmpi eq, %arg1, %c0_i32 : i32
    %1 = arith.extui %0 : i1 to i32
    %c0_i32_0 = arith.constant 0 : i32
    %2 = arith.cmpi ne, %1, %c0_i32_0 : i32
    scf.if %2 {
      %c0_17 = arith.constant 0 : index
      %c0_18 = arith.constant 0 : index
      %38 = vector.load %arg2[%c0_17, %c0_18] : memref<8x512xf32, #tpu.memory_space<vmem>>, vector<8x512xf32>
      %39 = vector.extract_strided_slice %38 {offsets = [0, 0], sizes = [8, 256], strides = [1, 1]} : vector<8x512xf32> to vector<8x256xf32>
      %40 = vector.extract_strided_slice %38 {offsets = [0, 256], sizes = [8, 256], strides = [1, 1]} : vector<8x512xf32> to vector<8x256xf32>
      %41 = tpu.concatenate %39, %40 in 0 : vector<8x256xf32>, vector<8x256xf32> -> vector<16x256xf32>
      %42 = arith.truncf %41 : vector<16x256xf32> to vector<16x256xbf16>
      %c0_19 = arith.constant 0 : index
      %c0_20 = arith.constant 0 : index
      %43 = vector.load %arg3[%c0_19, %c0_20] : memref<256x256xbf16, #tpu.memory_space<vmem>>, vector<256x256xbf16>
      %cst_21 = arith.constant dense<0.000000e+00> : vector<16x256xf32>
      %44 = tpu.matmul %42, %43, %cst_21 {dimension_numbers = #tpu.dot_dimension_numbers<[1], [0], [0], [1], [0, 0, 1, 1], [], []>} : vector<16x256xbf16>, vector<256x256xbf16>, vector<16x256xf32> -> vector<16x256xf32>
      %c0_22 = arith.constant 0 : index
      %c0_23 = arith.constant 0 : index
      %45 = vector.load %arg4[%c0_22, %c0_23] : memref<1x256xf32, #tpu.memory_space<vmem>>, vector<1x256xf32>
      %46 = vector.broadcast %45 : vector<1x256xf32> to vector<16x256xf32>
      %47 = arith.addf %44, %46 : vector<16x256xf32>
      %cst_24 = arith.constant 0.000000e+00 : f32
      %48 = vector.broadcast %cst_24 : f32 to vector<16x256xf32>
      %49 = arith.maximumf %47, %48 : vector<16x256xf32>
      %50 = arith.truncf %49 : vector<16x256xf32> to vector<16x256xbf16>
      %c0_25 = arith.constant 0 : index
      %c0_26 = arith.constant 0 : index
      %51 = vector.load %arg5[%c0_25, %c0_26] : memref<256x256xbf16, #tpu.memory_space<vmem>>, vector<256x256xbf16>
      %cst_27 = arith.constant dense<0.000000e+00> : vector<16x256xf32>
      %52 = tpu.matmul %50, %51, %cst_27 {dimension_numbers = #tpu.dot_dimension_numbers<[1], [0], [0], [1], [0, 0, 1, 1], [], []>} : vector<16x256xbf16>, vector<256x256xbf16>, vector<16x256xf32> -> vector<16x256xf32>
      %c0_28 = arith.constant 0 : index
      %c0_29 = arith.constant 0 : index
      %53 = vector.load %arg6[%c0_28, %c0_29] : memref<1x256xf32, #tpu.memory_space<vmem>>, vector<1x256xf32>
      %54 = vector.broadcast %53 : vector<1x256xf32> to vector<16x256xf32>
      %55 = arith.addf %52, %54 : vector<16x256xf32>
      %cst_30 = arith.constant 0.000000e+00 : f32
      %56 = vector.broadcast %cst_30 : f32 to vector<16x256xf32>
      %57 = arith.maximumf %55, %56 : vector<16x256xf32>
      %58 = arith.truncf %57 : vector<16x256xf32> to vector<16x256xbf16>
      %c0_31 = arith.constant 0 : index
      %c0_32 = arith.constant 0 : index
      %59 = vector.load %arg7[%c0_31, %c0_32] : memref<256x1024xbf16, #tpu.memory_space<vmem>>, vector<256x1024xbf16>
      %cst_33 = arith.constant dense<0.000000e+00> : vector<16x1024xf32>
      %60 = tpu.matmul %58, %59, %cst_33 {dimension_numbers = #tpu.dot_dimension_numbers<[1], [0], [0], [1], [0, 0, 1, 1], [], []>} : vector<16x256xbf16>, vector<256x1024xbf16>, vector<16x1024xf32> -> vector<16x1024xf32>
      %c0_34 = arith.constant 0 : index
      %c0_35 = arith.constant 0 : index
      %61 = vector.load %arg8[%c0_34, %c0_35] : memref<1x1024xf32, #tpu.memory_space<vmem>>, vector<1x1024xf32>
      %62 = vector.broadcast %61 : vector<1x1024xf32> to vector<16x1024xf32>
      %63 = arith.addf %60, %62 : vector<16x1024xf32>
      %64 = vector.extract_strided_slice %63 {offsets = [0, 0], sizes = [8, 1024], strides = [1, 1]} : vector<16x1024xf32> to vector<8x1024xf32>
      %65 = arith.truncf %64 : vector<8x1024xf32> to vector<8x1024xbf16>
      %c0_36 = arith.constant 0 : index
      %c0_37 = arith.constant 0 : index
      %66 = vector.load %arg14[%c0_36, %c0_37] : memref<8x2048xbf16, #tpu.memory_space<vmem>>, vector<8x1024xbf16>
      tpu.vector_store %arg14[%c0_36, %c0_37], %65 {strides = array<i32>} : memref<8x2048xbf16, #tpu.memory_space<vmem>>, vector<8x1024xbf16>,
      %67 = vector.extract_strided_slice %63 {offsets = [8, 0], sizes = [8, 1024], strides = [1, 1]} : vector<16x1024xf32> to vector<8x1024xf32>
      %68 = arith.truncf %67 : vector<8x1024xf32> to vector<8x1024xbf16>
      %c0_38 = arith.constant 0 : index
      %c1024 = arith.constant 1024 : index
      %69 = vector.load %arg14[%c0_38, %c1024] : memref<8x2048xbf16, #tpu.memory_space<vmem>>, vector<8x1024xbf16>
      tpu.vector_store %arg14[%c0_38, %c1024], %68 {strides = array<i32>} : memref<8x2048xbf16, #tpu.memory_space<vmem>>, vector<8x1024xbf16>,
    } else {
    }
    %c0 = arith.constant 0 : index
    %c0_1 = arith.constant 0 : index
    %3 = vector.load %arg14[%c0, %c0_1] : memref<8x2048xbf16, #tpu.memory_space<vmem>>, vector<8x2048xbf16>
    %c0_2 = arith.constant 0 : index
    %c0_3 = arith.constant 0 : index
    %4 = vector.load %arg9[%c0_2, %c0_3] : memref<2048x512xbf16, #tpu.memory_space<vmem>>, vector<2048x512xbf16>
    %cst = arith.constant dense<0.000000e+00> : vector<8x512xf32>
    %5 = tpu.matmul %3, %4, %cst {dimension_numbers = #tpu.dot_dimension_numbers<[1], [0], [0], [1], [0, 0, 1, 1], [], []>} : vector<8x2048xbf16>, vector<2048x512xbf16>, vector<8x512xf32> -> vector<8x512xf32>
    %c0_4 = arith.constant 0 : index
    %c0_5 = arith.constant 0 : index
    %6 = vector.load %arg10[%c0_4, %c0_5] : memref<1x512xf32, #tpu.memory_space<vmem>>, vector<1x512xf32>
    %7 = vector.broadcast %6 : vector<1x512xf32> to vector<8x512xf32>
    %8 = arith.addf %5, %7 : vector<8x512xf32>
    %9 = vector.shape_cast %8 : vector<8x512xf32> to vector<8x4x128xf32>
    %cst_6 = arith.constant dense<0.000000e+00> : vector<8x4xf32>
    %10 = vector.multi_reduction <add>, %9, %cst_6 [2] : vector<8x4x128xf32> to vector<8x4xf32>
    %11 = vector.shape_cast %10 : vector<8x4xf32> to vector<8x4x1xf32>
    %cst_7 = arith.constant 1.280000e+02 : f32
    %12 = vector.broadcast %cst_7 : f32 to vector<8x4x1xf32>
    %13 = arith.divf %11, %12 : vector<8x4x1xf32>
    %14 = arith.mulf %9, %9 : vector<8x4x128xf32>
    %cst_8 = arith.constant dense<0.000000e+00> : vector<8x4xf32>
    %15 = vector.multi_reduction <add>, %14, %cst_8 [2] : vector<8x4x128xf32> to vector<8x4xf32>
    %16 = vector.shape_cast %15 : vector<8x4xf32> to vector<8x4x1xf32>
    %cst_9 = arith.constant 1.280000e+02 : f32
    %17 = vector.broadcast %cst_9 : f32 to vector<8x4x1xf32>
    %18 = arith.divf %16, %17 : vector<8x4x1xf32>
    %19 = arith.mulf %13, %13 : vector<8x4x1xf32>
    %20 = arith.subf %18, %19 : vector<8x4x1xf32>
    %21 = vector.broadcast %13 : vector<8x4x1xf32> to vector<8x4x128xf32>
    %22 = arith.subf %9, %21 : vector<8x4x128xf32>
    %cst_10 = arith.constant 9.99999974E-6 : f32
    %23 = vector.broadcast %cst_10 : f32 to vector<8x4x1xf32>
    %24 = arith.addf %20, %23 : vector<8x4x1xf32>
    %25 = math.rsqrt %24 : vector<8x4x1xf32>
    %26 = vector.broadcast %25 : vector<8x4x1xf32> to vector<8x4x128xf32>
    %27 = arith.mulf %22, %26 : vector<8x4x128xf32>
    %c0_11 = arith.constant 0 : index
    %c0_12 = arith.constant 0 : index
    %28 = vector.load %arg11[%c0_11, %c0_12] : memref<1x128xf32, #tpu.memory_space<vmem>>, vector<1x128xf32>
    %29 = vector.shape_cast %28 : vector<1x128xf32> to vector<1x1x128xf32>
    %30 = vector.broadcast %29 : vector<1x1x128xf32> to vector<8x4x128xf32>
    %31 = arith.mulf %27, %30 : vector<8x4x128xf32>
    %c0_13 = arith.constant 0 : index
    %c0_14 = arith.constant 0 : index
    %32 = vector.load %arg12[%c0_13, %c0_14] : memref<1x128xf32, #tpu.memory_space<vmem>>, vector<1x128xf32>
    %33 = vector.shape_cast %32 : vector<1x128xf32> to vector<1x1x128xf32>
    %34 = vector.broadcast %33 : vector<1x1x128xf32> to vector<8x4x128xf32>
    %35 = arith.addf %31, %34 : vector<8x4x128xf32>
    %36 = vector.shape_cast %35 : vector<8x4x128xf32> to vector<8x512xf32>
    %c0_15 = arith.constant 0 : index
    %c0_16 = arith.constant 0 : index
    %37 = vector.load %arg13[%c0_15, %c0_16] : memref<8x512xf32, #tpu.memory_space<vmem>>, vector<8x512xf32>
    tpu.vector_store %arg13[%c0_15, %c0_16], %36 {strides = array<i32>} : memref<8x512xf32, #tpu.memory_space<vmem>>, vector<8x512xf32>,
    return
  }
  func.func @transform_0(%arg0: i32, %arg1: i32) -> (i32, i32) {
    %c0_i32 = arith.constant 0 : i32
    %c0_i32_0 = arith.constant 0 : i32
    return %arg0, %c0_i32 : i32, i32
  }
  func.func @transform_1(%arg0: i32, %arg1: i32) -> (i32, i32) {
    %c0_i32 = arith.constant 0 : i32
    %c0_i32_0 = arith.constant 0 : i32
    %c0_i32_1 = arith.constant 0 : i32
    return %c0_i32, %c0_i32_0 : i32, i32
  }
  func.func @transform_2(%arg0: i32, %arg1: i32) -> (i32, i32) {
    %c0_i32 = arith.constant 0 : i32
    %c0_i32_0 = arith.constant 0 : i32
    %c0_i32_1 = arith.constant 0 : i32
    return %c0_i32, %c0_i32_0 : i32, i32
  }
  func.func @transform_3(%arg0: i32, %arg1: i32) -> (i32, i32) {
    %c0_i32 = arith.constant 0 : i32
    %c0_i32_0 = arith.constant 0 : i32
    %c0_i32_1 = arith.constant 0 : i32
    return %c0_i32, %c0_i32_0 : i32, i32
  }
  func.func @transform_4(%arg0: i32, %arg1: i32) -> (i32, i32) {
    %c0_i32 = arith.constant 0 : i32
    %c0_i32_0 = arith.constant 0 : i32
    %c0_i32_1 = arith.constant 0 : i32
    return %c0_i32, %c0_i32_0 : i32, i32
  }
  func.func @transform_5(%arg0: i32, %arg1: i32) -> (i32, i32) {
    %c0_i32 = arith.constant 0 : i32
    %c0_i32_0 = arith.constant 0 : i32
    %c0_i32_1 = arith.constant 0 : i32
    return %c0_i32, %c0_i32_0 : i32, i32
  }
  func.func @transform_6(%arg0: i32, %arg1: i32) -> (i32, i32) {
    %c0_i32 = arith.constant 0 : i32
    %c0_i32_0 = arith.constant 0 : i32
    %c0_i32_1 = arith.constant 0 : i32
    return %c0_i32, %c0_i32_0 : i32, i32
  }
  func.func @transform_7(%arg0: i32, %arg1: i32) -> (i32, i32) {
    %c0_i32 = arith.constant 0 : i32
    %c0_i32_0 = arith.constant 0 : i32
    return %c0_i32, %arg1 : i32, i32
  }
  func.func @transform_8(%arg0: i32, %arg1: i32) -> (i32, i32) {
    %c0_i32 = arith.constant 0 : i32
    %c0_i32_0 = arith.constant 0 : i32
    return %c0_i32, %arg1 : i32, i32
  }
  func.func @transform_9(%arg0: i32, %arg1: i32) -> (i32, i32) {
    %c0_i32 = arith.constant 0 : i32
    %c0_i32_0 = arith.constant 0 : i32
    %c0_i32_1 = arith.constant 0 : i32
    return %c0_i32, %c0_i32_0 : i32, i32
  }
  func.func @transform_10(%arg0: i32, %arg1: i32) -> (i32, i32) {
    %c0_i32 = arith.constant 0 : i32
    %c0_i32_0 = arith.constant 0 : i32
    %c0_i32_1 = arith.constant 0 : i32
    return %c0_i32, %c0_i32_0 : i32, i32
  }
  func.func @transform_11(%arg0: i32, %arg1: i32) -> (i32, i32) {
    %c0_i32 = arith.constant 0 : i32
    return %arg0, %arg1 : i32, i32
  }
}

</mosaic_0001>

<bundles_post_ra>
// kernel: tpu_custom_call.1
= control target key start
LH: loop header
LB: loop body
LE: loop exit
PB: predicated region body
PF: predicated region fallthrough
CT: control target
= control target key end

     0   :  { %s10321_s0 = inlined_call_operand.hbm [shape: f32[16,512], index: 0, kind: input, shape index: {}]   ;;  %s10322_s1 = inlined_call_operand.hbm [shape: bf16[256,256], index: 1, kind: input, shape index: {}]   ;;  %s10323_s2 = inlined_call_operand.hbm [shape: f32[1,256], index: 2, kind: input, shape index: {}]   ;;  %s10324_s3 = inlined_call_operand.hbm [shape: bf16[256,256], index: 3, kind: input, shape index: {}]   ;;  %s10325_s4 = inlined_call_operand.hbm [shape: f32[1,256], index: 4, kind: input, shape index: {}]   ;;  %s10326_s5 = inlined_call_operand.hbm [shape: bf16[256,1024], index: 5, kind: input, shape index: {}]   ;;  %s10327_s6 = inlined_call_operand.hbm [shape: f32[1,1024], index: 6, kind: input, shape index: {}]   ;;  %s10328_s7 = inlined_call_operand.hbm [shape: bf16[2048,1024], index: 7, kind: input, shape index: {}]   ;;  %s10329_s8 = inlined_call_operand.hbm [shape: f32[1,1024], index: 8, kind: input, shape index: {}]   ;;  %s10330_s9 = inlined_call_operand.hbm [shape: f32[1,128], index: 9, kind: input, shape index: {}]   ;;  %s10331_s10 = inlined_call_operand.hbm [shape: f32[1,128], index: 10, kind: input, shape index: {}]   ;;  %s10332_s11 = inlined_call_operand.hbm [shape: f32[16,1024], index: 11, kind: output, shape index: {}]  }
   0x1   :  { %10356 = sst [smem:[#allocation39_spill]] %s10321_s0 }
   0x2   :  { %10357 = sst [smem:[#allocation40_spill]] %s10322_s1 }
   0x3   :  { %10358 = sst [smem:[#allocation41_spill]] %s10323_s2 }
   0x4   :  { %10359 = sst [smem:[#allocation42_spill]] %s10324_s3 }
   0x5   :  { %10360 = sst [smem:[#allocation43_spill]] %s10325_s4 }
   0x6   :  { %10361 = sst [smem:[#allocation44_spill]] %s10326_s5 }
   0x7   :  { %10362 = sst [smem:[#allocation45_spill]] %s10327_s6 }
   0x8   :  { %10363 = sst [smem:[#allocation46_spill]] %s10328_s7 }
   0x9   :  { %10364 = sst [smem:[#allocation47_spill]] %s10329_s8 }
   0xa   :  { %10365 = sst [smem:[#allocation48_spill]] %s10330_s9 }
   0xb   :  { %10366 = sst [smem:[#allocation49_spill]] %s10331_s10 }
   0xc   :  { %10367 = sst [smem:[#allocation50_spill]] %s10332_s11 }
   0xd   :  { %16 = vsyncpa [#allocation4], 0 }
   0xe   :  { %18 = vsyncpa [#allocation4 + $0x1], 0 }
   0xf   :  { %19 = vsyncpa [#allocation7], 0 }
  0x10   :  { %20 = vsyncpa [#allocation10], 0 }
  0x11   :  { %21 = vsyncpa [#allocation13], 0 }
  0x12   :  { %22 = vsyncpa [#allocation16], 0 }
  0x13   :  { %24 = vsyncpa [#allocation16 + $0x1], 0 }
  0x14   :  { %25 = vsyncpa [#allocation19], 0 }
  0x15   :  { %26 = vsyncpa [#allocation5], 0 }
  0x16   :  { %28 = vsyncpa [#allocation5 + $0x1], 0  ;;  %s9024_s17 = smov 0   ;;  %s9026_s18 = smov 0  }
  0x17   :  { %s9028_s19 = smov 0   ;;  %s9030_s20 = smov 0  }
  0x18   :  { %s9032_s21 = smov 0   ;;  %s9034_s22 = smov 0  }
  0x19   :  { %s9036_s23 = smov 0   ;;  %s9038_s24 = smov 0  }
  0x1a   :  { %s9040_s25 = smov 0   ;;  %s9042_s26 = smov 0  }
  0x1b   :  { %s9044_s27 = smov 0   ;;  %s9046_s28 = smov 0  }
  0x1c   :  { %s9048_s29 = smov 0   ;;  %s9050_s30 = smov 0  }
  0x1d LB: > { %10368 = sst [smem:[#allocation29_spill]] %s8889_s17  ;;  %s9095_s12 = sadd.s32 4294967295, %s8941_s30   ;;  %s8941_s30 = sphi %s9050_s30, %s34_s30   ;;  %s8937_s29 = sphi %s9048_s29, %s10455_s29   ;;  %s8933_s28 = sphi %s9046_s28, %s10454_s28   ;;  %s8929_s27 = sphi %s9044_s27, %s10444_s27   ;;  %s8925_s26 = sphi %s9042_s26, %s10453_s26   ;;  %s8921_s25 = sphi %s9040_s25, %s10452_s25   ;;  %s8917_s24 = sphi %s9038_s24, %s10442_s24   ;;  %s8913_s23 = sphi %s9036_s23, %s10451_s23   ;;  %s8909_s22 = sphi %s9034_s22, %s10450_s22   ;;  %s8905_s21 = sphi %s9032_s21, %s10449_s21   ;;  %s8901_s20 = sphi %s9030_s20, %s10448_s20   ;;  %s8897_s19 = sphi %s9028_s19, %s10447_s19   ;;  %s8893_s18 = sphi %s9026_s18, %s10440_s18   ;;  %s8889_s17 = sphi %s9024_s17, %s10439_s17  }
  0x1e   : > { %10369 = sst [smem:[#allocation30_spill]] %s8893_s18  ;;  %p6499_p0 = scmp.ge.s32.totalorder %s8941_s30, 1 }
  0x1f   : > { %10370 = sst [smem:[#allocation31_spill]] %s8897_s19  ;;  %p10343_p1 = scmp.eq.s32.totalorder %s9095_s12, 0 }
  0x20   : > { %10371 = sst [smem:[#allocation32_spill]] %s8913_s23  ;;  %p325_p2 = scmp.lt.s32.totalorder %s8941_s30, 5 }
  0x21   : > { %10372 = sst [smem:[#allocation33_spill]] %s8917_s24  ;;  %s8943_s14 = smov [#allocation6]  }
  0x22   : > { %10373 = sst [smem:[#allocation34_spill]] %s8921_s25  ;;  %p9100_p3 = pnand %p6499_p0, %p325_p2 }
  0x23   : > { %10374 = sst [smem:[#allocation35_spill]] %s8925_s26  ;;  %s337_s15 = sshll.u32 %s8943_s14, 4  ;;  %s9104_s15 = int_to_ptr.vmem [resolvable:$true] %s337_s15 }
  0x24   : > { %10375 = sst [smem:[#allocation36_spill]] %s8929_s27  ;;  %p7379_p4 = pneg %p9100_p3 }
  0x25   : > { %10376 = sst [smem:[#allocation37_spill]] %s8937_s29  ;;  %s8944_s11 = smov [#allocation9]  }
  0x26   : > { %s10377_s13 = scalar_select %p9100_p3, 1, 0 }
  0x27   : > { %p9110_p5 = pnand %p7379_p4, %p10343_p1  ;;  %s361_s27 = sshll.u32 %s8944_s11, 4  ;;  %s9114_s27 = int_to_ptr.vmem [resolvable:$true] %s361_s27 }
  0x28   : > { %10378 = sst [smem:[#allocation38_spill]] %s10377_s13  ;;  %s8945_s26 = smov [#allocation12]  }
  0x29   : > { %s10379_s16 = scalar_select %p9110_p5, 1, 0 }
  0x2a   : > { %s9116_s8 = sshll.u32 %s8945_s26, 4  ;;  %s10380_s1 = sld [smem:[#allocation40_spill]]  ;;  %s386_s8 = int_to_ptr.vmem [resolvable:$true] %s9116_s8 }
  0x2b   : > { %p9126_p7 = pneg %p9110_p5 }
  0x30   : > { %s8461_s14 = scalar_lea.hbm %s10380_s1, 4096 }
  0x31   : > { %p8462_p6 = scmp.ne.s32.totalorder %s10380_s1, %s8461_s14  ;;  %p8468_p10 = scmp.lt.u32.totalorder %s8461_s14, %s10380_s1 }
  0x33   : > { %p8464_p8 = pnand %p9126_p7, %p8462_p6 }
  0x35   : > { %p8465_p9 = pneg %p8464_p8 }
  0x37   : > { %p8470_p11 = pnand %p8468_p10, %p8465_p9 }
  0x39   : > { %8473 = shalt.err (!%p8470_p11)
}
  0x3a   : > { %s8474_s0 = scalar_lea.vmem %s9104_s15, 4096  ;;  %p8482_p2 = scmp.lt.s32.totalorder %s9104_s15, %s9104_s15 }
  0x3b   : > { %p8475_p12 = scmp.ne.s32.totalorder %s9104_s15, %s8474_s0  ;;  %p8483_p4 = scmp.lt.s32.totalorder %s8474_s0, %s8474_s0 }
  0x3d   : > { %p8477_p13 = pnand %p8475_p12, %p9126_p7  ;;  %p8484_p6 = por %p8483_p4, %p8482_p2 }
  0x3f   : > { %p8478_p0 = pneg %p8477_p13 }
  0x41   : > { %p8485_p8 = pnand %p8484_p6, %p8478_p0 }
  0x43   : > { %8488 = shalt.err (!%p8485_p8)
}
  0x44   : > { %s8946_s17 = smov 128   ;;  %s8947_s18 = smov 8  }
  0x45   : > { %7382 = dma.hbm_to_vmem [thread:$0]  (!%p9110_p5), %s10380_s1, 4096, %s9104_s15, [#allocation7], %s8946_s17, %s8946_s17, %s8947_s18  }
  0x46   : > { %s10382_s3 = sld [smem:[#allocation42_spill]] }
  0x4c   : > { %s8489_s23 = scalar_lea.hbm %s10382_s3, 4096 }
  0x4d   : > { %p8490_p9 = scmp.ne.s32.totalorder %s10382_s3, %s8489_s23  ;;  %p8496_p12 = scmp.lt.u32.totalorder %s8489_s23, %s10382_s3 }
  0x4f   : > { %p8492_p10 = pnand %p8490_p9, %p9126_p7 }
  0x51   : > { %p8493_p11 = pneg %p8492_p10 }
  0x53   : > { %p8498_p13 = pnand %p8496_p12, %p8493_p11 }
  0x55   : > { %8501 = shalt.err (!%p8498_p13)
}
  0x56   : > { %s8502_s15 = scalar_lea.vmem %s9114_s27, 4096  ;;  %p8510_p6 = scmp.lt.s32.totalorder %s9114_s27, %s9114_s27 }
  0x57   : > { %p8503_p0 = scmp.ne.s32.totalorder %s9114_s27, %s8502_s15  ;;  %p8511_p8 = scmp.lt.s32.totalorder %s8502_s15, %s8502_s15 }
  0x59   : > { %p8505_p2 = pnand %p8503_p0, %p9126_p7  ;;  %p8512_p9 = por %p8511_p8, %p8510_p6 }
  0x5b   : > { %p8506_p4 = pneg %p8505_p2 }
  0x5d   : > { %p8513_p10 = pnand %p8512_p9, %p8506_p4 }
  0x5f   : > { %8516 = shalt.err (!%p8513_p10)
}
  0x60   : > { %7388 = dma.hbm_to_vmem [thread:$0]  (!%p9110_p5), %s10382_s3, 4096, %s9114_s27, [#allocation10], %s8946_s17, %s8946_s17, %s8947_s18  }
  0x61   : > { %s10383_s5 = sld [smem:[#allocation44_spill]] }
  0x67   : > { %s8517_s13 = scalar_lea.hbm %s10383_s5, 16384 }
  0x68   : > { %p8518_p11 = scmp.ne.s32.totalorder %s10383_s5, %s8517_s13  ;;  %p8524_p0 = scmp.lt.u32.totalorder %s8517_s13, %s10383_s5 }
  0x6a   : > { %p8520_p12 = pnand %p8518_p11, %p9126_p7 }
  0x6c   : > { %p8521_p13 = pneg %p8520_p12 }
  0x6e   : > { %p8526_p2 = pnand %p8524_p0, %p8521_p13 }
  0x70   : > { %8529 = shalt.err (!%p8526_p2)
}
  0x71   : > { %s8530_s15 = scalar_lea.vmem %s386_s8, 16384  ;;  %p8538_p9 = scmp.lt.s32.totalorder %s386_s8, %s386_s8 }
  0x72   : > { %p8531_p4 = scmp.ne.s32.totalorder %s386_s8, %s8530_s15  ;;  %p8539_p10 = scmp.lt.s32.totalorder %s8530_s15, %s8530_s15 }
  0x74   : > { %p8533_p6 = pnand %p8531_p4, %p9126_p7  ;;  %p8540_p1 = por %p8539_p10, %p8538_p9 }
  0x76   : > { %p8534_p8 = pneg %p8533_p6 }
  0x78   : > { %p8541_p3 = pnand %p8540_p1, %p8534_p8 }
  0x7a   : > { %8544 = shalt.err (!%p8541_p3)
}
  0x7b   : > { %s8948_s27 = smov 512   ;;  %s8949_s17 = smov 32  }
  0x7c   : > { %7394 = dma.hbm_to_vmem [thread:$0]  (!%p9110_p5), %s10383_s5, 16384, %s386_s8, [#allocation13], %s8948_s27, %s8948_s27, %s8949_s17  }
  0x7d   : > { %s8950_s24 = smov [#allocation18]   ;;  %s10384_s9 = sld [smem:[#allocation48_spill]] }
  0x7e   : > { %s410_s25 = sshll.u32 %s8950_s24, 4  ;;  %s411_s25 = int_to_ptr.vmem [resolvable:$true] %s410_s25 }
  0x83   : > { %s8545_s14 = scalar_lea.hbm %s10384_s9, 16 }
  0x84   : > { %p8546_p1 = scmp.ne.s32.totalorder %s10384_s9, %s8545_s14  ;;  %p8552_p12 = scmp.lt.u32.totalorder %s8545_s14, %s10384_s9 }
  0x86   : > { %p8548_p3 = pnand %p8546_p1, %p9126_p7 }
  0x88   : > { %p8549_p11 = pneg %p8548_p3 }
  0x8a   : > { %p8554_p13 = pnand %p8552_p12, %p8549_p11 }
  0x8c   : > { %8557 = shalt.err (!%p8554_p13)
}
  0x8d   : > { %s8558_s8 = scalar_lea.vmem %s411_s25, 16  ;;  %s8565_s17 = scalar_lea.vmem %s411_s25, 32 }
  0x8e   : > { %p8559_p0 = scmp.ne.s32.totalorder %s411_s25, %s8558_s8  ;;  %p8566_p6 = scmp.lt.s32.totalorder %s411_s25, %s411_s25 }
  0x8f   : > { %p8567_p8 = scmp.lt.s32.totalorder %s8565_s17, %s8558_s8 }
  0x90   : > { %p8561_p2 = pnand %p8559_p0, %p9126_p7 }
  0x91   : > { %p8568_p9 = por %p8567_p8, %p8566_p6 }
  0x92   : > { %p8562_p4 = pneg %p8561_p2 }
  0x94   : > { %p8569_p10 = pnand %p8568_p9, %p8562_p4 }
  0x96   : > { %8572 = shalt.err (!%p8569_p10)
}
  0x97   : > { %7400 = dma.hbm_to_vmem [thread:$0]  (!%p9110_p5), %s10384_s9, 16, %s411_s25, [#allocation19]  }
  0x98   : > { %p10347_p1 = scmp.eq.s32.totalorder %s8941_s30, 0  ;;  %p212_p3 = scmp.ne.s32.totalorder %s8909_s22, %s8905_s21 }
  0x99   : > { %p218_p11 = scmp.ne.s32.totalorder %s8905_s21, %s8901_s20  ;;  %p10346_p12 = scmp.lt.s32.totalorder %s8941_s30, 4 }
  0x9a   : > { %p214_p13 = por %p212_p3, %p10347_p1  ;;  %s451_s24 = sand.u32 1, %s8941_s30  }
  0x9b   : > { %p10385_p0 = scmp.eq.s32.totalorder %s9095_s12, 0  ;;  %s10345_s13 = sand.u32 1, %s8909_s22  }
  0x9c   : > { %s7269_s14 = sshll.u32 %s8933_s28, 8  ;;  %s6512_s11 = sshll.u32 %s10345_s13, 12 }
  0x9d   : > { %p9220_p2 = por %p218_p11, %p10385_p0  ;;  %s10387_s7 = sld [smem:[#allocation46_spill]] }
  0x9e   : > { %p9235_p4 = pnand %p10346_p12, %p214_p13  ;;  %s455_s15 = scalar_lea.vmem [#allocation15], %s6512_s11 }
  0x9f   : > { %s10386_s29 = scalar_select %p9220_p2, 1, 0 }
  0xa0   : > { %s10388_s20 = scalar_select %p9235_p4, 1, 0 }
  0xa1   : > { %s462_s8 = sshll.u32 %s455_s15, 4  ;;  %s9241_s17 = scalar_lea.sflag [#allocation16], %s451_s24  ;;  %s9239_s8 = int_to_ptr.vmem [resolvable:$true] %s462_s8 }
  0xa2   : > { %p10351_p8 = pneg %p9235_p4 }
  0xa3   : > { %s9231_s25 = scalar_lea.hbm %s10387_s7, %s7269_s14  ;;  %s8578_s26 = scalar_lea.hbm %s10387_s7, 131072 }
  0xa4   : > { %s8573_s18 = scalar_lea.hbm %s9231_s25, 65536  ;;  %p8579_p3 = scmp.lt.u32.totalorder %s9231_s25, %s10387_s7 }
  0xa5   : > { %p8574_p6 = scmp.ne.s32.totalorder %s9231_s25, %s8573_s18  ;;  %p8580_p11 = scmp.lt.u32.totalorder %s8578_s26, %s8573_s18 }
  0xa6   : > { %p8582_p0 = scmp.lt.u32.totalorder %s8573_s18, %s9231_s25 }
  0xa7   : > { %p8576_p9 = pnand %p10351_p8, %p8574_p6  ;;  %p8581_p13 = por %p8580_p11, %p8579_p3 }
  0xa9   : > { %p8577_p10 = pneg %p8576_p9  ;;  %p8583_p12 = por %p8582_p0, %p8581_p13 }
  0xab   : > { %p8584_p1 = pnand %p8583_p12, %p8577_p10 }
  0xad   : > { %8587 = shalt.err (!%p8584_p1)
}
  0xae   : > { %s8588_s24 = scalar_lea.vmem %s9239_s8, 65536  ;;  %s8951_s11 = smov [#allocation15]  }
  0xaf   : > { %p8589_p6 = scmp.ne.s32.totalorder %s9239_s8, %s8588_s24  ;;  %s8593_s15 = sshll.u32 %s8951_s11, 4  ;;  %s8594_s15 = int_to_ptr.vmem [resolvable:$false] %s8593_s15 }
  0xb0   : > { %s8595_s13 = scalar_lea.vmem %s8594_s15, 131072  ;;  %p8596_p5 = scmp.lt.s32.totalorder %s9239_s8, %s8594_s15 }
  0xb1   : > { %p8591_p9 = pnand %p8589_p6, %p10351_p8  ;;  %p8597_p3 = scmp.lt.s32.totalorder %s8595_s13, %s8588_s24 }
  0xb3   : > { %p8592_p2 = pneg %p8591_p9  ;;  %p8598_p11 = por %p8597_p3, %p8596_p5 }
  0xb5   : > { %p8599_p13 = pnand %p8598_p11, %p8592_p2 }
  0xb7   : > { %8602 = shalt.err (!%p8599_p13)
}
  0xb8   : > { %s8952_s18 = smov 256   ;;  %s8953_s23 = smov 16  }
  0xb9   : > { %7410 = dma.hbm_to_vmem [thread:$0]  (!%p9235_p4), %s9231_s25, 65536, %s9239_s8, %s9241_s17, %s8948_s27, %s8952_s18, %s8953_s23  }
  0xba   : > { %s8954_s14 = smov [#allocation8]   ;;  %s8955_s0 = smov [#allocation11]  }
  0xbb   : > { %s351_s26 = sshll.u32 %s8954_s14, 4  ;;  %s375_s11 = sshll.u32 %s8955_s0, 4  ;;  %s352_s26 = int_to_ptr.vmem [resolvable:$true] %s351_s26  ;;  %s376_s11 = int_to_ptr.vmem [resolvable:$true] %s375_s11 }
  0xbc   : > { %s10389_s2 = sld [smem:[#allocation41_spill]] }
  0xc2   : > { %s8603_s13 = scalar_lea.hbm %s10389_s2, 32 }
  0xc3   : > { %p8604_p5 = scmp.ne.s32.totalorder %s10389_s2, %s8603_s13  ;;  %p8610_p2 = scmp.lt.u32.totalorder %s8603_s13, %s10389_s2 }
  0xc5   : > { %p8606_p1 = pnand %p8604_p5, %p9126_p7 }
  0xc7   : > { %p8607_p12 = pneg %p8606_p1 }
  0xc9   : > { %p8612_p10 = pnand %p8610_p2, %p8607_p12 }
  0xcb   : > { %8615 = shalt.err (!%p8612_p10)
}
  0xcc   : > { %s8616_s27 = scalar_lea.vmem %s352_s26, 32  ;;  %p8624_p3 = scmp.lt.s32.totalorder %s352_s26, %s352_s26 }
  0xcd   : > { %p8617_p0 = scmp.ne.s32.totalorder %s352_s26, %s8616_s27  ;;  %p8625_p11 = scmp.lt.s32.totalorder %s8616_s27, %s8616_s27 }
  0xcf   : > { %p8619_p6 = pnand %p8617_p0, %p9126_p7  ;;  %p8626_p13 = por %p8625_p11, %p8624_p3 }
  0xd1   : > { %p8620_p9 = pneg %p8619_p6 }
  0xd3   : > { %p8627_p8 = pnand %p8626_p13, %p8620_p9 }
  0xd5   : > { %8630 = shalt.err (!%p8627_p8)
}
  0xd6   : > { %p10390_p5 = scmp.ne.s32.totalorder %s10379_s16, 0  ;;  %s10391_s4 = sld [smem:[#allocation43_spill]] }
  0xd8   : > { %7385 = dma.hbm_to_vmem [thread:$0]  (!%p10390_p5), %s10389_s2, 32, %s352_s26, [#allocation7]  }
  0xdc   : > { %s8631_s25 = scalar_lea.hbm %s10391_s4, 32 }
  0xdd   : > { %p8632_p1 = scmp.ne.s32.totalorder %s10391_s4, %s8631_s25  ;;  %p8638_p8 = scmp.lt.u32.totalorder %s8631_s25, %s10391_s4 }
  0xdf   : > { %p8634_p12 = pnand %p8632_p1, %p9126_p7 }
  0xe1   : > { %p8635_p2 = pneg %p8634_p12 }
  0xe3   : > { %p8640_p10 = pnand %p8638_p8, %p8635_p2 }
  0xe5   : > { %8643 = shalt.err (!%p8640_p10)
}
  0xe6   : > { %s8644_s0 = scalar_lea.vmem %s376_s11, 32  ;;  %p8652_p3 = scmp.lt.s32.totalorder %s376_s11, %s376_s11 }
  0xe7   : > { %p8645_p0 = scmp.ne.s32.totalorder %s376_s11, %s8644_s0  ;;  %p8653_p11 = scmp.lt.s32.totalorder %s8644_s0, %s8644_s0 }
  0xe9   : > { %p8647_p6 = pnand %p8645_p0, %p9126_p7  ;;  %p8654_p13 = por %p8653_p11, %p8652_p3 }
  0xeb   : > { %p8648_p9 = pneg %p8647_p6 }
  0xed   : > { %p8655_p4 = pnand %p8654_p13, %p8648_p9 }
  0xef   : > { %8658 = shalt.err (!%p8655_p4)
}
  0xf0   : > { %7391 = dma.hbm_to_vmem [thread:$0]  (!%p10390_p5), %s10391_s4, 32, %s376_s11, [#allocation10]  }
  0xf1   : > { %s8956_s24 = smov [#allocation14]   ;;  %s8957_s27 = smov [#allocation20]  }
  0xf2   : > { %s399_s13 = sshll.u32 %s8956_s24, 4  ;;  %s421_s1 = sshll.u32 %s8957_s27, 4  ;;  %s400_s13 = int_to_ptr.vmem [resolvable:$true] %s399_s13  ;;  %s422_s1 = int_to_ptr.vmem [resolvable:$true] %s421_s1 }
  0xf3   : > { %s10392_s6 = sld [smem:[#allocation45_spill]] }
  0xf9   : > { %s8659_s7 = scalar_lea.hbm %s10392_s6, 128 }
  0xfa   : > { %p8660_p4 = scmp.ne.s32.totalorder %s10392_s6, %s8659_s7  ;;  %p8666_p2 = scmp.lt.u32.totalorder %s8659_s7, %s10392_s6 }
  0xfc   : > { %p8662_p1 = pnand %p8660_p4, %p9126_p7 }
  0xfe   : > { %p8663_p12 = pneg %p8662_p1 }
 0x100   : > { %p8668_p8 = pnand %p8666_p2, %p8663_p12 }
 0x102   : > { %8671 = shalt.err (!%p8668_p8)
}
 0x103   : > { %s8672_s11 = scalar_lea.vmem %s400_s13, 128  ;;  %p8680_p9 = scmp.lt.s32.totalorder %s400_s13, %s400_s13 }
 0x104   : > { %p8673_p10 = scmp.ne.s32.totalorder %s400_s13, %s8672_s11  ;;  %p8681_p3 = scmp.lt.s32.totalorder %s8672_s11, %s8672_s11 }
 0x106   : > { %p8675_p0 = pnand %p8673_p10, %p9126_p7  ;;  %p8682_p11 = por %p8681_p3, %p8680_p9 }
 0x108   : > { %p8676_p6 = pneg %p8675_p0 }
 0x10a   : > { %p8683_p13 = pnand %p8682_p11, %p8676_p6 }
 0x10c   : > { %8686 = shalt.err (!%p8683_p13)
}
 0x10d   : > { %7397 = dma.hbm_to_vmem [thread:$0]  (!%p10390_p5), %s10392_s6, 128, %s400_s13, [#allocation13]  }
 0x10e   : > { %s10393_s10 = sld [smem:[#allocation49_spill]] }
 0x114   : > { %s8687_s24 = scalar_lea.hbm %s10393_s10, 16 }
 0x115   : > { %p8688_p4 = scmp.ne.s32.totalorder %s10393_s10, %s8687_s24  ;;  %p8694_p2 = scmp.lt.u32.totalorder %s8687_s24, %s10393_s10 }
 0x117   : > { %p8690_p1 = pnand %p8688_p4, %p9126_p7 }
 0x119   : > { %p8691_p12 = pneg %p8690_p1 }
 0x11b   : > { %p8696_p8 = pnand %p8694_p2, %p8691_p12 }
 0x11d   : > { %8699 = shalt.err (!%p8696_p8)
}
 0x11e   : > { %s8700_s25 = scalar_lea.vmem %s422_s1, 16  ;;  %s8707_s13 = scalar_lea.vmem %s422_s1, 32 }
 0x11f   : > { %p8701_p10 = scmp.ne.s32.totalorder %s422_s1, %s8700_s25  ;;  %p8708_p9 = scmp.lt.s32.totalorder %s422_s1, %s422_s1 }
 0x120   : > { %p8709_p3 = scmp.lt.s32.totalorder %s8707_s13, %s8700_s25 }
 0x121   : > { %p8703_p0 = pnand %p8701_p10, %p9126_p7 }
 0x122   : > { %p8710_p11 = por %p8709_p3, %p8708_p9 }
 0x123   : > { %p8704_p6 = pneg %p8703_p0 }
 0x125   : > { %p8711_p13 = pnand %p8710_p11, %p8704_p6 }
 0x127   : > { %8714 = shalt.err (!%p8711_p13)
}
 0x128   : > { %s10394_s23 = sld [smem:[#allocation37_spill]]  ;;  %s10395_s11 = sld [smem:[#allocation34_spill]] }
 0x129   : > { %s10396_s14 = sld [smem:[#allocation33_spill]]  ;;  %s10397_s19 = sld [smem:[#allocation32_spill]] }
 0x12a   : > { %7403 = dma.hbm_to_vmem [thread:$0]  (!%p10390_p5), %s10393_s10, 16, %s422_s1, [#allocation19]  }
 0x12b   : > { %s6498_s0 = sadd.s32 4294967294, %s8941_s30   ;;  %s43_s16 = sadd.s32 1, %s8933_s28 }
 0x12c   : > { %s10398_s15 = sld [smem:[#allocation31_spill]]  ;;  %p44_p7 = scmp.ge.s32.totalorder %s43_s16, 2 }
 0x12d   : > { %s10399_s27 = sld [smem:[#allocation30_spill]]  ;;  %p10400_p12 = scmp.eq.s32.totalorder %s8941_s30, 0 }
 0x12e   : > { %s46_s26 = sadd.s32 1, %s10394_s23  ;;  %s53_s24 = sadd.s32 1, %s10395_s11 }
 0x12f   : > { %p60_p4 = scmp.ne.s32.totalorder %s10395_s11, %s10396_s14  ;;  %p66_p1 = scmp.ne.s32.totalorder %s10396_s14, %s10397_s19 }
 0x130   : > { %s10457_s16 = smov (%p44_p7, %s43_s16), 0  ;;  %s10459_s26 = smov (!%p44_p7, %s46_s26), %s10394_s23 }
 0x131   : > { %p9355_p5 = por %p10400_p12, %p60_p4  ;;  %p10402_p2 = scmp.eq.s32.totalorder %s9095_s12, 0 }
 0x132   : > { %s10404_s5 = sld [smem:[#allocation29_spill]]  ;;  %p48_p10 = scmp.ge.s32.totalorder %s10459_s26, 2 }
 0x133   : > { %p9361_p8 = por %p10402_p2, %p66_p1  ;;  %s202_s7 = ssub.s32 %s8933_s28, %s10457_s16 }
 0x134   : > { %p203_p0 = scmp.eq.s32.totalorder %s202_s7, 0  ;;  %s205_s25 = sadd.s32 1, %s8909_s22 }
 0x135   : > { %s10403_s3 = scalar_select %p9361_p8, 1, 0 }
 0x136   : > { %s10461_s26 = smov (%p48_p10, %s10459_s26), 0  ;;  %s301_s18 = sadd.s32 1, %s10398_s15 }
 0x137   : > { %s9371_s13 = scalar_select %p203_p0, %s8909_s22, %s205_s25  }
 0x138   : > { %s50_s8 = ssub.s32 %s10394_s23, %s10461_s26  ;;  %p311_p3 = scmp.ne.s32.totalorder %s10398_s15, %s10399_s27 }
 0x139   : > { %p51_p6 = scmp.eq.s32.totalorder %s50_s8, 0  ;;  %s298_s14 = sor.u32 %s202_s7, %s50_s8 }
 0x13a   : > { %p299_p9 = scmp.eq.s32.totalorder %s298_s14, 0  ;;  %p312_p11 = scmp.eq.s32.totalorder %s9095_s12, 3 }
 0x13b   : > { %s9379_s19 = scalar_select %p51_p6, %s10395_s11, %s53_s24  }
 0x13c   : > { %s10463_s15 = smov (!%p299_p9, %s10398_s15), %s301_s18  ;;  %p317_p13 = scmp.ne.s32.totalorder %s10399_s27, %s10404_s5 }
 0x13d   : > { %p318_p7 = scmp.eq.s32.totalorder %s6498_s0, 3  ;;  %s432_s25 = sand.u32 1, %s10395_s11  }
 0x13e   : > { %p9388_p4 = por %p312_p11, %p311_p3  ;;  %s6509_s8 = sshll.u32 %s432_s25, 5 }
 0x13f   : > { %p9392_p1 = por %p318_p7, %p317_p13  ;;  %s7268_s14 = sshll.u32 %s10394_s23, 9 }
 0x140   : > { %s10405_s2 = scalar_select %p9388_p4, 1, 0 }
 0x141   : > { %s10406_s7 = scalar_select %p9392_p1, 1, 0 }
 0x142   : > { %s10407_s6 = sld [smem:[#allocation39_spill]]  ;;  %s436_s0 = scalar_lea.vmem [#allocation3], %s6509_s8 }
 0x143   : > { %s444_s11 = sshll.u32 %s436_s0, 4  ;;  %p10408_p12 = scmp.lt.s32.totalorder %s8941_s30, 4  ;;  %s9402_s11 = int_to_ptr.vmem [resolvable:$true] %s444_s11 }
 0x144   : > { %s10410_s23 = sand.u32 1, %s8909_s22   ;;  %s7270_s5 = sshll.u32 %s8933_s28, 6 }
 0x145   : > { %p9408_p2 = pnand %p10408_p12, %p9355_p5  ;;  %s9414_s4 = sshll.u32 %s10410_s23, 2 }
 0x146   : > { %s433_s18 = scalar_lea.sflag [#allocation4], %s432_s25 }
 0x147   : > { %p8717_p0 = pneg %p9408_p2 }
 0x148   : > { %s9400_s9 = scalar_lea.hbm %s10407_s6, %s7268_s14  ;;  %s8720_s24 = scalar_lea.hbm %s10407_s6, 1024 }
 0x149   : > { %s8715_s14 = scalar_lea.hbm %s9400_s9, 512  ;;  %p8721_p5 = scmp.lt.u32.totalorder %s9400_s9, %s10407_s6 }
 0x14a   : > { %p8716_p10 = scmp.ne.s32.totalorder %s9400_s9, %s8715_s14  ;;  %p8722_p3 = scmp.lt.u32.totalorder %s8720_s24, %s8715_s14 }
 0x14b   : > { %p8724_p13 = scmp.lt.u32.totalorder %s8715_s14, %s9400_s9 }
 0x14c   : > { %p8718_p6 = pnand %p8717_p0, %p8716_p10  ;;  %p8723_p11 = por %p8722_p3, %p8721_p5 }
 0x14e   : > { %p8719_p9 = pneg %p8718_p6  ;;  %p8725_p7 = por %p8724_p13, %p8723_p11 }
 0x150   : > { %p8726_p12 = pnand %p8725_p7, %p8719_p9 }
 0x152   : > { %8729 = shalt.err (!%p8726_p12)
}
 0x153   : > { %s8730_s25 = scalar_lea.vmem %s9402_s11, 512  ;;  %s8958_s23 = smov [#allocation3]  }
 0x154   : > { %p8731_p10 = scmp.ne.s32.totalorder %s9402_s11, %s8730_s25  ;;  %s8735_s1 = sshll.u32 %s8958_s23, 4  ;;  %s8736_s1 = int_to_ptr.vmem [resolvable:$false] %s8735_s1 }
 0x155   : > { %s8737_s10 = scalar_lea.vmem %s8736_s1, 1024  ;;  %p8738_p4 = scmp.lt.s32.totalorder %s9402_s11, %s8736_s1 }
 0x156   : > { %p8733_p6 = pnand %p8731_p10, %p8717_p0  ;;  %p8739_p5 = scmp.lt.s32.totalorder %s8737_s10, %s8730_s25 }
 0x158   : > { %p8734_p1 = pneg %p8733_p6  ;;  %p8740_p3 = por %p8739_p5, %p8738_p4 }
 0x15a   : > { %p8741_p11 = pnand %p8740_p3, %p8734_p1 }
 0x15c   : > { %8744 = shalt.err (!%p8741_p11)
}
 0x15d   : > { %7407 = dma.hbm_to_vmem [thread:$0]  (!%p9408_p2), %s9400_s9, 512, %s9402_s11, %s433_s18  }
 0x15e   : > { %s10411_s24 = sld [smem:[#allocation47_spill]]  ;;  %s476_s25 = scalar_lea.vmem [#allocation17], %s9414_s4 }
 0x15f   : > { %s484_s1 = sshll.u32 %s476_s25, 4  ;;  %p10413_p1 = scmp.ne.s32.totalorder %s10388_s20, 0  ;;  %s485_s1 = int_to_ptr.vmem [resolvable:$true] %s484_s1 }
 0x161   : > { %p10414_p0 = pneg %p10413_p1 }
 0x164   : > { %s10412_s0 = smov %s10411_s24  ;;  %s9447_s23 = scalar_lea.hbm %s10411_s24, %s7270_s5 }
 0x165   : > { %s8745_s27 = scalar_lea.hbm %s9447_s23, 64  ;;  %s8750_s18 = scalar_lea.hbm %s10412_s0, 128 }
 0x166   : > { %p8746_p4 = scmp.ne.s32.totalorder %s9447_s23, %s8745_s27  ;;  %p8751_p2 = scmp.lt.u32.totalorder %s9447_s23, %s10412_s0 }
 0x167   : > { %p8752_p7 = scmp.lt.u32.totalorder %s8750_s18, %s8745_s27  ;;  %p8754_p10 = scmp.lt.u32.totalorder %s8745_s27, %s9447_s23 }
 0x168   : > { %p8748_p9 = pnand %p8746_p4, %p10414_p0 }
 0x169   : > { %p8753_p12 = por %p8752_p7, %p8751_p2 }
 0x16a   : > { %p8749_p13 = pneg %p8748_p9 }
 0x16b   : > { %p8755_p6 = por %p8754_p10, %p8753_p12 }
 0x16d   : > { %p8756_p5 = pnand %p8755_p6, %p8749_p13 }
 0x16f   : > { %8759 = shalt.err (!%p8756_p5)
}
 0x170   : > { %s8760_s4 = scalar_lea.vmem %s485_s1, 64  ;;  %p10415_p11 = pmov %p10414_p0 }
 0x171   : > { %p8761_p3 = scmp.ne.s32.totalorder %s485_s1, %s8760_s4  ;;  %s8959_s14 = smov [#allocation17]  }
 0x172   : > { %s8765_s8 = sshll.u32 %s8959_s14, 4  ;;  %s8766_s8 = int_to_ptr.vmem [resolvable:$false] %s8765_s8 }
 0x173   : > { %p8763_p4 = pnand %p8761_p3, %p10415_p11  ;;  %s8767_s24 = scalar_lea.vmem %s8766_s8, 128 }
 0x174   : > { %p8768_p9 = scmp.lt.s32.totalorder %s485_s1, %s8766_s8  ;;  %p8769_p8 = scmp.lt.s32.totalorder %s8767_s24, %s8760_s4 }
 0x175   : > { %p8764_p0 = pneg %p8763_p4 }
 0x176   : > { %p8770_p2 = por %p8769_p8, %p8768_p9 }
 0x178   : > { %p8771_p7 = pnand %p8770_p2, %p8764_p0 }
 0x17a   : > { %8774 = shalt.err (!%p8771_p7)
}
 0x17b   : > { %7413 = dma.hbm_to_vmem [thread:$0]  (!%p10413_p1), %s9447_s23, 64, %s485_s1, %s9241_s17  }
 0x17c   : > { %s10416_s25 = sld [smem:[#allocation38_spill]] }
 0x182   : > { %p10417_p13 = scmp.ne.s32.totalorder %s10416_s25, 0 }
 0x183   : > { %s10418_s27 = sld [smem:[#allocation33_spill]] (!%p10417_p13)  ;;  %p10419_p12 = scmp.ne.s32.totalorder (!%p10417_p13), %s10403_s3, 0 }
 0x184   : > { %493 = sbr.rel (%p10417_p13) target bundleno = 2171 (0x87b), region = 64 }
 0x189   : > { %s495_s9 = sand.u32 (!%p10417_p13), 1, %s10418_s27  }
 0x18a   : > { %s6519_s11 = sshll.u32 (!%p10417_p13), %s495_s9, 5  ;;  %s496_s18 = scalar_lea.sflag (!%p10417_p13), [#allocation4], %s495_s9 }
 0x18b   : > { %s9473_s10 = scalar_lea.vmem [#allocation3], %s6519_s11 }
 0x18c   : > { %8860 = dma.done.wait (%p10419_p12), %s496_s18, 512  }
 0x18d   : > { %8862 = vsyncadd (%p10419_p12), %s496_s18, 4294966784  ;;  %p10420_p8 = scmp.eq.s32.totalorder %s9095_s12, 0 }
 0x18f   : > { %8864 = dma.done.wait (%p10420_p8), [#allocation7], 4128   ;;  %p10421_p1 = pmov %p10420_p8 }
 0x191   : > { %8866 = vsyncadd (%p10421_p1), [#allocation7], 4294963168  ;;  %p10422_p10 = pmov %p10421_p1 }
 0x192   : > { %p10423_p6 = pmov %p10421_p1 }
 0x193   : > { %8868 = dma.done.wait (%p10422_p10), [#allocation10], 4128  }
 0x194   : > { %8870 = vsyncadd (%p10423_p6), [#allocation10], 4294963168  ;;  %p10424_p5 = pmov %p10421_p1 }
 0x195   : > { %p10425_p3 = pmov %p10421_p1 }
 0x196   : > { %8872 = dma.done.wait (%p10424_p5), [#allocation13], 16512  }
 0x197   : > { %8874 = vsyncadd (%p10425_p3), [#allocation13], 4294950784  ;;  %s528_s20 = sand.u32 1, %s9095_s12   ;;  %s530_s17 = sand.u32 1, %s8905_s21  }
 0x198   : > { %s6526_s3 = sshll.u32 %s530_s17, 12  ;;  %s529_s23 = scalar_lea.sflag [#allocation16], %s528_s20 }
 0x199   : > { %s9493_s1 = scalar_lea.vmem [#allocation15], %s6526_s3  ;;  %p10426_p11 = scmp.ne.s32.totalorder %s10386_s29, 0 }
 0x19b   : > { %8876 = dma.done.wait (%p10426_p11), %s529_s23, 65600  }
 0x19c   : > { %8878 = vsyncadd (%p10426_p11), %s529_s23, 4294901696  ;;  %s9499_s5 = sshll.u32 %s530_s17, 2  ;;  %p10427_p4 = pmov %p10421_p1 }
 0x19d   : > { %s541_s4 = scalar_lea.vmem [#allocation17], %s9499_s5 }
 0x19e   : > { %8880 = dma.done.wait (%p10427_p4), [#allocation19], 32   ;;  %p10428_p0 = pmov %p10421_p1 }
 0x19f   : > { %s10429_s14 = sld [smem:[#allocation30_spill]]  ;;  %s10430_s27 = sld [smem:[#allocation35_spill]] }
 0x1a0   : > { %8882 = vsyncadd (%p10428_p0), [#allocation19], 4294967264 }
 0x1a5   : > { %s595_s8 = sand.u32 1, %s10429_s14   ;;  %p6531_p9 = scmp.ne.s32.totalorder %s10430_s27, 0 }
 0x1a6   : > { %s6530_s24 = sshll.u32 %s595_s8, 5  ;;  %v7565_v0 = vld [vmem:[#allocation6 + $0x4] ss:$8 sps:$4 sm:$0xff] (!%p6531_p9)   ;;  %v7567_v1 = vld [vmem:[#allocation6] ss:$8 sps:$4 sm:$0xff] (!%p6531_p9)   ;;  %v608_v14 = vld [vmem:[%s9473_s10 + $0x18] sm:$0xff] (!%p6531_p9) }
 0x1a7   : > { %s9509_s25 = scalar_lea.vmem [#allocation21], %s6530_s24  ;;  %604 = sbr.rel (%p6531_p9) target bundleno = 1215 (0x4bf), region = 112  ;;  %815 = vmatprep.subr.bf16.mxu0 (!%p6531_p9), %v7565_v0  ;;  %v7568_v2 = vld [vmem:[#allocation6 + $0x14] ss:$8 sps:$4 sm:$0xff] (!%p6531_p9)   ;;  %v7570_v3 = vld [vmem:[#allocation6 + $0x10] ss:$8 sps:$4 sm:$0xff] (!%p6531_p9)  }
 0x1a8   : > { %816 = vmatpush1.bf16.msra.mxu0 (!%p6531_p9), %v7567_v1  ;;  %v7571_v4 = vld [vmem:[#allocation6 + $0x24] ss:$8 sps:$4 sm:$0xff] (!%p6531_p9)   ;;  %v7573_v5 = vld [vmem:[#allocation6 + $0x20] ss:$8 sps:$4 sm:$0xff] (!%p6531_p9)   ;;  %v7574_v6 = vld [vmem:[#allocation6 + $0x34] ss:$8 sps:$4 sm:$0xff] (!%p6531_p9)  }
 0x1a9   : > { %817 = vmatprep.subr.bf16.mxu0 (!%p6531_p9), %v7568_v2  ;;  %v7576_v7 = vld [vmem:[#allocation6 + $0x30] ss:$8 sps:$4 sm:$0xff] (!%p6531_p9)   ;;  %v7577_v8 = vld [vmem:[#allocation6 + $0x44] ss:$8 sps:$4 sm:$0xff] (!%p6531_p9)   ;;  %v7579_v9 = vld [vmem:[#allocation6 + $0x40] ss:$8 sps:$4 sm:$0xff] (!%p6531_p9)  }
 0x1aa   : > { %v7580_v10 = vld [vmem:[#allocation6 + $0x54] ss:$8 sps:$4 sm:$0xff] (!%p6531_p9)   ;;  %v7582_v11 = vld [vmem:[#allocation6 + $0x50] ss:$8 sps:$4 sm:$0xff] (!%p6531_p9)   ;;  %v7583_v12 = vld [vmem:[#allocation6 + $0x64] ss:$8 sps:$4 sm:$0xff] (!%p6531_p9)  }
 0x1ab   : > { %v606_v13 = vld [vmem:[%s9473_s10 + $0x8] sm:$0xff] (!%p6531_p9)  ;;  %v7586_v16 = vld [vmem:[#allocation6 + $0x74] ss:$8 sps:$4 sm:$0xff] (!%p6531_p9)   ;;  %v7588_v22 = vld [vmem:[#allocation6 + $0x70] ss:$8 sps:$4 sm:$0xff] (!%p6531_p9)  }
 0x1ac   : > { %818 = vmatpush1.bf16.msra.mxu0 (!%p6531_p9), %v7570_v3  ;;  %v7585_v15 = vld [vmem:[#allocation6 + $0x60] ss:$8 sps:$4 sm:$0xff] (!%p6531_p9)   ;;  %v610_v17 = vpack.c.bf16 (!%p6531_p9), %v608_v14, %v606_v13  ;;  %v7618_v21 = vld [vmem:[#allocation9 + $0x10] ss:$8 sps:$4 sm:$0xff] (!%p6531_p9)   ;;  %v7589_v24 = vld [vmem:[#allocation6 + $0x84] ss:$8 sps:$4 sm:$0xff] (!%p6531_p9)  }
 0x1ad   : > { %819 = vmatprep.subr.bf16.mxu0 (!%p6531_p9), %v7571_v4  ;;  %v7613_v18 = vld [vmem:[#allocation9 + $0x4] ss:$8 sps:$4 sm:$0xff] (!%p6531_p9)   ;;  %v7615_v19 = vld [vmem:[#allocation9] ss:$8 sps:$4 sm:$0xff] (!%p6531_p9)   ;;  %v7616_v20 = vld [vmem:[#allocation9 + $0x14] ss:$8 sps:$4 sm:$0xff] (!%p6531_p9)  }
 0x1ae   : > { %847 = vmatprep.mubr.bf16.mxu0 %v610_v17  ;;  %1068 = vmatprep.subr.bf16.mxu1 %v7613_v18  ;;  %v7619_v23 = vld [vmem:[#allocation9 + $0x24] ss:$8 sps:$4 sm:$0xff]   ;;  %v7621_v25 = vld [vmem:[#allocation9 + $0x20] ss:$8 sps:$4 sm:$0xff]   ;;  %v7622_v27 = vld [vmem:[#allocation9 + $0x34] ss:$8 sps:$4 sm:$0xff]  }
 0x1af   : > { %1069 = vmatpush1.bf16.msra.mxu1 %v7615_v19  ;;  %v7591_v26 = vld [vmem:[#allocation6 + $0x80] ss:$8 sps:$4 sm:$0xff]   ;;  %v7592_v28 = vld [vmem:[#allocation6 + $0x94] ss:$8 sps:$4 sm:$0xff]   ;;  %v7594_v30 = vld [vmem:[#allocation6 + $0x90] ss:$8 sps:$4 sm:$0xff]  }
 0x1b0   : > { %820 = vmatpush1.bf16.msra.mxu0 %v7573_v5  ;;  %1070 = vmatprep.subr.bf16.mxu1 %v7616_v20  ;;  %v7624_v29 = vld [vmem:[#allocation9 + $0x30] ss:$8 sps:$4 sm:$0xff]   ;;  %v7625_v31 = vld [vmem:[#allocation9 + $0x44] ss:$8 sps:$4 sm:$0xff]   ;;  %v7627_v33 = vld [vmem:[#allocation9 + $0x40] ss:$8 sps:$4 sm:$0xff]  }
 0x1b1   : > { %821 = vmatprep.subr.bf16.mxu0 %v7574_v6  ;;  %v7595_v32 = vld [vmem:[#allocation6 + $0xa4] ss:$8 sps:$4 sm:$0xff]   ;;  %v7597_v34 = vld [vmem:[#allocation6 + $0xa0] ss:$8 sps:$4 sm:$0xff]   ;;  %v7598_v36 = vld [vmem:[#allocation6 + $0xb4] ss:$8 sps:$4 sm:$0xff]  }
 0x1b2   : > { %v7628_v35 = vld [vmem:[#allocation9 + $0x54] ss:$8 sps:$4 sm:$0xff]   ;;  %v7630_v37 = vld [vmem:[#allocation9 + $0x50] ss:$8 sps:$4 sm:$0xff]   ;;  %v7631_v39 = vld [vmem:[#allocation9 + $0x64] ss:$8 sps:$4 sm:$0xff]  }
 0x1b3   : > { %1071 = vmatpush1.bf16.msra.mxu1 %v7618_v21  ;;  %v7600_v38 = vld [vmem:[#allocation6 + $0xb0] ss:$8 sps:$4 sm:$0xff]   ;;  %v7601_v40 = vld [vmem:[#allocation6 + $0xc4] ss:$8 sps:$4 sm:$0xff]   ;;  %v7603_v42 = vld [vmem:[#allocation6 + $0xc0] ss:$8 sps:$4 sm:$0xff]  }
 0x1b4   : > { %822 = vmatpush1.bf16.msra.mxu0 %v7576_v7  ;;  %1072 = vmatprep.subr.bf16.mxu1 %v7619_v23  ;;  %v7633_v41 = vld [vmem:[#allocation9 + $0x60] ss:$8 sps:$4 sm:$0xff]   ;;  %v7634_v43 = vld [vmem:[#allocation9 + $0x74] ss:$8 sps:$4 sm:$0xff]   ;;  %v7636_v45 = vld [vmem:[#allocation9 + $0x70] ss:$8 sps:$4 sm:$0xff]  }
 0x1b5   : > { %823 = vmatprep.subr.bf16.mxu0 %v7577_v8  ;;  %v7604_v44 = vld [vmem:[#allocation6 + $0xd4] ss:$8 sps:$4 sm:$0xff]   ;;  %v7606_v46 = vld [vmem:[#allocation6 + $0xd0] ss:$8 sps:$4 sm:$0xff]   ;;  %v7607_v48 = vld [vmem:[#allocation6 + $0xe4] ss:$8 sps:$4 sm:$0xff]  }
 0x1b6   : > { %v7637_v47 = vld [vmem:[#allocation9 + $0x84] ss:$8 sps:$4 sm:$0xff]   ;;  %v7639_v49 = vld [vmem:[#allocation9 + $0x80] ss:$8 sps:$4 sm:$0xff]   ;;  %v7640_v51 = vld [vmem:[#allocation9 + $0x94] ss:$8 sps:$4 sm:$0xff]  }
 0x1b7   : > { %1073 = vmatpush1.bf16.msra.mxu1 %v7621_v25  ;;  %v7609_v50 = vld [vmem:[#allocation6 + $0xe0] ss:$8 sps:$4 sm:$0xff]   ;;  %v7610_v52 = vld [vmem:[#allocation6 + $0xf4] ss:$8 sps:$4 sm:$0xff]   ;;  %v7612_v53 = vld [vmem:[#allocation6 + $0xf0] ss:$8 sps:$4 sm:$0xff]  }
 0x1b8   : > { %824 = vmatpush1.bf16.msra.mxu0 %v7579_v9  ;;  %1074 = vmatprep.subr.bf16.mxu1 %v7622_v27  ;;  %v7642_v54 = vld [vmem:[#allocation9 + $0x90] ss:$8 sps:$4 sm:$0xff]   ;;  %v605_v55 = vld [vmem:[%s9473_s10] sm:$0xff] }
 0x1b9   : > { %825 = vmatprep.subr.bf16.mxu0 %v7580_v10  ;;  %v607_v56 = vld [vmem:[%s9473_s10 + $0x10] sm:$0xff]  ;;  %v7645_v59 = vld [vmem:[#allocation9 + $0xa0] ss:$8 sps:$4 sm:$0xff]  }
 0x1ba   : > { %v7643_v57 = vld [vmem:[#allocation9 + $0xa4] ss:$8 sps:$4 sm:$0xff]   ;;  %v609_v58 = vpack.c.bf16 %v607_v56, %v605_v55  ;;  %v7646_v60 = vld [vmem:[#allocation9 + $0xb4] ss:$8 sps:$4 sm:$0xff]   ;;  %v7648_v61 = vld [vmem:[#allocation9 + $0xb0] ss:$8 sps:$4 sm:$0xff]  }
 0x1bb   : > { %1075 = vmatpush1.bf16.msra.mxu1 %v7624_v29  ;;  %v7649_v62 = vld [vmem:[#allocation9 + $0xc4] ss:$8 sps:$4 sm:$0xff]   ;;  %v7651_v63 = vld [vmem:[#allocation9 + $0xc0] ss:$8 sps:$4 sm:$0xff]   ;;  %v7652_v0 = vld [vmem:[#allocation9 + $0xd4] ss:$8 sps:$4 sm:$0xff]  }
 0x1bc   : > { %826 = vmatpush1.bf16.msra.mxu0 %v7582_v11  ;;  %1076 = vmatprep.subr.bf16.mxu1 %v7625_v31  ;;  %v7654_v1 = vld [vmem:[#allocation9 + $0xd0] ss:$8 sps:$4 sm:$0xff]   ;;  %v7655_v2 = vld [vmem:[#allocation9 + $0xe4] ss:$8 sps:$4 sm:$0xff]   ;;  %v7657_v3 = vld [vmem:[#allocation9 + $0xe0] ss:$8 sps:$4 sm:$0xff]  }
 0x1bd   : > { %827 = vmatprep.subr.bf16.mxu0 %v7583_v12  ;;  %v7658_v4 = vld [vmem:[#allocation9 + $0xf4] ss:$8 sps:$4 sm:$0xff]   ;;  %v7660_v5 = vld [vmem:[#allocation9 + $0xf0] ss:$8 sps:$4 sm:$0xff]   ;;  %v1117_v6 = vld [vmem:[#allocation12] sm:$0xff] }
 0x1be   : > { %v1121_v7 = vld [vmem:[#allocation12 + $0x20] sm:$0xff]  ;;  %v9516_v8 = vld [vmem:[#allocation12 + $0x8] sm:$0xff] }
 0x1bf   : > { %1077 = vmatpush1.bf16.msra.mxu1 %v7627_v33  ;;  %v6596_v9 = vcombine.low %v1117_v6, %v1121_v7  ;;  %v6597_v10 = vcombine.high %v1117_v6, %v1121_v7  ;;  %v9518_v11 = vld [vmem:[#allocation12 + $0x28] sm:$0xff]  ;;  %v1125_v12 = vld [vmem:[#allocation12 + $0x40] sm:$0xff] }
 0x1c0   : > { %828 = vmatpush1.bf16.msra.mxu0 %v7585_v15  ;;  %1078 = vmatprep.subr.bf16.mxu1 %v7628_v35  ;;  %v1129_v13 = vld [vmem:[#allocation12 + $0x60] sm:$0xff]  ;;  %v6598_v14 = vcombine.low %v9516_v8, %v9518_v11  ;;  %v6599_v15 = vcombine.high %v9516_v8, %v9518_v11 }
 0x1c1   : > { %829 = vmatprep.subr.bf16.mxu0 %v7586_v16  ;;  %v6605_v16 = vcombine.high %v1125_v12, %v1129_v13  ;;  %v6604_v17 = vcombine.low %v1125_v12, %v1129_v13  ;;  %v1133_v18 = vld [vmem:[#allocation12 + $0x80] sm:$0xff] }
 0x1c2   : > { %v1137_v19 = vld [vmem:[#allocation12 + $0xa0] sm:$0xff] }
 0x1c3   : > { %1079 = vmatpush1.bf16.msra.mxu1 %v7630_v37  ;;  %v6613_v20 = vcombine.high %v1133_v18, %v1137_v19  ;;  %v6612_v21 = vcombine.low %v1133_v18, %v1137_v19  ;;  %v1145_v23 = vld [vmem:[#allocation12 + $0xe0] sm:$0xff] }
 0x1c4   : > { %830 = vmatpush1.bf16.msra.mxu0 %v7588_v22  ;;  %1080 = vmatprep.subr.bf16.mxu1 %v7631_v39  ;;  %v1141_v22 = vld [vmem:[#allocation12 + $0xc0] sm:$0xff] }
 0x1c5   : > { %831 = vmatprep.subr.bf16.mxu0 %v7589_v24  ;;  %v6621_v24 = vcombine.high %v1141_v22, %v1145_v23  ;;  %v6620_v25 = vcombine.low %v1141_v22, %v1145_v23  ;;  %v1153_v27 = vld [vmem:[#allocation12 + $0x120] sm:$0xff] }
 0x1c6   : > { %v1161_v31 = vld [vmem:[#allocation12 + $0x160] sm:$0xff] }
 0x1c7   : > { %1081 = vmatpush1.bf16.msra.mxu1 %v7633_v41  ;;  %v1169_v35 = vld [vmem:[#allocation12 + $0x1a0] sm:$0xff] }
 0x1c8   : > { %832 = vmatpush1.bf16.msra.mxu0 %v7591_v26  ;;  %1082 = vmatprep.subr.bf16.mxu1 %v7634_v43  ;;  %v1149_v26 = vld [vmem:[#allocation12 + $0x100] sm:$0xff] }
 0x1c9   : > { %833 = vmatprep.subr.bf16.mxu0 %v7592_v28  ;;  %v6629_v28 = vcombine.high %v1149_v26, %v1153_v27  ;;  %v6628_v29 = vcombine.low %v1149_v26, %v1153_v27  ;;  %v1177_v39 = vld [vmem:[#allocation12 + $0x1e0] sm:$0xff] }
 0x1ca   : > { %v1185_v43 = vld [vmem:[#allocation12 + $0x220] sm:$0xff] }
 0x1cb   : > { %1083 = vmatpush1.bf16.msra.mxu1 %v7636_v45  ;;  %v1209_v55 = vld [vmem:[#allocation12 + $0x2e0] sm:$0xff] }
 0x1cc   : > { %834 = vmatpush1.bf16.msra.mxu0 %v7594_v30  ;;  %1084 = vmatprep.subr.bf16.mxu1 %v7637_v47  ;;  %v1157_v30 = vld [vmem:[#allocation12 + $0x140] sm:$0xff] }
 0x1cd   : > { %835 = vmatprep.subr.bf16.mxu0 %v7595_v32  ;;  %v6637_v32 = vcombine.high %v1157_v30, %v1161_v31  ;;  %v6636_v33 = vcombine.low %v1157_v30, %v1161_v31  ;;  %v1193_v47 = vld [vmem:[#allocation12 + $0x260] sm:$0xff]  ;;  %v1138_v30 = vld [vmem:[#allocation12 + $0xa8] sm:$0xff] }
 0x1cf   : > { %1085 = vmatpush1.bf16.msra.mxu1 %v7639_v49 }
 0x1d0   : > { %836 = vmatpush1.bf16.msra.mxu0 %v7597_v34  ;;  %1086 = vmatprep.subr.bf16.mxu1 %v7640_v51  ;;  %v1165_v34 = vld [vmem:[#allocation12 + $0x180] sm:$0xff] }
 0x1d1   : > { %837 = vmatprep.subr.bf16.mxu0 %v7598_v36  ;;  %v6645_v36 = vcombine.high %v1165_v34, %v1169_v35  ;;  %v6644_v37 = vcombine.low %v1165_v34, %v1169_v35  ;;  %v1201_v51 = vld [vmem:[#allocation12 + $0x2a0] sm:$0xff]  ;;  %v1146_v34 = vld [vmem:[#allocation12 + $0xe8] sm:$0xff] }
 0x1d3   : > { %1087 = vmatpush1.bf16.msra.mxu1 %v7642_v54  ;;  %v1205_v54 = vld [vmem:[#allocation12 + $0x2c0] sm:$0xff] }
 0x1d4   : > { %838 = vmatpush1.bf16.msra.mxu0 %v7600_v38  ;;  %1088 = vmatprep.subr.bf16.mxu1 %v7643_v57  ;;  %v1173_v38 = vld [vmem:[#allocation12 + $0x1c0] sm:$0xff]  ;;  %v6685_v56 = vcombine.high %v1205_v54, %v1209_v55  ;;  %v6684_v57 = vcombine.low %v1205_v54, %v1209_v55  ;;  %v1190_v54 = vld [vmem:[#allocation12 + $0x248] sm:$0xff] }
 0x1d5   : > { %839 = vmatprep.subr.bf16.mxu0 %v7601_v40  ;;  %v6653_v40 = vcombine.high %v1173_v38, %v1177_v39  ;;  %v6652_v41 = vcombine.low %v1173_v38, %v1177_v39  ;;  %v1154_v38 = vld [vmem:[#allocation12 + $0x128] sm:$0xff] }
 0x1d6   : > { %v1194_v55 = vld [vmem:[#allocation12 + $0x268] sm:$0xff] }
 0x1d7   : > { %1089 = vmatpush1.bf16.msra.mxu1 %v7645_v59  ;;  %v1217_v59 = vld [vmem:[#allocation12 + $0x320] sm:$0xff] }
 0x1d8   : > { %840 = vmatpush1.bf16.msra.mxu0 %v7603_v42  ;;  %1090 = vmatprep.subr.bf16.mxu1 %v7646_v60  ;;  %v1181_v42 = vld [vmem:[#allocation12 + $0x200] sm:$0xff] }
 0x1d9   : > { %841 = vmatprep.subr.bf16.mxu0 %v7604_v44  ;;  %v6661_v44 = vcombine.high %v1181_v42, %v1185_v43  ;;  %v6660_v45 = vcombine.low %v1181_v42, %v1185_v43  ;;  %v1162_v42 = vld [vmem:[#allocation12 + $0x168] sm:$0xff] }
 0x1da   : > { %v1170_v43 = vld [vmem:[#allocation12 + $0x1a8] sm:$0xff] }
 0x1db   : > { %1091 = vmatpush1.bf16.msra.mxu1 %v7648_v61 }
 0x1dc   : > { %842 = vmatpush1.bf16.msra.mxu0 %v7606_v46  ;;  %1092 = vmatprep.subr.bf16.mxu1 %v7649_v62  ;;  %v1189_v46 = vld [vmem:[#allocation12 + $0x240] sm:$0xff] }
 0x1dd   : > { %843 = vmatprep.subr.bf16.mxu0 %v7607_v48  ;;  %v6669_v48 = vcombine.high %v1189_v46, %v1193_v47  ;;  %v6668_v49 = vcombine.low %v1189_v46, %v1193_v47  ;;  %v1221_v62 = vld [vmem:[#allocation12 + $0x340] sm:$0xff]  ;;  %v1174_v46 = vld [vmem:[#allocation12 + $0x1c8] sm:$0xff] }
 0x1de   : > { %v1178_v47 = vld [vmem:[#allocation12 + $0x1e8] sm:$0xff] }
 0x1df   : > { %1093 = vmatpush1.bf16.msra.mxu1 %v7651_v63  ;;  %v1225_v63 = vld [vmem:[#allocation12 + $0x360] sm:$0xff] }
 0x1e0   : > { %844 = vmatpush1.bf16.msra.mxu0 %v7609_v50  ;;  %1094 = vmatprep.subr.bf16.mxu1 %v7652_v0  ;;  %v1197_v50 = vld [vmem:[#allocation12 + $0x280] sm:$0xff]  ;;  %v6701_v0 = vcombine.high %v1221_v62, %v1225_v63 }
 0x1e1   : > { %845 = vmatprep.subr.bf16.mxu0 %v7610_v52  ;;  %v6677_v52 = vcombine.high %v1197_v50, %v1201_v51 }
 0x1e3   : > { %1095 = vmatpush1.bf16.msra.mxu1 %v7654_v1  ;;  %v6700_v1 = vcombine.low %v1221_v62, %v1225_v63  ;;  %v1206_v62 = vld [vmem:[#allocation12 + $0x2c8] sm:$0xff] }
 0x1e4   : > { %846 = vmatpush1.bf16.msra.mxu0 %v7612_v53  ;;  %1096 = vmatprep.subr.bf16.mxu1 %v7655_v2  ;;  %v6676_v53 = vcombine.low %v1197_v50, %v1201_v51  ;;  %v645_v2 = vlaneseq  ;;  %v1182_v50 = vld [vmem:[#allocation12 + $0x208] sm:$0xff] }
 0x1e5   : > { %1927 = vmatprep.subr.bf16.mxu0 %v6597_v10  ;;  %v1186_v51 = vld [vmem:[#allocation12 + $0x228] sm:$0xff] }
 0x1e6   : > { %v1210_v63 = vld [vmem:[#allocation12 + $0x2e8] sm:$0xff] }
 0x1e7   : > { %848 = vmatmul.mubr.bf16.vlgmr.msra.gmra.mrb[0].mxu0 %v609_v58  ;;  %1097 = vmatpush1.bf16.msra.mxu1 %v7657_v3  ;;  %v1213_v58 = vld [vmem:[#allocation12 + $0x300] sm:$0xff]  ;;  %v9524_v3 = vshrl.u32 %v645_v2, 7  ;;  %v1214_v2 = vld [vmem:[#allocation12 + $0x308] sm:$0xff] }
 0x1e8   : > { %1098 = vmatprep.subr.bf16.mxu1 %v7658_v4  ;;  %1928 = vmatpush1.bf16.msra.mxu0 %v6596_v9  ;;  %v6693_v60 = vcombine.high %v1213_v58, %v1217_v59  ;;  %v6692_v61 = vcombine.low %v1213_v58, %v1217_v59  ;;  %v1198_v58 = vld [vmem:[#allocation12 + $0x288] sm:$0xff] }
 0x1e9   : > { %1929 = vmatprep.subr.bf16.mxu0 %v6605_v16  ;;  %v9527_v4 = vsub.s32 0, %v9524_v3  ;;  %v9530_v6 = vsub.s32 1, %v9524_v3  ;;  %v1202_v59 = vld [vmem:[#allocation12 + $0x2a8] sm:$0xff] }
 0x1eb   : > { %1099 = vmatpush1.bf16.msra.mxu1 %v7660_v5  ;;  %v643_v5 = vld [vmem:[#allocation8] sm:$0x3] }
 0x1ec   : > { %1970 = vmatprep.subr.bf16.mxu1 %v6599_v15  ;;  %1930 = vmatpush1.bf16.msra.mxu0 %v6604_v17  ;;  %v648_v7 = vrot.slane %v643_v5, %v9527_v4  ;;  %v652_v9 = vrot.slane %v643_v5, %v9530_v6  ;;  %v1218_v5 = vld [vmem:[#allocation12 + $0x328] sm:$0xff] }
 0x1ed   : > { %1931 = vmatprep.subr.bf16.mxu0 %v6613_v20 }
 0x1f0   : > { %1932 = vmatpush1.bf16.msra.mxu0 %v6612_v21 }
 0x1f1   : > { %1933 = vmatprep.subr.bf16.mxu0 %v6621_v24  ;;  %v1126_v24 = vld [vmem:[#allocation12 + $0x48] sm:$0xff] }
 0x1f4   : > { %1934 = vmatpush1.bf16.msra.mxu0 %v6620_v25  ;;  %v1130_v25 = vld [vmem:[#allocation12 + $0x68] sm:$0xff] }
 0x1f5   : > { %1935 = vmatprep.subr.bf16.mxu0 %v6629_v28  ;;  %v6607_v28 = vcombine.high %v1126_v24, %v1130_v25  ;;  %v6606_v31 = vcombine.low %v1126_v24, %v1130_v25  ;;  %v1237_v25 = vld [vmem:[#allocation12 + $0x3c0] sm:$0xff] }
 0x1f8   : > { %1936 = vmatpush1.bf16.msra.mxu0 %v6628_v29  ;;  %v1134_v29 = vld [vmem:[#allocation12 + $0x88] sm:$0xff] }
 0x1f9   : > { %1937 = vmatprep.subr.bf16.mxu0 %v6637_v32  ;;  %v6615_v32 = vcombine.high %v1134_v29, %v1138_v30  ;;  %v6614_v35 = vcombine.low %v1134_v29, %v1138_v30  ;;  %v1242_v29 = vld [vmem:[#allocation12 + $0x3e8] sm:$0xff] }
 0x1fc   : > { %1938 = vmatpush1.bf16.msra.mxu0 %v6636_v33  ;;  %v1142_v33 = vld [vmem:[#allocation12 + $0xc8] sm:$0xff] }
 0x1fd   : > { %1939 = vmatprep.subr.bf16.mxu0 %v6645_v36  ;;  %v6623_v36 = vcombine.high %v1142_v33, %v1146_v34  ;;  %v6622_v39 = vcombine.low %v1142_v33, %v1146_v34  ;;  %v1119_v33 = vld [vmem:[#allocation12 + $0x10] sm:$0xff] }
 0x1fe   : > { %v1123_v34 = vld [vmem:[#allocation12 + $0x30] sm:$0xff] }
 0x200   : > { %1940 = vmatpush1.bf16.msra.mxu0 %v6644_v37  ;;  %v1150_v37 = vld [vmem:[#allocation12 + $0x108] sm:$0xff] }
 0x201   : > { %1941 = vmatprep.subr.bf16.mxu0 %v6653_v40  ;;  %v6631_v40 = vcombine.high %v1150_v37, %v1154_v38  ;;  %v6630_v8 = vcombine.low %v1150_v37, %v1154_v38  ;;  %v1124_v37 = vld [vmem:[#allocation12 + $0x38] sm:$0xff]  ;;  %v6600_v38 = vcombine.low %v1119_v33, %v1123_v34 }
 0x204   : > { %1942 = vmatpush1.bf16.msra.mxu0 %v6652_v41  ;;  %v1158_v41 = vld [vmem:[#allocation12 + $0x148] sm:$0xff] }
 0x205   : > { %1943 = vmatprep.subr.bf16.mxu0 %v6661_v44  ;;  %v6639_v11 = vcombine.high %v1158_v41, %v1162_v42  ;;  %v6638_v44 = vcombine.low %v1158_v41, %v1162_v42  ;;  %v896_v41 = vld [vmem:[#allocation11] sm:$0x3] }
 0x206   : > { %v901_v42 = vrot.slane %v896_v41, %v9527_v4 }
 0x208   : > { %1944 = vmatpush1.bf16.msra.mxu0 %v6660_v45 }
 0x209   : > { %1945 = vmatprep.subr.bf16.mxu0 %v6669_v48 }
 0x20c   : > { %1946 = vmatpush1.bf16.msra.mxu0 %v6668_v49  ;;  %v6655_v49 = vcombine.high %v1174_v46, %v1178_v47 }
 0x20d   : > { %1947 = vmatprep.subr.bf16.mxu0 %v6677_v52  ;;  %v6654_v52 = vcombine.low %v1174_v46, %v1178_v47 }
 0x210   : > { %1948 = vmatpush1.bf16.msra.mxu0 %v6676_v53  ;;  %v6663_v53 = vcombine.high %v1182_v50, %v1186_v51 }
 0x211   : > { %1949 = vmatprep.subr.bf16.mxu0 %v6685_v56  ;;  %v6662_v56 = vcombine.low %v1182_v50, %v1186_v51 }
 0x214   : > { %1950 = vmatpush1.bf16.msra.mxu0 %v6684_v57  ;;  %v6671_v57 = vcombine.high %v1190_v54, %v1194_v55 }
 0x215   : > { %1951 = vmatprep.subr.bf16.mxu0 %v6693_v60  ;;  %v6670_v60 = vcombine.low %v1190_v54, %v1194_v55  ;;  %v1131_v55 = vld [vmem:[#allocation12 + $0x70] sm:$0xff] }
 0x218   : > { %1952 = vmatpush1.bf16.msra.mxu0 %v6692_v61  ;;  %v6679_v61 = vcombine.high %v1198_v58, %v1202_v59 }
 0x219   : > { %1953 = vmatprep.subr.bf16.mxu0 %v6701_v0  ;;  %v6678_v0 = vcombine.low %v1198_v58, %v1202_v59  ;;  %v1135_v59 = vld [vmem:[#allocation12 + $0x90] sm:$0xff] }
 0x21c   : > { %1954 = vmatpush1.bf16.msra.mxu0 %v6700_v1  ;;  %v6687_v1 = vcombine.high %v1206_v62, %v1210_v63 }
 0x2ba   : > { %v849_v10 = vpop.f32.mrb[0].mxu0 }
 0x2bb   : > { %v850_v12 = vadd.f32 %v849_v10, %v648_v7  ;;  %v851_v13 = vpop.f32.mrb[1].mxu0  ;;  %v1222_v10 = vld [vmem:[#allocation12 + $0x348] sm:$0xff] }
 0x2bc   : > { %v852_v15 = vadd.f32 %v851_v13, %v652_v9  ;;  %v853_v16 = vpop.f32.mrb[2].mxu0  ;;  %v6694_v13 = vcombine.low %v1214_v2, %v1218_v5 }
 0x2bd   : > { %v854_v17 = vadd.f32 %v853_v16, %v648_v7  ;;  %v855_v18 = vpop.f32.mrb[3].mxu0  ;;  %v858_v20 = vmax.f32 %v850_v12, 0.0  ;;  %v6686_v7 = vcombine.low %v1206_v62, %v1210_v63  ;;  %v1226_v12 = vld [vmem:[#allocation12 + $0x368] sm:$0xff]  ;;  %v1139_v62 = vld [vmem:[#allocation12 + $0xb0] sm:$0xff]  ;;  %v1136_v63 = vld [vmem:[#allocation12 + $0x98] sm:$0xff] }
 0x2be   : > { %v856_v19 = vadd.f32 %v855_v18, %v652_v9  ;;  %v859_v22 = vmax.f32 %v852_v15, 0.0  ;;  %v6695_v9 = vcombine.high %v1214_v2, %v1218_v5  ;;  %v6703_v15 = vcombine.high %v1222_v10, %v1226_v12  ;;  %v1233_v18 = vld [vmem:[#allocation12 + $0x3a0] sm:$0xff] }
 0x2bf   : > { %v860_v21 = vmax.f32 %v854_v17, 0.0  ;;  %v6702_v16 = vcombine.low %v1222_v10, %v1226_v12  ;;  %v1229_v17 = vld [vmem:[#allocation12 + $0x380] sm:$0xff]  ;;  %v6617_v5 = vcombine.high %v1135_v59, %v1139_v62  ;;  %v1147_v10 = vld [vmem:[#allocation12 + $0xf0] sm:$0xff]  ;;  %v1144_v12 = vld [vmem:[#allocation12 + $0xd8] sm:$0xff] }
 0x2c0   : > { %v861_v23 = vmax.f32 %v856_v19, 0.0  ;;  %v1230_v19 = vld [vmem:[#allocation12 + $0x388] sm:$0xff] }
 0x2c1   : > { %v862_v26 = vpack.c.bf16 %v860_v21, %v858_v20  ;;  %v6709_v20 = vcombine.high %v1229_v17, %v1233_v18  ;;  %v1234_v21 = vld [vmem:[#allocation12 + $0x3a8] sm:$0xff] }
 0x2c2   : > { %v863_v27 = vpack.c.bf16 %v861_v23, %v859_v22  ;;  %v6708_v22 = vcombine.low %v1229_v17, %v1233_v18  ;;  %v6710_v23 = vcombine.low %v1230_v19, %v1234_v21  ;;  %v6711_v24 = vcombine.high %v1230_v19, %v1234_v21  ;;  %v1151_v19 = vld [vmem:[#allocation12 + $0x110] sm:$0xff]  ;;  %v1152_v21 = vld [vmem:[#allocation12 + $0x118] sm:$0xff] }
 0x2c3   : > { %1955 = vmatprep.subr.bf16.mxu0 %v6709_v20  ;;  %v1155_v20 = vld [vmem:[#allocation12 + $0x130] sm:$0xff] }
 0x2c4   : > { %1100 = vmatprep.mubr.bf16.mxu1 %v863_v27  ;;  %1956 = vmatpush1.bf16.msra.mxu0 %v6708_v22  ;;  %v1238_v27 = vld [vmem:[#allocation12 + $0x3c8] sm:$0xff]  ;;  %v1156_v22 = vld [vmem:[#allocation12 + $0x138] sm:$0xff] }
 0x2c5   : > { %1101 = vmatmul.mubr.bf16.vlgmr.msra.gmra.mrb[0].mxu1 %v862_v26  ;;  %v1241_v26 = vld [vmem:[#allocation12 + $0x3e0] sm:$0xff] }
 0x2c6   : > { %1971 = vmatpush1.bf16.msra.mxu1 %v6598_v14  ;;  %v1166_v14 = vld [vmem:[#allocation12 + $0x188] sm:$0xff]  ;;  %v6716_v30 = vcombine.low %v1237_v25, %v1241_v26 }
 0x2c7   : > { %1972 = vmatprep.subr.bf16.mxu1 %v6607_v28  ;;  %v6647_v45 = vcombine.high %v1166_v14, %v1170_v43  ;;  %v6646_v48 = vcombine.low %v1166_v14, %v1170_v43  ;;  %v6717_v28 = vcombine.high %v1237_v25, %v1241_v26  ;;  %v6633_v25 = vcombine.high %v1151_v19, %v1155_v20 }
 0x2c8   : > { %v6635_v26 = vcombine.high %v1152_v21, %v1156_v22 }
 0x2c9   : > { %1957 = vmatprep.subr.bf16.mxu0 %v6717_v28  ;;  %v1163_v28 = vld [vmem:[#allocation12 + $0x170] sm:$0xff] }
 0x2ca   : > { %1973 = vmatpush1.bf16.msra.mxu1 %v6606_v31  ;;  %v6718_v31 = vcombine.low %v1238_v27, %v1242_v29  ;;  %1958 = vmatpush1.bf16.msra.mxu0 %v6716_v30  ;;  %v1164_v30 = vld [vmem:[#allocation12 + $0x178] sm:$0xff] }
 0x2cb   : > { %1974 = vmatprep.subr.bf16.mxu1 %v6615_v32  ;;  %v6719_v32 = vcombine.high %v1238_v27, %v1242_v29  ;;  %v1159_v27 = vld [vmem:[#allocation12 + $0x150] sm:$0xff]  ;;  %v1160_v29 = vld [vmem:[#allocation12 + $0x158] sm:$0xff] }
 0x2ce   : > { %1975 = vmatpush1.bf16.msra.mxu1 %v6614_v35  ;;  %v1120_v35 = vld [vmem:[#allocation12 + $0x18] sm:$0xff] }
 0x2cf   : > { %1976 = vmatprep.subr.bf16.mxu1 %v6623_v36  ;;  %v6601_v36 = vcombine.high %v1119_v33, %v1123_v34  ;;  %v6641_v33 = vcombine.high %v1159_v27, %v1163_v28  ;;  %v6643_v34 = vcombine.high %v1160_v29, %v1164_v30 }
 0x2d1   : > { %2013 = vmatprep.subr.bf16.mxu0 %v6601_v36  ;;  %v1171_v36 = vld [vmem:[#allocation12 + $0x1b0] sm:$0xff] }
 0x2d2   : > { %1977 = vmatpush1.bf16.msra.mxu1 %v6622_v39  ;;  %v6602_v39 = vcombine.low %v1120_v35, %v1124_v37 }
 0x2d3   : > { %1978 = vmatprep.subr.bf16.mxu1 %v6631_v40  ;;  %v6603_v40 = vcombine.high %v1120_v35, %v1124_v37  ;;  %v1167_v35 = vld [vmem:[#allocation12 + $0x190] sm:$0xff]  ;;  %v1168_v37 = vld [vmem:[#allocation12 + $0x198] sm:$0xff] }
 0x2d6   : > { %1979 = vmatpush1.bf16.msra.mxu1 %v6630_v8  ;;  %v905_v8 = vrot.slane %v896_v41, %v9530_v6  ;;  %v6649_v41 = vcombine.high %v1167_v35, %v1171_v36 }
 0x2d7   : > { %1980 = vmatprep.subr.bf16.mxu1 %v6639_v11 }
 0x2da   : > { %1981 = vmatpush1.bf16.msra.mxu1 %v6638_v44 }
 0x2db   : > { %1982 = vmatprep.subr.bf16.mxu1 %v6647_v45 }
 0x2de   : > { %1983 = vmatpush1.bf16.msra.mxu1 %v6646_v48 }
 0x2df   : > { %1984 = vmatprep.subr.bf16.mxu1 %v6655_v49 }
 0x2e2   : > { %1985 = vmatpush1.bf16.msra.mxu1 %v6654_v52 }
 0x2e3   : > { %1986 = vmatprep.subr.bf16.mxu1 %v6663_v53  ;;  %v1127_v53 = vld [vmem:[#allocation12 + $0x50] sm:$0xff] }
 0x2e6   : > { %1987 = vmatpush1.bf16.msra.mxu1 %v6662_v56  ;;  %v1128_v56 = vld [vmem:[#allocation12 + $0x58] sm:$0xff] }
 0x2e7   : > { %1988 = vmatprep.subr.bf16.mxu1 %v6671_v57  ;;  %v1132_v57 = vld [vmem:[#allocation12 + $0x78] sm:$0xff] }
 0x2e8   : > { %v6610_v2 = vcombine.low %v1128_v56, %v1132_v57 }
 0x2ea   : > { %1989 = vmatpush1.bf16.msra.mxu1 %v6670_v60  ;;  %v6609_v60 = vcombine.high %v1127_v53, %v1131_v55 }
 0x2eb   : > { %1990 = vmatprep.subr.bf16.mxu1 %v6679_v61  ;;  %v6611_v61 = vcombine.high %v1128_v56, %v1132_v57  ;;  %v1191_v57 = vld [vmem:[#allocation12 + $0x250] sm:$0xff] }
 0x2ee   : > { %1991 = vmatpush1.bf16.msra.mxu1 %v6678_v0  ;;  %v1140_v0 = vld [vmem:[#allocation12 + $0xb8] sm:$0xff] }
 0x2ef   : > { %1992 = vmatprep.subr.bf16.mxu1 %v6687_v1  ;;  %v6608_v1 = vcombine.low %v1127_v53, %v1131_v55 }
 0x2f2   : > { %1993 = vmatpush1.bf16.msra.mxu1 %v6686_v7  ;;  %v6619_v7 = vcombine.high %v1136_v63, %v1140_v0 }
 0x2f3   : > { %1994 = vmatprep.subr.bf16.mxu1 %v6695_v9  ;;  %v1143_v9 = vld [vmem:[#allocation12 + $0xd0] sm:$0xff] }
 0x2f4   : > { %v6625_v17 = vcombine.high %v1143_v9, %v1147_v10 }
 0x2f6   : > { %1995 = vmatpush1.bf16.msra.mxu1 %v6694_v13  ;;  %v1148_v13 = vld [vmem:[#allocation12 + $0xf8] sm:$0xff] }
 0x2f7   : > { %1996 = vmatprep.subr.bf16.mxu1 %v6703_v15  ;;  %v6616_v15 = vcombine.low %v1135_v59, %v1139_v62  ;;  %v6627_v18 = vcombine.high %v1144_v12, %v1148_v13  ;;  %v1192_v59 = vld [vmem:[#allocation12 + $0x258] sm:$0xff] }
 0x2fa   : > { %1997 = vmatpush1.bf16.msra.mxu1 %v6702_v16  ;;  %v6618_v16 = vcombine.low %v1136_v63, %v1140_v0 }
 0x2fb   : > { %1998 = vmatprep.subr.bf16.mxu1 %v6711_v24  ;;  %v6626_v24 = vcombine.low %v1144_v12, %v1148_v13 }
 0x2fe   : > { %1999 = vmatpush1.bf16.msra.mxu1 %v6710_v23  ;;  %v6624_v23 = vcombine.low %v1143_v9, %v1147_v10 }
 0x2ff   : > { %2000 = vmatprep.subr.bf16.mxu1 %v6719_v32  ;;  %v6634_v32 = vcombine.low %v1152_v21, %v1156_v22 }
 0x302   : > { %2001 = vmatpush1.bf16.msra.mxu1 %v6718_v31  ;;  %v6632_v31 = vcombine.low %v1151_v19, %v1155_v20 }
 0x303   : > { %2056 = vmatprep.subr.bf16.mxu1 %v6603_v40  ;;  %v6642_v40 = vcombine.low %v1160_v29, %v1164_v30 }
 0x398   : > { %v1102_v11 = vpop.f32.mrb[0].mxu1 }
 0x399   : > { %v1103_v14 = vadd.f32 %v1102_v11, %v901_v42  ;;  %v1104_v43 = vpop.f32.mrb[1].mxu1  ;;  %v1179_v11 = vld [vmem:[#allocation12 + $0x1f0] sm:$0xff] }
 0x39a   : > { %v1105_v44 = vadd.f32 %v1104_v43, %v905_v8  ;;  %v1106_v45 = vpop.f32.mrb[2].mxu1  ;;  %v1180_v43 = vld [vmem:[#allocation12 + $0x1f8] sm:$0xff] }
 0x39b   : > { %v1107_v46 = vadd.f32 %v1106_v45, %v901_v42  ;;  %v1108_v47 = vpop.f32.mrb[3].mxu1  ;;  %v1111_v49 = vmax.f32 %v1103_v14, 0.0  ;;  %v1176_v14 = vld [vmem:[#allocation12 + $0x1d8] sm:$0xff] }
 0x39c   : > { %v1109_v48 = vadd.f32 %v1108_v47, %v905_v8  ;;  %v1112_v51 = vmax.f32 %v1105_v44, 0.0  ;;  %v1175_v8 = vld [vmem:[#allocation12 + $0x1d0] sm:$0xff]  ;;  %v6648_v44 = vcombine.low %v1167_v35, %v1171_v36  ;;  %v6659_v47 = vcombine.high %v1176_v14, %v1180_v43 }
 0x39d   : > { %v1113_v50 = vmax.f32 %v1107_v46, 0.0  ;;  %v6657_v46 = vcombine.high %v1175_v8, %v1179_v11  ;;  %v6658_v53 = vcombine.low %v1176_v14, %v1180_v43 }
 0x39e   : > { %v1114_v52 = vmax.f32 %v1109_v48, 0.0  ;;  %v1183_v48 = vld [vmem:[#allocation12 + $0x210] sm:$0xff] }
 0x39f   : > { %v9539_v54 = vpack.c.bf16 %v1113_v50, %v1111_v49  ;;  %v1187_v49 = vld [vmem:[#allocation12 + $0x230] sm:$0xff]  ;;  %v1184_v50 = vld [vmem:[#allocation12 + $0x218] sm:$0xff] }
 0x3a0   : > { %v1116_v58 = vpack.c.bf16 %v1114_v52, %v1112_v51  ;;  %v1188_v51 = vld [vmem:[#allocation12 + $0x238] sm:$0xff]  ;;  %v6656_v52 = vcombine.low %v1175_v8, %v1179_v11  ;;  %v6665_v55 = vcombine.high %v1183_v48, %v1187_v49 }
 0x3a1   : > { %v6667_v56 = vcombine.high %v1184_v50, %v1188_v51  ;;  %v6666_v62 = vcombine.low %v1184_v50, %v1188_v51 }
 0x3a2   : > { %1959 = vmatprep.mubr.bf16.mxu0 %v1116_v58  ;;  %2002 = vmatprep.mubr.bf16.mxu1 %v1116_v58 }
 0x3a3   : > { %1960 = vmatmul.mubr.bf16.vlgmr.msra.gmra.mrb[4].mxu0 %v9539_v54  ;;  %2003 = vmatmul.mubr.bf16.vlgmr.msra.gmra.mrb[4].mxu1 %v9539_v54 }
 0x3a4   : > { %2014 = vmatpush1.bf16.msra.mxu0 %v6600_v38  ;;  %2057 = vmatpush1.bf16.msra.mxu1 %v6602_v39  ;;  %v1172_v38 = vld [vmem:[#allocation12 + $0x1b8] sm:$0xff]  ;;  %v6640_v39 = vcombine.low %v1159_v27, %v1163_v28 }
 0x3a5   : > { %2045 = vmatprep.mubr.bf16.mxu0 %v1116_v58  ;;  %2088 = vmatprep.mubr.bf16.mxu1 %v1116_v58  ;;  %v6651_v42 = vcombine.high %v1168_v37, %v1172_v38  ;;  %v6650_v45 = vcombine.low %v1168_v37, %v1172_v38  ;;  %v1195_v58 = vld [vmem:[#allocation12 + $0x270] sm:$0xff] }
 0x3a6   : > { %2015 = vmatprep.subr.bf16.mxu0 %v6609_v60  ;;  %2058 = vmatprep.subr.bf16.mxu1 %v6611_v61  ;;  %v1196_v60 = vld [vmem:[#allocation12 + $0x278] sm:$0xff]  ;;  %v6664_v61 = vcombine.low %v1183_v48, %v1187_v49  ;;  %v6673_v63 = vcombine.high %v1191_v57, %v1195_v58  ;;  %v6672_v9 = vcombine.low %v1191_v57, %v1195_v58  ;;  %v1261_v57 = vsub.s32 3, %v9524_v3 }
 0x3a7   : > { %v6675_v0 = vcombine.high %v1192_v59, %v1196_v60  ;;  %v6674_v10 = vcombine.low %v1192_v59, %v1196_v60 }
 0x3a8   : > { %2016 = vmatpush1.bf16.msra.mxu0 %v6608_v1  ;;  %2059 = vmatpush1.bf16.msra.mxu1 %v6610_v2  ;;  %v1199_v1 = vld [vmem:[#allocation12 + $0x290] sm:$0xff] }
 0x3a9   : > { %2017 = vmatprep.subr.bf16.mxu0 %v6617_v5  ;;  %2060 = vmatprep.subr.bf16.mxu1 %v6619_v7  ;;  %v1203_v2 = vld [vmem:[#allocation12 + $0x2b0] sm:$0xff]  ;;  %v1200_v5 = vld [vmem:[#allocation12 + $0x298] sm:$0xff] }
 0x3aa   : > { %v1204_v7 = vld [vmem:[#allocation12 + $0x2b8] sm:$0xff]  ;;  %v6681_v12 = vcombine.high %v1199_v1, %v1203_v2  ;;  %v6680_v19 = vcombine.low %v1199_v1, %v1203_v2 }
 0x3ab   : > { %v6683_v13 = vcombine.high %v1200_v5, %v1204_v7  ;;  %v6682_v20 = vcombine.low %v1200_v5, %v1204_v7 }
 0x3ac   : > { %2018 = vmatpush1.bf16.msra.mxu0 %v6616_v15  ;;  %2061 = vmatpush1.bf16.msra.mxu1 %v6618_v16  ;;  %v1207_v15 = vld [vmem:[#allocation12 + $0x2d0] sm:$0xff] }
 0x3ad   : > { %2019 = vmatprep.subr.bf16.mxu0 %v6625_v17  ;;  %2062 = vmatprep.subr.bf16.mxu1 %v6627_v18  ;;  %v1211_v16 = vld [vmem:[#allocation12 + $0x2f0] sm:$0xff]  ;;  %v1208_v17 = vld [vmem:[#allocation12 + $0x2d8] sm:$0xff] }
 0x3ae   : > { %v1212_v18 = vld [vmem:[#allocation12 + $0x2f8] sm:$0xff]  ;;  %v6689_v21 = vcombine.high %v1207_v15, %v1211_v16  ;;  %v6688_v27 = vcombine.low %v1207_v15, %v1211_v16 }
 0x3af   : > { %v6691_v22 = vcombine.high %v1208_v17, %v1212_v18  ;;  %v6690_v28 = vcombine.low %v1208_v17, %v1212_v18 }
 0x3b0   : > { %2020 = vmatpush1.bf16.msra.mxu0 %v6624_v23  ;;  %2063 = vmatpush1.bf16.msra.mxu1 %v6626_v24  ;;  %v1215_v23 = vld [vmem:[#allocation12 + $0x310] sm:$0xff] }
 0x3b1   : > { %2021 = vmatprep.subr.bf16.mxu0 %v6633_v25  ;;  %2064 = vmatprep.subr.bf16.mxu1 %v6635_v26  ;;  %v1219_v24 = vld [vmem:[#allocation12 + $0x330] sm:$0xff]  ;;  %v1216_v25 = vld [vmem:[#allocation12 + $0x318] sm:$0xff] }
 0x3b2   : > { %v1220_v26 = vld [vmem:[#allocation12 + $0x338] sm:$0xff]  ;;  %v6697_v29 = vcombine.high %v1215_v23, %v1219_v24  ;;  %v6696_v35 = vcombine.low %v1215_v23, %v1219_v24  ;;  %v1269_v23 = vsub.s32 5, %v9524_v3  ;;  %v1277_v24 = vsub.s32 7, %v9524_v3 }
 0x3b3   : > { %v6699_v30 = vcombine.high %v1216_v25, %v1220_v26  ;;  %v6698_v36 = vcombine.low %v1216_v25, %v1220_v26 }
 0x3b4   : > { %2022 = vmatpush1.bf16.msra.mxu0 %v6632_v31  ;;  %2065 = vmatpush1.bf16.msra.mxu1 %v6634_v32  ;;  %v1223_v31 = vld [vmem:[#allocation12 + $0x350] sm:$0xff] }
 0x3b5   : > { %2023 = vmatprep.subr.bf16.mxu0 %v6641_v33  ;;  %2066 = vmatprep.subr.bf16.mxu1 %v6643_v34  ;;  %v1227_v32 = vld [vmem:[#allocation12 + $0x370] sm:$0xff]  ;;  %v1224_v33 = vld [vmem:[#allocation12 + $0x358] sm:$0xff] }
 0x3b6   : > { %v1228_v34 = vld [vmem:[#allocation12 + $0x378] sm:$0xff]  ;;  %v6705_v37 = vcombine.high %v1223_v31, %v1227_v32  ;;  %v6704_v8 = vcombine.low %v1223_v31, %v1227_v32 }
 0x3b7   : > { %v6707_v38 = vcombine.high %v1224_v33, %v1228_v34  ;;  %v6706_v11 = vcombine.low %v1224_v33, %v1228_v34 }
 0x3b8   : > { %2024 = vmatpush1.bf16.msra.mxu0 %v6640_v39  ;;  %2067 = vmatpush1.bf16.msra.mxu1 %v6642_v40  ;;  %v1231_v39 = vld [vmem:[#allocation12 + $0x390] sm:$0xff] }
 0x3b9   : > { %2025 = vmatprep.subr.bf16.mxu0 %v6649_v41  ;;  %2068 = vmatprep.subr.bf16.mxu1 %v6651_v42  ;;  %v1235_v40 = vld [vmem:[#allocation12 + $0x3b0] sm:$0xff]  ;;  %v1232_v41 = vld [vmem:[#allocation12 + $0x398] sm:$0xff] }
 0x3ba   : > { %v1236_v42 = vld [vmem:[#allocation12 + $0x3b8] sm:$0xff]  ;;  %v6713_v14 = vcombine.high %v1231_v39, %v1235_v40  ;;  %v6712_v48 = vcombine.low %v1231_v39, %v1235_v40 }
 0x3bb   : > { %v6715_v43 = vcombine.high %v1232_v41, %v1236_v42  ;;  %v6714_v49 = vcombine.low %v1232_v41, %v1236_v42 }
 0x3bc   : > { %2026 = vmatpush1.bf16.msra.mxu0 %v6648_v44  ;;  %2069 = vmatpush1.bf16.msra.mxu1 %v6650_v45  ;;  %v1239_v44 = vld [vmem:[#allocation12 + $0x3d0] sm:$0xff] }
 0x3bd   : > { %2027 = vmatprep.subr.bf16.mxu0 %v6657_v46  ;;  %2070 = vmatprep.subr.bf16.mxu1 %v6659_v47  ;;  %v1243_v45 = vld [vmem:[#allocation12 + $0x3f0] sm:$0xff]  ;;  %v1240_v46 = vld [vmem:[#allocation12 + $0x3d8] sm:$0xff] }
 0x3be   : > { %v1244_v47 = vld [vmem:[#allocation12 + $0x3f8] sm:$0xff]  ;;  %v6721_v50 = vcombine.high %v1239_v44, %v1243_v45 }
 0x3bf   : > { %v6723_v51 = vcombine.high %v1240_v46, %v1244_v47 }
 0x3c0   : > { %2028 = vmatpush1.bf16.msra.mxu0 %v6656_v52  ;;  %2071 = vmatpush1.bf16.msra.mxu1 %v6658_v53  ;;  %v6720_v52 = vcombine.low %v1239_v44, %v1243_v45  ;;  %v6722_v53 = vcombine.low %v1240_v46, %v1244_v47 }
 0x3c1   : > { %2029 = vmatprep.subr.bf16.mxu0 %v6665_v55  ;;  %2072 = vmatprep.subr.bf16.mxu1 %v6667_v56  ;;  %v1257_v55 = vsub.s32 2, %v9524_v3  ;;  %v1245_v56 = vld [vmem:[#allocation14] sm:$0xff] }
 0x3c2   : > { %v1250_v58 = vrot.slane %v1245_v56, %v9527_v4  ;;  %v1254_v60 = vrot.slane %v1245_v56, %v9530_v6 }
 0x3c3   : > { %v1258_v59 = vrot.slane %v1245_v56, %v1257_v55 }
 0x3c4   : > { %2030 = vmatpush1.bf16.msra.mxu0 %v6664_v61  ;;  %2073 = vmatpush1.bf16.msra.mxu1 %v6666_v62  ;;  %v1262_v61 = vrot.slane %v1245_v56, %v1261_v57 }
 0x3c5   : > { %2031 = vmatprep.subr.bf16.mxu0 %v6673_v63  ;;  %2074 = vmatprep.subr.bf16.mxu1 %v6675_v0 }
 0x3c8   : > { %2032 = vmatpush1.bf16.msra.mxu0 %v6672_v9  ;;  %2075 = vmatpush1.bf16.msra.mxu1 %v6674_v10 }
 0x3c9   : > { %2033 = vmatprep.subr.bf16.mxu0 %v6681_v12  ;;  %2076 = vmatprep.subr.bf16.mxu1 %v6683_v13 }
 0x3cc   : > { %2034 = vmatpush1.bf16.msra.mxu0 %v6680_v19  ;;  %2077 = vmatpush1.bf16.msra.mxu1 %v6682_v20 }
 0x3cd   : > { %2035 = vmatprep.subr.bf16.mxu0 %v6689_v21  ;;  %2078 = vmatprep.subr.bf16.mxu1 %v6691_v22  ;;  %v1265_v21 = vsub.s32 4, %v9524_v3  ;;  %v1273_v22 = vsub.s32 6, %v9524_v3 }
 0x3cf   : > { %v1266_v25 = vrot.slane %v1245_v56, %v1265_v21  ;;  %v1274_v26 = vrot.slane %v1245_v56, %v1273_v22 }
 0x3d0   : > { %2036 = vmatpush1.bf16.msra.mxu0 %v6688_v27  ;;  %2079 = vmatpush1.bf16.msra.mxu1 %v6690_v28  ;;  %v1270_v27 = vrot.slane %v1245_v56, %v1269_v23  ;;  %v1278_v28 = vrot.slane %v1245_v56, %v1277_v24 }
 0x3d1   : > { %2037 = vmatprep.subr.bf16.mxu0 %v6697_v29  ;;  %2080 = vmatprep.subr.bf16.mxu1 %v6699_v30 }
 0x3d4   : > { %2038 = vmatpush1.bf16.msra.mxu0 %v6696_v35  ;;  %2081 = vmatpush1.bf16.msra.mxu1 %v6698_v36 }
 0x3d5   : > { %2039 = vmatprep.subr.bf16.mxu0 %v6705_v37  ;;  %2082 = vmatprep.subr.bf16.mxu1 %v6707_v38 }
 0x3d8   : > { %2040 = vmatpush1.bf16.msra.mxu0 %v6704_v8  ;;  %2083 = vmatpush1.bf16.msra.mxu1 %v6706_v11 }
 0x3d9   : > { %2041 = vmatprep.subr.bf16.mxu0 %v6713_v14  ;;  %2084 = vmatprep.subr.bf16.mxu1 %v6715_v43 }
 0x3dc   : > { %2042 = vmatpush1.bf16.msra.mxu0 %v6712_v48  ;;  %2085 = vmatpush1.bf16.msra.mxu1 %v6714_v49 }
 0x3dd   : > { %2043 = vmatprep.subr.bf16.mxu0 %v6721_v50  ;;  %2086 = vmatprep.subr.bf16.mxu1 %v6723_v51 }
 0x3e0   : > { %2044 = vmatpush1.bf16.msra.mxu0 %v6720_v52  ;;  %2087 = vmatpush1.bf16.msra.mxu1 %v6722_v53 }
 0x3e3   : > { %2046 = vmatmul.mubr.bf16.vlgmr.msra.gmra.mrb[8].mxu0 %v9539_v54  ;;  %2089 = vmatmul.mubr.bf16.vlgmr.msra.gmra.mrb[8].mxu1 %v9539_v54 }
 0x476   : > { %v1961_v62 = vpop.f32.mrb[4].mxu0  ;;  %v2004_v63 = vpop.f32.mrb[4].mxu1 }
 0x477   : > { %v1962_v0 = vadd.f32 %v1961_v62, %v1250_v58  ;;  %v2005_v1 = vadd.f32 %v2004_v63, %v1258_v59  ;;  %v1963_v2 = vpop.f32.mrb[5].mxu0  ;;  %v2006_v5 = vpop.f32.mrb[5].mxu1 }
 0x478   : > { %v1964_v7 = vadd.f32 %v1963_v2, %v1254_v60  ;;  %v2007_v9 = vadd.f32 %v2006_v5, %v1262_v61  ;;  %v1965_v54 = vpop.f32.mrb[6].mxu0  ;;  %v2008_v10 = vpop.f32.mrb[6].mxu1 }
 0x479   : > { %v1966_v12 = vadd.f32 %v1965_v54, %v1250_v58  ;;  %v2009_v13 = vadd.f32 %v2008_v10, %v1258_v59  ;;  %v1967_v15 = vpop.f32.mrb[7].mxu0  ;;  %v2010_v16 = vpop.f32.mrb[7].mxu1 }
 0x47a   : > { %v7271_v17 = vpack.c.bf16 %v1964_v7, %v1962_v0  ;;  %v7272_v4 = vpack.c.bf16 %v2007_v9, %v2005_v1  ;;  %v1968_v18 = vadd.f32 %v1967_v15, %v1254_v60  ;;  %v2011_v19 = vadd.f32 %v2010_v16, %v1262_v61 }
 0x47c   : > { %2131 = vst [vmem:[#allocation2] sm:$0xff] %v7271_v17  ;;  %2132 = vst [vmem:[#allocation2 + $0x8] sm:$0xff] %v7272_v4  ;;  %v7275_v6 = vpack.c.bf16 %v1968_v18, %v1966_v12  ;;  %v7276_v20 = vpack.c.bf16 %v2011_v19, %v2009_v13 }
 0x47e   : > { %2167 = vst [vmem:[#allocation2 + $0x20] sm:$0xff] %v7275_v6  ;;  %2168 = vst [vmem:[#allocation2 + $0x28] sm:$0xff] %v7276_v20 }
 0x4b6   : > { %v2047_v29 = vpop.f32.mrb[8].mxu0  ;;  %v2090_v30 = vpop.f32.mrb[8].mxu1 }
 0x4b7   : > { %v2048_v31 = vadd.f32 %v2047_v29, %v1266_v25  ;;  %v2091_v32 = vadd.f32 %v2090_v30, %v1274_v26  ;;  %v2049_v33 = vpop.f32.mrb[9].mxu0  ;;  %v2092_v34 = vpop.f32.mrb[9].mxu1 }
 0x4b8   : > { %v2050_v35 = vadd.f32 %v2049_v33, %v1270_v27  ;;  %v2093_v36 = vadd.f32 %v2092_v34, %v1278_v28  ;;  %v2051_v37 = vpop.f32.mrb[10].mxu0  ;;  %v2094_v38 = vpop.f32.mrb[10].mxu1 }
 0x4b9   : > { %v2052_v39 = vadd.f32 %v2051_v37, %v1266_v25  ;;  %v2095_v40 = vadd.f32 %v2094_v38, %v1274_v26  ;;  %v2053_v41 = vpop.f32.mrb[11].mxu0  ;;  %v2096_v42 = vpop.f32.mrb[11].mxu1 }
 0x4ba   : > { %v7273_v8 = vpack.c.bf16 %v2050_v35, %v2048_v31  ;;  %v7274_v3 = vpack.c.bf16 %v2093_v36, %v2091_v32  ;;  %v2054_v11 = vadd.f32 %v2053_v41, %v1270_v27  ;;  %v2097_v14 = vadd.f32 %v2096_v42, %v1278_v28 }
 0x4bc   : > { %2133 = vst [vmem:[#allocation2 + $0x10] sm:$0xff] %v7273_v8  ;;  %2134 = vst [vmem:[#allocation2 + $0x18] sm:$0xff] %v7274_v3  ;;  %v7277_v43 = vpack.c.bf16 %v2054_v11, %v2052_v39  ;;  %v7278_v44 = vpack.c.bf16 %v2097_v14, %v2095_v40 }
 0x4be   : > { %2169 = vst [vmem:[#allocation2 + $0x30] sm:$0xff] %v7277_v43  ;;  %2170 = vst [vmem:[#allocation2 + $0x38] sm:$0xff] %v7278_v44 }
 0x4bf PF: > { %v7661_v45 = vld [vmem:[%s9493_s1 + $0x4] ss:$16 sps:$4 sm:$0xff]   ;;  %v7663_v46 = vld [vmem:[%s9493_s1 + $0xc] ss:$16 sps:$4 sm:$0xff]   ;;  %v7665_v47 = vld [vmem:[%s9493_s1] ss:$16 sps:$4 sm:$0xff]  }
 0x4c0   : > { %5329 = vmatprep.subr.bf16.mxu0 %v7661_v45  ;;  %v7666_v48 = vld [vmem:[%s9493_s1 + $0x8] ss:$16 sps:$4 sm:$0xff]   ;;  %5657 = vmatprep.subr.bf16.mxu1 %v7663_v46  ;;  %v7667_v49 = vld [vmem:[%s9493_s1 + $0x24] ss:$16 sps:$4 sm:$0xff]   ;;  %v7669_v50 = vld [vmem:[%s9493_s1 + $0x2c] ss:$16 sps:$4 sm:$0xff]  }
 0x4c1   : > { %5330 = vmatpush1.bf16.msra.mxu0 %v7665_v47  ;;  %5658 = vmatpush1.bf16.msra.mxu1 %v7666_v48  ;;  %v7671_v51 = vld [vmem:[%s9493_s1 + $0x20] ss:$16 sps:$4 sm:$0xff]   ;;  %v7672_v52 = vld [vmem:[%s9493_s1 + $0x28] ss:$16 sps:$4 sm:$0xff]   ;;  %v7673_v53 = vld [vmem:[%s9493_s1 + $0x44] ss:$16 sps:$4 sm:$0xff]  }
 0x4c2   : > { %5331 = vmatprep.subr.bf16.mxu0 %v7667_v49  ;;  %5659 = vmatprep.subr.bf16.mxu1 %v7669_v50  ;;  %v7675_v55 = vld [vmem:[%s9493_s1 + $0x4c] ss:$16 sps:$4 sm:$0xff]   ;;  %v7677_v56 = vld [vmem:[%s9493_s1 + $0x40] ss:$16 sps:$4 sm:$0xff]   ;;  %v7678_v57 = vld [vmem:[%s9493_s1 + $0x48] ss:$16 sps:$4 sm:$0xff]  }
 0x4c3   : > { %v7679_v58 = vld [vmem:[%s9493_s1 + $0x64] ss:$16 sps:$4 sm:$0xff]   ;;  %v7681_v59 = vld [vmem:[%s9493_s1 + $0x6c] ss:$16 sps:$4 sm:$0xff]   ;;  %v7683_v60 = vld [vmem:[%s9493_s1 + $0x60] ss:$16 sps:$4 sm:$0xff]  }
 0x4c4   : > { %v7684_v61 = vld [vmem:[%s9493_s1 + $0x68] ss:$16 sps:$4 sm:$0xff]   ;;  %v7685_v62 = vld [vmem:[%s9493_s1 + $0x84] ss:$16 sps:$4 sm:$0xff]   ;;  %v7687_v63 = vld [vmem:[%s9493_s1 + $0x8c] ss:$16 sps:$4 sm:$0xff]  }
 0x4c5   : > { %5332 = vmatpush1.bf16.msra.mxu0 %v7671_v51  ;;  %5660 = vmatpush1.bf16.msra.mxu1 %v7672_v52  ;;  %v7689_v0 = vld [vmem:[%s9493_s1 + $0x80] ss:$16 sps:$4 sm:$0xff]   ;;  %v7690_v1 = vld [vmem:[%s9493_s1 + $0x88] ss:$16 sps:$4 sm:$0xff]   ;;  %v7691_v2 = vld [vmem:[%s9493_s1 + $0xa4] ss:$16 sps:$4 sm:$0xff]  }
 0x4c6   : > { %5333 = vmatprep.subr.bf16.mxu0 %v7673_v53  ;;  %5661 = vmatprep.subr.bf16.mxu1 %v7675_v55  ;;  %v7693_v5 = vld [vmem:[%s9493_s1 + $0xac] ss:$16 sps:$4 sm:$0xff]   ;;  %v7695_v7 = vld [vmem:[%s9493_s1 + $0xa0] ss:$16 sps:$4 sm:$0xff]   ;;  %v7696_v9 = vld [vmem:[%s9493_s1 + $0xa8] ss:$16 sps:$4 sm:$0xff]  }
 0x4c7   : > { %v7697_v54 = vld [vmem:[%s9493_s1 + $0xc4] ss:$16 sps:$4 sm:$0xff]   ;;  %v7699_v10 = vld [vmem:[%s9493_s1 + $0xcc] ss:$16 sps:$4 sm:$0xff]   ;;  %v7701_v12 = vld [vmem:[%s9493_s1 + $0xc0] ss:$16 sps:$4 sm:$0xff]  }
 0x4c8   : > { %v7702_v13 = vld [vmem:[%s9493_s1 + $0xc8] ss:$16 sps:$4 sm:$0xff]   ;;  %v7703_v15 = vld [vmem:[%s9493_s1 + $0xe4] ss:$16 sps:$4 sm:$0xff]   ;;  %v7705_v16 = vld [vmem:[%s9493_s1 + $0xec] ss:$16 sps:$4 sm:$0xff]  }
 0x4c9   : > { %5334 = vmatpush1.bf16.msra.mxu0 %v7677_v56  ;;  %5662 = vmatpush1.bf16.msra.mxu1 %v7678_v57  ;;  %v7707_v17 = vld [vmem:[%s9493_s1 + $0xe0] ss:$16 sps:$4 sm:$0xff]   ;;  %v7708_v4 = vld [vmem:[%s9493_s1 + $0xe8] ss:$16 sps:$4 sm:$0xff]   ;;  %v7709_v18 = vld [vmem:[%s9493_s1 + $0x104] ss:$16 sps:$4 sm:$0xff]  }
 0x4ca   : > { %5335 = vmatprep.subr.bf16.mxu0 %v7679_v58  ;;  %5663 = vmatprep.subr.bf16.mxu1 %v7681_v59  ;;  %v7711_v19 = vld [vmem:[%s9493_s1 + $0x10c] ss:$16 sps:$4 sm:$0xff]   ;;  %v7713_v6 = vld [vmem:[%s9493_s1 + $0x100] ss:$16 sps:$4 sm:$0xff]   ;;  %v7714_v20 = vld [vmem:[%s9493_s1 + $0x108] ss:$16 sps:$4 sm:$0xff]  }
 0x4cb   : > { %v7715_v21 = vld [vmem:[%s9493_s1 + $0x124] ss:$16 sps:$4 sm:$0xff]   ;;  %v7717_v22 = vld [vmem:[%s9493_s1 + $0x12c] ss:$16 sps:$4 sm:$0xff]   ;;  %v7719_v23 = vld [vmem:[%s9493_s1 + $0x120] ss:$16 sps:$4 sm:$0xff]  }
 0x4cc   : > { %v7720_v24 = vld [vmem:[%s9493_s1 + $0x128] ss:$16 sps:$4 sm:$0xff]   ;;  %v7721_v25 = vld [vmem:[%s9493_s1 + $0x144] ss:$16 sps:$4 sm:$0xff]   ;;  %v7723_v26 = vld [vmem:[%s9493_s1 + $0x14c] ss:$16 sps:$4 sm:$0xff]  }
 0x4cd   : > { %5336 = vmatpush1.bf16.msra.mxu0 %v7683_v60  ;;  %5664 = vmatpush1.bf16.msra.mxu1 %v7684_v61  ;;  %v7725_v27 = vld [vmem:[%s9493_s1 + $0x140] ss:$16 sps:$4 sm:$0xff]   ;;  %v7726_v28 = vld [vmem:[%s9493_s1 + $0x148] ss:$16 sps:$4 sm:$0xff]   ;;  %v7727_v29 = vld [vmem:[%s9493_s1 + $0x164] ss:$16 sps:$4 sm:$0xff]  }
 0x4ce   : > { %5337 = vmatprep.subr.bf16.mxu0 %v7685_v62  ;;  %5665 = vmatprep.subr.bf16.mxu1 %v7687_v63  ;;  %v7729_v30 = vld [vmem:[%s9493_s1 + $0x16c] ss:$16 sps:$4 sm:$0xff]   ;;  %v2171_v31 = vld [vmem:[#allocation2] sm:$0xff]  ;;  %v7731_v32 = vld [vmem:[%s9493_s1 + $0x160] ss:$16 sps:$4 sm:$0xff]   ;;  %vm6053_vm0 = vcmask 1043456  }
 0x4cf   : > { %v6733_v33 = vcombine.high %v2171_v31, %v2171_v31  ;;  %v7732_v34 = vld [vmem:[%s9493_s1 + $0x168] ss:$16 sps:$4 sm:$0xff]   ;;  %v7733_v35 = vld [vmem:[%s9493_s1 + $0x184] ss:$16 sps:$4 sm:$0xff]   ;;  %v7735_v36 = vld [vmem:[%s9493_s1 + $0x18c] ss:$16 sps:$4 sm:$0xff]   ;;  %v6732_v49 = vcombine.low %v2171_v31, %v2171_v31 }
 0x4d0   : > { %v7737_v37 = vld [vmem:[%s9493_s1 + $0x180] ss:$16 sps:$4 sm:$0xff]   ;;  %v7738_v38 = vld [vmem:[%s9493_s1 + $0x188] ss:$16 sps:$4 sm:$0xff]   ;;  %v7739_v39 = vld [vmem:[%s9493_s1 + $0x1a4] ss:$16 sps:$4 sm:$0xff]  }
 0x4d1   : > { %5338 = vmatpush1.bf16.msra.mxu0 %v7689_v0  ;;  %5666 = vmatpush1.bf16.msra.mxu1 %v7690_v1  ;;  %v7741_v40 = vld [vmem:[%s9493_s1 + $0x1ac] ss:$16 sps:$4 sm:$0xff]   ;;  %v7743_v41 = vld [vmem:[%s9493_s1 + $0x1a0] ss:$16 sps:$4 sm:$0xff]   ;;  %v7744_v42 = vld [vmem:[%s9493_s1 + $0x1a8] ss:$16 sps:$4 sm:$0xff]  }
 0x4d2   : > { %5339 = vmatprep.subr.bf16.mxu0 %v7691_v2  ;;  %5667 = vmatprep.subr.bf16.mxu1 %v7693_v5  ;;  %v7745_v8 = vld [vmem:[%s9493_s1 + $0x1c4] ss:$16 sps:$4 sm:$0xff]   ;;  %v7747_v3 = vld [vmem:[%s9493_s1 + $0x1cc] ss:$16 sps:$4 sm:$0xff]   ;;  %v7749_v11 = vld [vmem:[%s9493_s1 + $0x1c0] ss:$16 sps:$4 sm:$0xff]  }
 0x4d3   : > { %5361 = vmatprep.mubr.bf16.mxu0 %v6733_v33  ;;  %5689 = vmatprep.mubr.bf16.mxu1 %v6733_v33  ;;  %v7750_v14 = vld [vmem:[%s9493_s1 + $0x1c8] ss:$16 sps:$4 sm:$0xff]   ;;  %v7751_v43 = vld [vmem:[%s9493_s1 + $0x1e4] ss:$16 sps:$4 sm:$0xff]   ;;  %v7753_v44 = vld [vmem:[%s9493_s1 + $0x1ec] ss:$16 sps:$4 sm:$0xff]  }
 0x4d4   : > { %v7755_v45 = vld [vmem:[%s9493_s1 + $0x1e0] ss:$16 sps:$4 sm:$0xff]   ;;  %v7756_v46 = vld [vmem:[%s9493_s1 + $0x1e8] ss:$16 sps:$4 sm:$0xff]   ;;  %v7761_v47 = vld [vmem:[%s9493_s1 + $0x204] ss:$16 sps:$4 sm:$0xff]  }
 0x4d5   : > { %5340 = vmatpush1.bf16.msra.mxu0 %v7695_v7  ;;  %5668 = vmatpush1.bf16.msra.mxu1 %v7696_v9  ;;  %v7764_v48 = vld [vmem:[%s9493_s1 + $0x20c] ss:$16 sps:$4 sm:$0xff]   ;;  %v7759_v50 = vld [vmem:[%s9493_s1 + $0x200] ss:$16 sps:$4 sm:$0xff]   ;;  %v7762_v51 = vld [vmem:[%s9493_s1 + $0x208] ss:$16 sps:$4 sm:$0xff]  }
 0x4d6   : > { %5341 = vmatprep.subr.bf16.mxu0 %v7697_v54  ;;  %5669 = vmatprep.subr.bf16.mxu1 %v7699_v10  ;;  %v7767_v52 = vld [vmem:[%s9493_s1 + $0x224] ss:$16 sps:$4 sm:$0xff]   ;;  %v7770_v53 = vld [vmem:[%s9493_s1 + $0x22c] ss:$16 sps:$4 sm:$0xff]   ;;  %v7765_v55 = vld [vmem:[%s9493_s1 + $0x220] ss:$16 sps:$4 sm:$0xff]  }
 0x4d7   : > { %v7768_v56 = vld [vmem:[%s9493_s1 + $0x228] ss:$16 sps:$4 sm:$0xff]   ;;  %v7773_v57 = vld [vmem:[%s9493_s1 + $0x244] ss:$16 sps:$4 sm:$0xff]   ;;  %v7776_v58 = vld [vmem:[%s9493_s1 + $0x24c] ss:$16 sps:$4 sm:$0xff]  }
 0x4d8   : > { %v7771_v59 = vld [vmem:[%s9493_s1 + $0x240] ss:$16 sps:$4 sm:$0xff]   ;;  %v7774_v60 = vld [vmem:[%s9493_s1 + $0x248] ss:$16 sps:$4 sm:$0xff]   ;;  %v7779_v61 = vld [vmem:[%s9493_s1 + $0x264] ss:$16 sps:$4 sm:$0xff]  }
 0x4d9   : > { %5342 = vmatpush1.bf16.msra.mxu0 %v7701_v12  ;;  %5670 = vmatpush1.bf16.msra.mxu1 %v7702_v13  ;;  %v7782_v62 = vld [vmem:[%s9493_s1 + $0x26c] ss:$16 sps:$4 sm:$0xff]   ;;  %v7777_v63 = vld [vmem:[%s9493_s1 + $0x260] ss:$16 sps:$4 sm:$0xff]   ;;  %v7780_v0 = vld [vmem:[%s9493_s1 + $0x268] ss:$16 sps:$4 sm:$0xff]  }
 0x4da   : > { %5343 = vmatprep.subr.bf16.mxu0 %v7703_v15  ;;  %5671 = vmatprep.subr.bf16.mxu1 %v7705_v16  ;;  %v7785_v1 = vld [vmem:[%s9493_s1 + $0x284] ss:$16 sps:$4 sm:$0xff]   ;;  %v7788_v2 = vld [vmem:[%s9493_s1 + $0x28c] ss:$16 sps:$4 sm:$0xff]   ;;  %v7783_v5 = vld [vmem:[%s9493_s1 + $0x280] ss:$16 sps:$4 sm:$0xff]  }
 0x4db   : > { %v7786_v7 = vld [vmem:[%s9493_s1 + $0x288] ss:$16 sps:$4 sm:$0xff]   ;;  %v7791_v9 = vld [vmem:[%s9493_s1 + $0x2a4] ss:$16 sps:$4 sm:$0xff]   ;;  %v7794_v54 = vld [vmem:[%s9493_s1 + $0x2ac] ss:$16 sps:$4 sm:$0xff]  }
 0x4dc   : > { %v7789_v10 = vld [vmem:[%s9493_s1 + $0x2a0] ss:$16 sps:$4 sm:$0xff]   ;;  %v7792_v12 = vld [vmem:[%s9493_s1 + $0x2a8] ss:$16 sps:$4 sm:$0xff]   ;;  %v7797_v13 = vld [vmem:[%s9493_s1 + $0x2c4] ss:$16 sps:$4 sm:$0xff]  }
 0x4dd   : > { %5344 = vmatpush1.bf16.msra.mxu0 %v7707_v17  ;;  %5672 = vmatpush1.bf16.msra.mxu1 %v7708_v4  ;;  %v7800_v15 = vld [vmem:[%s9493_s1 + $0x2cc] ss:$16 sps:$4 sm:$0xff]   ;;  %v7795_v4 = vld [vmem:[%s9493_s1 + $0x2c0] ss:$16 sps:$4 sm:$0xff]   ;;  %v7822_v33 = vld [vmem:[%s9493_s1 + $0x348] ss:$16 sps:$4 sm:$0xff]  }
 0x4de   : > { %5345 = vmatprep.subr.bf16.mxu0 %v7709_v18  ;;  %5673 = vmatprep.subr.bf16.mxu1 %v7711_v19  ;;  %v9643_v16 = vld [vmem:[#allocation2 + $0x8] sm:$0xff]  ;;  %v7798_v18 = vld [vmem:[%s9493_s1 + $0x2c8] ss:$16 sps:$4 sm:$0xff]   ;;  %v7803_v19 = vld [vmem:[%s9493_s1 + $0x2e4] ss:$16 sps:$4 sm:$0xff]   ;;  %s10431_s12 = sld [smem:[#allocation35_spill]] }
 0x4df   : > { %v6735_v17 = vcombine.high %v9643_v16, %v9643_v16  ;;  %v7824_v31 = vld [vmem:[%s9493_s1 + $0x34c] ss:$16 sps:$4 sm:$0xff]   ;;  %s10432_s29 = sld [smem:[#allocation36_spill]]  ;;  %s6294_s17 = sshll.u32 %s9509_s25, 4  ;;  %s10240_s17 = int_to_ptr.vmem [resolvable:$true] %s6294_s17 }
 0x4e0   : > { %s8775_s14 = scalar_lea.vmem %s10240_s17, 512  ;;  %p10435_p7 = scmp.ne.s32.totalorder %s10405_s2, 0 }
 0x4e1   : > { %5346 = vmatpush1.bf16.msra.mxu0 %v7713_v6  ;;  %5674 = vmatpush1.bf16.msra.mxu1 %v7714_v20  ;;  %v7806_v6 = vld [vmem:[%s9493_s1 + $0x2ec] ss:$16 sps:$4 sm:$0xff]   ;;  %v7801_v20 = vld [vmem:[%s9493_s1 + $0x2e0] ss:$16 sps:$4 sm:$0xff]   ;;  %p8776_p2 = scmp.ne.s32.totalorder %s10240_s17, %s8775_s14  ;;  %s8963_s24 = smov [#allocation21]  }
 0x4e2   : > { %5347 = vmatprep.subr.bf16.mxu0 %v7715_v21  ;;  %5675 = vmatprep.subr.bf16.mxu1 %v7717_v22  ;;  %v7804_v21 = vld [vmem:[%s9493_s1 + $0x2e8] ss:$16 sps:$4 sm:$0xff]   ;;  %v7809_v22 = vld [vmem:[%s9493_s1 + $0x304] ss:$16 sps:$4 sm:$0xff]   ;;  %s8779_s27 = sshll.u32 %s8963_s24, 4  ;;  %s8780_s27 = int_to_ptr.vmem [resolvable:$false] %s8779_s27 }
 0x4e3   : > { %p8777_p13 = pnand %p8776_p2, %p10435_p7  ;;  %p8782_p8 = scmp.lt.s32.totalorder %s10240_s17, %s8780_s27 }
 0x4e4   : > { %s7263_s9 = sshll.u32 %s10431_s12, 2  ;;  %s8781_s12 = scalar_lea.vmem %s8780_s27, 1024 }
 0x4e5   : > { %5348 = vmatpush1.bf16.msra.mxu0 %v7719_v23  ;;  %5676 = vmatpush1.bf16.msra.mxu1 %v7720_v24  ;;  %v7812_v23 = vld [vmem:[%s9493_s1 + $0x30c] ss:$16 sps:$4 sm:$0xff]   ;;  %v7807_v24 = vld [vmem:[%s9493_s1 + $0x300] ss:$16 sps:$4 sm:$0xff]   ;;  %s7264_s11 = sshll.u32 %s10432_s29, 3  ;;  %p8778_p12 = pneg %p8777_p13 }
 0x4e6   : > { %5349 = vmatprep.subr.bf16.mxu0 %v7721_v25  ;;  %5677 = vmatprep.subr.bf16.mxu1 %v7723_v26  ;;  %v7810_v25 = vld [vmem:[%s9493_s1 + $0x308] ss:$16 sps:$4 sm:$0xff]   ;;  %v7815_v26 = vld [vmem:[%s9493_s1 + $0x324] ss:$16 sps:$4 sm:$0xff]   ;;  %s6290_s18 = sadd.s32 %s7264_s11, %s7263_s9  ;;  %p8783_p1 = scmp.lt.s32.totalorder %s8781_s12, %s8775_s14 }
 0x4e7   : > { %s7265_s10 = sshll.u32 %s6290_s18, 7 }
 0x4e8   : > { %p8784_p10 = por %p8783_p1, %p8782_p8 }
 0x4e9   : > { %5350 = vmatpush1.bf16.msra.mxu0 %v7725_v27  ;;  %5678 = vmatpush1.bf16.msra.mxu1 %v7726_v28  ;;  %v7818_v27 = vld [vmem:[%s9493_s1 + $0x32c] ss:$16 sps:$4 sm:$0xff]   ;;  %v7813_v28 = vld [vmem:[%s9493_s1 + $0x320] ss:$16 sps:$4 sm:$0xff]  }
 0x4ea   : > { %5351 = vmatprep.subr.bf16.mxu0 %v7727_v29  ;;  %5679 = vmatprep.subr.bf16.mxu1 %v7729_v30  ;;  %v7816_v29 = vld [vmem:[%s9493_s1 + $0x328] ss:$16 sps:$4 sm:$0xff]   ;;  %v7821_v30 = vld [vmem:[%s9493_s1 + $0x344] ss:$16 sps:$4 sm:$0xff]   ;;  %p8785_p6 = pnand %p8784_p10, %p8778_p12 }
 0x4ed   : > { %5352 = vmatpush1.bf16.msra.mxu0 %v7731_v32  ;;  %5680 = vmatpush1.bf16.msra.mxu1 %v7732_v34  ;;  %v7819_v32 = vld [vmem:[%s9493_s1 + $0x340] ss:$16 sps:$4 sm:$0xff]   ;;  %v7827_v34 = vld [vmem:[%s9493_s1 + $0x364] ss:$16 sps:$4 sm:$0xff]  }
 0x4ee   : > { %5353 = vmatprep.subr.bf16.mxu0 %v7733_v35  ;;  %5681 = vmatprep.subr.bf16.mxu1 %v7735_v36  ;;  %v7830_v35 = vld [vmem:[%s9493_s1 + $0x36c] ss:$16 sps:$4 sm:$0xff]   ;;  %v7825_v36 = vld [vmem:[%s9493_s1 + $0x360] ss:$16 sps:$4 sm:$0xff]  }
 0x4f1   : > { %5354 = vmatpush1.bf16.msra.mxu0 %v7737_v37  ;;  %5682 = vmatpush1.bf16.msra.mxu1 %v7738_v38  ;;  %v7828_v37 = vld [vmem:[%s9493_s1 + $0x368] ss:$16 sps:$4 sm:$0xff]   ;;  %v7833_v38 = vld [vmem:[%s9493_s1 + $0x384] ss:$16 sps:$4 sm:$0xff]  }
 0x4f2   : > { %5355 = vmatprep.subr.bf16.mxu0 %v7739_v39  ;;  %5683 = vmatprep.subr.bf16.mxu1 %v7741_v40  ;;  %v7836_v39 = vld [vmem:[%s9493_s1 + $0x38c] ss:$16 sps:$4 sm:$0xff]   ;;  %v7831_v40 = vld [vmem:[%s9493_s1 + $0x380] ss:$16 sps:$4 sm:$0xff]  }
 0x4f5   : > { %5356 = vmatpush1.bf16.msra.mxu0 %v7743_v41  ;;  %5684 = vmatpush1.bf16.msra.mxu1 %v7744_v42  ;;  %v7834_v41 = vld [vmem:[%s9493_s1 + $0x388] ss:$16 sps:$4 sm:$0xff]   ;;  %v7839_v42 = vld [vmem:[%s9493_s1 + $0x3a4] ss:$16 sps:$4 sm:$0xff]  }
 0x4f6   : > { %5357 = vmatprep.subr.bf16.mxu0 %v7745_v8  ;;  %5685 = vmatprep.subr.bf16.mxu1 %v7747_v3  ;;  %v7842_v8 = vld [vmem:[%s9493_s1 + $0x3ac] ss:$16 sps:$4 sm:$0xff]   ;;  %v7837_v3 = vld [vmem:[%s9493_s1 + $0x3a0] ss:$16 sps:$4 sm:$0xff]  }
 0x4f9   : > { %5358 = vmatpush1.bf16.msra.mxu0 %v7749_v11  ;;  %5686 = vmatpush1.bf16.msra.mxu1 %v7750_v14  ;;  %v7840_v11 = vld [vmem:[%s9493_s1 + $0x3a8] ss:$16 sps:$4 sm:$0xff]   ;;  %v7845_v14 = vld [vmem:[%s9493_s1 + $0x3c4] ss:$16 sps:$4 sm:$0xff]  }
 0x4fa   : > { %5359 = vmatprep.subr.bf16.mxu0 %v7751_v43  ;;  %5687 = vmatprep.subr.bf16.mxu1 %v7753_v44  ;;  %v7848_v43 = vld [vmem:[%s9493_s1 + $0x3cc] ss:$16 sps:$4 sm:$0xff]   ;;  %v7843_v44 = vld [vmem:[%s9493_s1 + $0x3c0] ss:$16 sps:$4 sm:$0xff]  }
 0x4fd   : > { %5360 = vmatpush1.bf16.msra.mxu0 %v7755_v45  ;;  %5688 = vmatpush1.bf16.msra.mxu1 %v7756_v46  ;;  %v7846_v45 = vld [vmem:[%s9493_s1 + $0x3c8] ss:$16 sps:$4 sm:$0xff]   ;;  %v7851_v46 = vld [vmem:[%s9493_s1 + $0x3e4] ss:$16 sps:$4 sm:$0xff]  }
 0x4fe   : > { %5370 = vmatprep.subr.bf16.mxu0 %v7761_v47  ;;  %5698 = vmatprep.subr.bf16.mxu1 %v7764_v48  ;;  %v7854_v47 = vld [vmem:[%s9493_s1 + $0x3ec] ss:$16 sps:$4 sm:$0xff]   ;;  %v7849_v48 = vld [vmem:[%s9493_s1 + $0x3e0] ss:$16 sps:$4 sm:$0xff]  }
 0x500   : > { %5362 = vmatmul.mubr.bf16.vlgmr.msra.gmra.mrb[0].mxu0 %v6732_v49  ;;  %5690 = vmatmul.mubr.bf16.vlgmr.msra.gmra.mrb[0].mxu1 %v6732_v49  ;;  %v7852_v49 = vld [vmem:[%s9493_s1 + $0x3e8] ss:$16 sps:$4 sm:$0xff]  }
 0x501   : > { %5371 = vmatpush1.bf16.msra.mxu0 %v7759_v50  ;;  %5699 = vmatpush1.bf16.msra.mxu1 %v7762_v51  ;;  %v7859_v50 = vld [vmem:[%s9493_s1 + $0x404] ss:$16 sps:$4 sm:$0xff]   ;;  %v7862_v51 = vld [vmem:[%s9493_s1 + $0x40c] ss:$16 sps:$4 sm:$0xff]  }
 0x502   : > { %5372 = vmatprep.subr.bf16.mxu0 %v7767_v52  ;;  %5700 = vmatprep.subr.bf16.mxu1 %v7770_v53  ;;  %v6734_v52 = vcombine.low %v9643_v16, %v9643_v16  ;;  %v7857_v53 = vld [vmem:[%s9493_s1 + $0x400] ss:$16 sps:$4 sm:$0xff]   ;;  %v7892_v16 = vld [vmem:[%s9493_s1 + $0x4ac] ss:$16 sps:$4 sm:$0xff]  }
 0x503   : > { %5402 = vmatprep.mubr.bf16.mxu0 %v6735_v17  ;;  %5730 = vmatprep.mubr.bf16.mxu1 %v6735_v17  ;;  %v7887_v17 = vld [vmem:[%s9493_s1 + $0x4a0] ss:$16 sps:$4 sm:$0xff]  }
 0x505   : > { %5373 = vmatpush1.bf16.msra.mxu0 %v7765_v55  ;;  %5701 = vmatpush1.bf16.msra.mxu1 %v7768_v56  ;;  %v7860_v55 = vld [vmem:[%s9493_s1 + $0x408] ss:$16 sps:$4 sm:$0xff]   ;;  %v7865_v56 = vld [vmem:[%s9493_s1 + $0x424] ss:$16 sps:$4 sm:$0xff]  }
 0x506   : > { %5374 = vmatprep.subr.bf16.mxu0 %v7773_v57  ;;  %5702 = vmatprep.subr.bf16.mxu1 %v7776_v58  ;;  %v9692_v57 = vld [vmem:[#allocation2 + $0x10] sm:$0xff]  ;;  %v7868_v58 = vld [vmem:[%s9493_s1 + $0x42c] ss:$16 sps:$4 sm:$0xff]  }
 0x509   : > { %5375 = vmatpush1.bf16.msra.mxu0 %v7771_v59  ;;  %5703 = vmatpush1.bf16.msra.mxu1 %v7774_v60  ;;  %v6737_v59 = vcombine.high %v9692_v57, %v9692_v57  ;;  %v7863_v60 = vld [vmem:[%s9493_s1 + $0x420] ss:$16 sps:$4 sm:$0xff]  }
 0x50a   : > { %5376 = vmatprep.subr.bf16.mxu0 %v7779_v61  ;;  %5704 = vmatprep.subr.bf16.mxu1 %v7782_v62  ;;  %v7866_v61 = vld [vmem:[%s9493_s1 + $0x428] ss:$16 sps:$4 sm:$0xff]   ;;  %v7871_v62 = vld [vmem:[%s9493_s1 + $0x444] ss:$16 sps:$4 sm:$0xff]  }
 0x50d   : > { %5377 = vmatpush1.bf16.msra.mxu0 %v7777_v63  ;;  %5705 = vmatpush1.bf16.msra.mxu1 %v7780_v0  ;;  %v7874_v63 = vld [vmem:[%s9493_s1 + $0x44c] ss:$16 sps:$4 sm:$0xff]   ;;  %v7869_v0 = vld [vmem:[%s9493_s1 + $0x440] ss:$16 sps:$4 sm:$0xff]  }
 0x50e   : > { %5378 = vmatprep.subr.bf16.mxu0 %v7785_v1  ;;  %5706 = vmatprep.subr.bf16.mxu1 %v7788_v2  ;;  %v7872_v1 = vld [vmem:[%s9493_s1 + $0x448] ss:$16 sps:$4 sm:$0xff]   ;;  %v7877_v2 = vld [vmem:[%s9493_s1 + $0x464] ss:$16 sps:$4 sm:$0xff]  }
 0x511   : > { %5379 = vmatpush1.bf16.msra.mxu0 %v7783_v5  ;;  %5707 = vmatpush1.bf16.msra.mxu1 %v7786_v7  ;;  %v7880_v5 = vld [vmem:[%s9493_s1 + $0x46c] ss:$16 sps:$4 sm:$0xff]   ;;  %v7875_v7 = vld [vmem:[%s9493_s1 + $0x460] ss:$16 sps:$4 sm:$0xff]  }
 0x512   : > { %5380 = vmatprep.subr.bf16.mxu0 %v7791_v9  ;;  %5708 = vmatprep.subr.bf16.mxu1 %v7794_v54  ;;  %v7878_v9 = vld [vmem:[%s9493_s1 + $0x468] ss:$16 sps:$4 sm:$0xff]   ;;  %v7883_v54 = vld [vmem:[%s9493_s1 + $0x484] ss:$16 sps:$4 sm:$0xff]  }
 0x515   : > { %5381 = vmatpush1.bf16.msra.mxu0 %v7789_v10  ;;  %5709 = vmatpush1.bf16.msra.mxu1 %v7792_v12  ;;  %v7886_v10 = vld [vmem:[%s9493_s1 + $0x48c] ss:$16 sps:$4 sm:$0xff]   ;;  %v7881_v12 = vld [vmem:[%s9493_s1 + $0x480] ss:$16 sps:$4 sm:$0xff]  }
 0x516   : > { %5382 = vmatprep.subr.bf16.mxu0 %v7797_v13  ;;  %5710 = vmatprep.subr.bf16.mxu1 %v7800_v15  ;;  %v7884_v13 = vld [vmem:[%s9493_s1 + $0x488] ss:$16 sps:$4 sm:$0xff]   ;;  %v7889_v15 = vld [vmem:[%s9493_s1 + $0x4a4] ss:$16 sps:$4 sm:$0xff]  }
 0x519   : > { %5383 = vmatpush1.bf16.msra.mxu0 %v7795_v4  ;;  %5711 = vmatpush1.bf16.msra.mxu1 %v7798_v18  ;;  %v7890_v4 = vld [vmem:[%s9493_s1 + $0x4a8] ss:$16 sps:$4 sm:$0xff]   ;;  %v7895_v18 = vld [vmem:[%s9493_s1 + $0x4c4] ss:$16 sps:$4 sm:$0xff]  }
 0x51a   : > { %5384 = vmatprep.subr.bf16.mxu0 %v7803_v19  ;;  %5712 = vmatprep.subr.bf16.mxu1 %v7806_v6  ;;  %v7898_v19 = vld [vmem:[%s9493_s1 + $0x4cc] ss:$16 sps:$4 sm:$0xff]   ;;  %v7893_v6 = vld [vmem:[%s9493_s1 + $0x4c0] ss:$16 sps:$4 sm:$0xff]  }
 0x51d   : > { %5385 = vmatpush1.bf16.msra.mxu0 %v7801_v20  ;;  %5713 = vmatpush1.bf16.msra.mxu1 %v7804_v21  ;;  %v7896_v20 = vld [vmem:[%s9493_s1 + $0x4c8] ss:$16 sps:$4 sm:$0xff]   ;;  %v7901_v21 = vld [vmem:[%s9493_s1 + $0x4e4] ss:$16 sps:$4 sm:$0xff]  }
 0x51e   : > { %5386 = vmatprep.subr.bf16.mxu0 %v7809_v22  ;;  %5714 = vmatprep.subr.bf16.mxu1 %v7812_v23  ;;  %v7904_v22 = vld [vmem:[%s9493_s1 + $0x4ec] ss:$16 sps:$4 sm:$0xff]   ;;  %v7899_v23 = vld [vmem:[%s9493_s1 + $0x4e0] ss:$16 sps:$4 sm:$0xff]  }
 0x521   : > { %5387 = vmatpush1.bf16.msra.mxu0 %v7807_v24  ;;  %5715 = vmatpush1.bf16.msra.mxu1 %v7810_v25  ;;  %v7902_v24 = vld [vmem:[%s9493_s1 + $0x4e8] ss:$16 sps:$4 sm:$0xff]   ;;  %v7907_v25 = vld [vmem:[%s9493_s1 + $0x504] ss:$16 sps:$4 sm:$0xff]  }
 0x522   : > { %5388 = vmatprep.subr.bf16.mxu0 %v7815_v26  ;;  %5716 = vmatprep.subr.bf16.mxu1 %v7818_v27  ;;  %v7910_v26 = vld [vmem:[%s9493_s1 + $0x50c] ss:$16 sps:$4 sm:$0xff]   ;;  %v7905_v27 = vld [vmem:[%s9493_s1 + $0x500] ss:$16 sps:$4 sm:$0xff]  }
 0x525   : > { %5389 = vmatpush1.bf16.msra.mxu0 %v7813_v28  ;;  %5717 = vmatpush1.bf16.msra.mxu1 %v7816_v29  ;;  %v7908_v28 = vld [vmem:[%s9493_s1 + $0x508] ss:$16 sps:$4 sm:$0xff]   ;;  %v7913_v29 = vld [vmem:[%s9493_s1 + $0x524] ss:$16 sps:$4 sm:$0xff]  }
 0x526   : > { %5390 = vmatprep.subr.bf16.mxu0 %v7821_v30  ;;  %5718 = vmatprep.subr.bf16.mxu1 %v7824_v31  ;;  %v7916_v30 = vld [vmem:[%s9493_s1 + $0x52c] ss:$16 sps:$4 sm:$0xff]   ;;  %v7911_v31 = vld [vmem:[%s9493_s1 + $0x520] ss:$16 sps:$4 sm:$0xff]  }
 0x529   : > { %5391 = vmatpush1.bf16.msra.mxu0 %v7819_v32  ;;  %5719 = vmatpush1.bf16.msra.mxu1 %v7822_v33  ;;  %v7914_v32 = vld [vmem:[%s9493_s1 + $0x528] ss:$16 sps:$4 sm:$0xff]   ;;  %v7919_v33 = vld [vmem:[%s9493_s1 + $0x544] ss:$16 sps:$4 sm:$0xff]  }
 0x52a   : > { %5392 = vmatprep.subr.bf16.mxu0 %v7827_v34  ;;  %5720 = vmatprep.subr.bf16.mxu1 %v7830_v35  ;;  %v7922_v34 = vld [vmem:[%s9493_s1 + $0x54c] ss:$16 sps:$4 sm:$0xff]   ;;  %v7917_v35 = vld [vmem:[%s9493_s1 + $0x540] ss:$16 sps:$4 sm:$0xff]  }
 0x52d   : > { %5393 = vmatpush1.bf16.msra.mxu0 %v7825_v36  ;;  %5721 = vmatpush1.bf16.msra.mxu1 %v7828_v37  ;;  %v7920_v36 = vld [vmem:[%s9493_s1 + $0x548] ss:$16 sps:$4 sm:$0xff]   ;;  %v7925_v37 = vld [vmem:[%s9493_s1 + $0x564] ss:$16 sps:$4 sm:$0xff]  }
 0x52e   : > { %5394 = vmatprep.subr.bf16.mxu0 %v7833_v38  ;;  %5722 = vmatprep.subr.bf16.mxu1 %v7836_v39  ;;  %v7928_v38 = vld [vmem:[%s9493_s1 + $0x56c] ss:$16 sps:$4 sm:$0xff]   ;;  %v7923_v39 = vld [vmem:[%s9493_s1 + $0x560] ss:$16 sps:$4 sm:$0xff]  }
 0x531   : > { %5395 = vmatpush1.bf16.msra.mxu0 %v7831_v40  ;;  %5723 = vmatpush1.bf16.msra.mxu1 %v7834_v41  ;;  %v7926_v40 = vld [vmem:[%s9493_s1 + $0x568] ss:$16 sps:$4 sm:$0xff]   ;;  %v7931_v41 = vld [vmem:[%s9493_s1 + $0x584] ss:$16 sps:$4 sm:$0xff]  }
 0x532   : > { %5396 = vmatprep.subr.bf16.mxu0 %v7839_v42  ;;  %5724 = vmatprep.subr.bf16.mxu1 %v7842_v8  ;;  %v7934_v42 = vld [vmem:[%s9493_s1 + $0x58c] ss:$16 sps:$4 sm:$0xff]   ;;  %v7929_v8 = vld [vmem:[%s9493_s1 + $0x580] ss:$16 sps:$4 sm:$0xff]  }
 0x535   : > { %5397 = vmatpush1.bf16.msra.mxu0 %v7837_v3  ;;  %5725 = vmatpush1.bf16.msra.mxu1 %v7840_v11  ;;  %v7932_v3 = vld [vmem:[%s9493_s1 + $0x588] ss:$16 sps:$4 sm:$0xff]   ;;  %v7937_v11 = vld [vmem:[%s9493_s1 + $0x5a4] ss:$16 sps:$4 sm:$0xff]  }
 0x536   : > { %5398 = vmatprep.subr.bf16.mxu0 %v7845_v14  ;;  %5726 = vmatprep.subr.bf16.mxu1 %v7848_v43  ;;  %v7940_v14 = vld [vmem:[%s9493_s1 + $0x5ac] ss:$16 sps:$4 sm:$0xff]   ;;  %v7935_v43 = vld [vmem:[%s9493_s1 + $0x5a0] ss:$16 sps:$4 sm:$0xff]  }
 0x539   : > { %5399 = vmatpush1.bf16.msra.mxu0 %v7843_v44  ;;  %5727 = vmatpush1.bf16.msra.mxu1 %v7846_v45  ;;  %v7938_v44 = vld [vmem:[%s9493_s1 + $0x5a8] ss:$16 sps:$4 sm:$0xff]   ;;  %v7943_v45 = vld [vmem:[%s9493_s1 + $0x5c4] ss:$16 sps:$4 sm:$0xff]  }
 0x53a   : > { %5400 = vmatprep.subr.bf16.mxu0 %v7851_v46  ;;  %5728 = vmatprep.subr.bf16.mxu1 %v7854_v47  ;;  %v7946_v46 = vld [vmem:[%s9493_s1 + $0x5cc] ss:$16 sps:$4 sm:$0xff]   ;;  %v7941_v47 = vld [vmem:[%s9493_s1 + $0x5c0] ss:$16 sps:$4 sm:$0xff]  }
 0x53d   : > { %5401 = vmatpush1.bf16.msra.mxu0 %v7849_v48  ;;  %5729 = vmatpush1.bf16.msra.mxu1 %v7852_v49  ;;  %v7944_v48 = vld [vmem:[%s9493_s1 + $0x5c8] ss:$16 sps:$4 sm:$0xff]   ;;  %v7949_v49 = vld [vmem:[%s9493_s1 + $0x5e4] ss:$16 sps:$4 sm:$0xff]  }
 0x53e   : > { %5411 = vmatprep.subr.bf16.mxu0 %v7859_v50  ;;  %5739 = vmatprep.subr.bf16.mxu1 %v7862_v51  ;;  %v7952_v50 = vld [vmem:[%s9493_s1 + $0x5ec] ss:$16 sps:$4 sm:$0xff]   ;;  %v7947_v51 = vld [vmem:[%s9493_s1 + $0x5e0] ss:$16 sps:$4 sm:$0xff]  }
 0x540   : > { %5403 = vmatmul.mubr.bf16.vlgmr.msra.gmra.mrb[0].mxu0 %v6734_v52  ;;  %5731 = vmatmul.mubr.bf16.vlgmr.msra.gmra.mrb[0].mxu1 %v6734_v52  ;;  %v7950_v52 = vld [vmem:[%s9493_s1 + $0x5e8] ss:$16 sps:$4 sm:$0xff]  }
 0x541   : > { %5412 = vmatpush1.bf16.msra.mxu0 %v7857_v53  ;;  %5740 = vmatpush1.bf16.msra.mxu1 %v7860_v55  ;;  %v7957_v53 = vld [vmem:[%s9493_s1 + $0x604] ss:$16 sps:$4 sm:$0xff]   ;;  %v7960_v55 = vld [vmem:[%s9493_s1 + $0x60c] ss:$16 sps:$4 sm:$0xff]  }
 0x542   : > { %5413 = vmatprep.subr.bf16.mxu0 %v7865_v56  ;;  %5741 = vmatprep.subr.bf16.mxu1 %v7868_v58  ;;  %v7955_v56 = vld [vmem:[%s9493_s1 + $0x600] ss:$16 sps:$4 sm:$0xff]   ;;  %v6736_v58 = vcombine.low %v9692_v57, %v9692_v57 }
 0x543   : > { %5443 = vmatprep.mubr.bf16.mxu0 %v6737_v59  ;;  %5771 = vmatprep.mubr.bf16.mxu1 %v6737_v59  ;;  %v7958_v59 = vld [vmem:[%s9493_s1 + $0x608] ss:$16 sps:$4 sm:$0xff]   ;;  %v7961_v57 = vld [vmem:[%s9493_s1 + $0x620] ss:$16 sps:$4 sm:$0xff]  }
 0x545   : > { %5414 = vmatpush1.bf16.msra.mxu0 %v7863_v60  ;;  %5742 = vmatpush1.bf16.msra.mxu1 %v7866_v61  ;;  %v9761_v60 = vld [vmem:[#allocation2 + $0x18] sm:$0xff]  ;;  %v7963_v61 = vld [vmem:[%s9493_s1 + $0x624] ss:$16 sps:$4 sm:$0xff]  }
 0x546   : > { %5415 = vmatprep.subr.bf16.mxu0 %v7871_v62  ;;  %5743 = vmatprep.subr.bf16.mxu1 %v7874_v63  ;;  %v7966_v62 = vld [vmem:[%s9493_s1 + $0x62c] ss:$16 sps:$4 sm:$0xff]   ;;  %v6739_v63 = vcombine.high %v9761_v60, %v9761_v60 }
 0x549   : > { %5416 = vmatpush1.bf16.msra.mxu0 %v7869_v0  ;;  %5744 = vmatpush1.bf16.msra.mxu1 %v7872_v1  ;;  %v7964_v0 = vld [vmem:[%s9493_s1 + $0x628] ss:$16 sps:$4 sm:$0xff]   ;;  %v7969_v1 = vld [vmem:[%s9493_s1 + $0x644] ss:$16 sps:$4 sm:$0xff]  }
 0x54a   : > { %5417 = vmatprep.subr.bf16.mxu0 %v7877_v2  ;;  %5745 = vmatprep.subr.bf16.mxu1 %v7880_v5  ;;  %v7972_v2 = vld [vmem:[%s9493_s1 + $0x64c] ss:$16 sps:$4 sm:$0xff]   ;;  %v7967_v5 = vld [vmem:[%s9493_s1 + $0x640] ss:$16 sps:$4 sm:$0xff]  }
 0x54d   : > { %5418 = vmatpush1.bf16.msra.mxu0 %v7875_v7  ;;  %5746 = vmatpush1.bf16.msra.mxu1 %v7878_v9  ;;  %v7970_v7 = vld [vmem:[%s9493_s1 + $0x648] ss:$16 sps:$4 sm:$0xff]   ;;  %v7975_v9 = vld [vmem:[%s9493_s1 + $0x664] ss:$16 sps:$4 sm:$0xff]  }
 0x54e   : > { %5419 = vmatprep.subr.bf16.mxu0 %v7883_v54  ;;  %5747 = vmatprep.subr.bf16.mxu1 %v7886_v10  ;;  %v7978_v54 = vld [vmem:[%s9493_s1 + $0x66c] ss:$16 sps:$4 sm:$0xff]   ;;  %v7973_v10 = vld [vmem:[%s9493_s1 + $0x660] ss:$16 sps:$4 sm:$0xff]  }
 0x551   : > { %5420 = vmatpush1.bf16.msra.mxu0 %v7881_v12  ;;  %5748 = vmatpush1.bf16.msra.mxu1 %v7884_v13  ;;  %v7976_v12 = vld [vmem:[%s9493_s1 + $0x668] ss:$16 sps:$4 sm:$0xff]   ;;  %v7981_v13 = vld [vmem:[%s9493_s1 + $0x684] ss:$16 sps:$4 sm:$0xff]  }
 0x552   : > { %5421 = vmatprep.subr.bf16.mxu0 %v7889_v15  ;;  %5749 = vmatprep.subr.bf16.mxu1 %v7892_v16  ;;  %v7984_v15 = vld [vmem:[%s9493_s1 + $0x68c] ss:$16 sps:$4 sm:$0xff]   ;;  %v7979_v16 = vld [vmem:[%s9493_s1 + $0x680] ss:$16 sps:$4 sm:$0xff]  }
 0x555   : > { %5422 = vmatpush1.bf16.msra.mxu0 %v7887_v17  ;;  %5750 = vmatpush1.bf16.msra.mxu1 %v7890_v4  ;;  %v7982_v17 = vld [vmem:[%s9493_s1 + $0x688] ss:$16 sps:$4 sm:$0xff]   ;;  %v7987_v4 = vld [vmem:[%s9493_s1 + $0x6a4] ss:$16 sps:$4 sm:$0xff]  }
 0x556   : > { %5423 = vmatprep.subr.bf16.mxu0 %v7895_v18  ;;  %5751 = vmatprep.subr.bf16.mxu1 %v7898_v19  ;;  %v7990_v18 = vld [vmem:[%s9493_s1 + $0x6ac] ss:$16 sps:$4 sm:$0xff]   ;;  %v7985_v19 = vld [vmem:[%s9493_s1 + $0x6a0] ss:$16 sps:$4 sm:$0xff]  }
 0x559   : > { %5424 = vmatpush1.bf16.msra.mxu0 %v7893_v6  ;;  %5752 = vmatpush1.bf16.msra.mxu1 %v7896_v20  ;;  %v7988_v6 = vld [vmem:[%s9493_s1 + $0x6a8] ss:$16 sps:$4 sm:$0xff]   ;;  %v7993_v20 = vld [vmem:[%s9493_s1 + $0x6c4] ss:$16 sps:$4 sm:$0xff]  }
 0x55a   : > { %5425 = vmatprep.subr.bf16.mxu0 %v7901_v21  ;;  %5753 = vmatprep.subr.bf16.mxu1 %v7904_v22  ;;  %v7996_v21 = vld [vmem:[%s9493_s1 + $0x6cc] ss:$16 sps:$4 sm:$0xff]   ;;  %v7991_v22 = vld [vmem:[%s9493_s1 + $0x6c0] ss:$16 sps:$4 sm:$0xff]  }
 0x55d   : > { %5426 = vmatpush1.bf16.msra.mxu0 %v7899_v23  ;;  %5754 = vmatpush1.bf16.msra.mxu1 %v7902_v24  ;;  %v7994_v23 = vld [vmem:[%s9493_s1 + $0x6c8] ss:$16 sps:$4 sm:$0xff]   ;;  %v7999_v24 = vld [vmem:[%s9493_s1 + $0x6e4] ss:$16 sps:$4 sm:$0xff]  }
 0x55e   : > { %5427 = vmatprep.subr.bf16.mxu0 %v7907_v25  ;;  %5755 = vmatprep.subr.bf16.mxu1 %v7910_v26  ;;  %v8002_v25 = vld [vmem:[%s9493_s1 + $0x6ec] ss:$16 sps:$4 sm:$0xff]   ;;  %v7997_v26 = vld [vmem:[%s9493_s1 + $0x6e0] ss:$16 sps:$4 sm:$0xff]  }
 0x561   : > { %5428 = vmatpush1.bf16.msra.mxu0 %v7905_v27  ;;  %5756 = vmatpush1.bf16.msra.mxu1 %v7908_v28  ;;  %v8000_v27 = vld [vmem:[%s9493_s1 + $0x6e8] ss:$16 sps:$4 sm:$0xff]   ;;  %v8005_v28 = vld [vmem:[%s9493_s1 + $0x704] ss:$16 sps:$4 sm:$0xff]  }
 0x562   : > { %5429 = vmatprep.subr.bf16.mxu0 %v7913_v29  ;;  %5757 = vmatprep.subr.bf16.mxu1 %v7916_v30  ;;  %v8008_v29 = vld [vmem:[%s9493_s1 + $0x70c] ss:$16 sps:$4 sm:$0xff]   ;;  %v8003_v30 = vld [vmem:[%s9493_s1 + $0x700] ss:$16 sps:$4 sm:$0xff]  }
 0x565   : > { %5430 = vmatpush1.bf16.msra.mxu0 %v7911_v31  ;;  %5758 = vmatpush1.bf16.msra.mxu1 %v7914_v32  ;;  %v8006_v31 = vld [vmem:[%s9493_s1 + $0x708] ss:$16 sps:$4 sm:$0xff]   ;;  %v8011_v32 = vld [vmem:[%s9493_s1 + $0x724] ss:$16 sps:$4 sm:$0xff]  }
 0x566   : > { %5431 = vmatprep.subr.bf16.mxu0 %v7919_v33  ;;  %5759 = vmatprep.subr.bf16.mxu1 %v7922_v34  ;;  %v8014_v33 = vld [vmem:[%s9493_s1 + $0x72c] ss:$16 sps:$4 sm:$0xff]   ;;  %v8009_v34 = vld [vmem:[%s9493_s1 + $0x720] ss:$16 sps:$4 sm:$0xff]  }
 0x569   : > { %5432 = vmatpush1.bf16.msra.mxu0 %v7917_v35  ;;  %5760 = vmatpush1.bf16.msra.mxu1 %v7920_v36  ;;  %v8012_v35 = vld [vmem:[%s9493_s1 + $0x728] ss:$16 sps:$4 sm:$0xff]   ;;  %v8017_v36 = vld [vmem:[%s9493_s1 + $0x744] ss:$16 sps:$4 sm:$0xff]  }
 0x56a   : > { %5433 = vmatprep.subr.bf16.mxu0 %v7925_v37  ;;  %5761 = vmatprep.subr.bf16.mxu1 %v7928_v38  ;;  %v8020_v37 = vld [vmem:[%s9493_s1 + $0x74c] ss:$16 sps:$4 sm:$0xff]   ;;  %v8015_v38 = vld [vmem:[%s9493_s1 + $0x740] ss:$16 sps:$4 sm:$0xff]  }
 0x56d   : > { %5434 = vmatpush1.bf16.msra.mxu0 %v7923_v39  ;;  %5762 = vmatpush1.bf16.msra.mxu1 %v7926_v40  ;;  %v8018_v39 = vld [vmem:[%s9493_s1 + $0x748] ss:$16 sps:$4 sm:$0xff]   ;;  %v8023_v40 = vld [vmem:[%s9493_s1 + $0x764] ss:$16 sps:$4 sm:$0xff]  }
 0x56e   : > { %5435 = vmatprep.subr.bf16.mxu0 %v7931_v41  ;;  %5763 = vmatprep.subr.bf16.mxu1 %v7934_v42  ;;  %v8026_v41 = vld [vmem:[%s9493_s1 + $0x76c] ss:$16 sps:$4 sm:$0xff]   ;;  %v8021_v42 = vld [vmem:[%s9493_s1 + $0x760] ss:$16 sps:$4 sm:$0xff]  }
 0x571   : > { %5436 = vmatpush1.bf16.msra.mxu0 %v7929_v8  ;;  %5764 = vmatpush1.bf16.msra.mxu1 %v7932_v3  ;;  %v8024_v8 = vld [vmem:[%s9493_s1 + $0x768] ss:$16 sps:$4 sm:$0xff]   ;;  %v8029_v3 = vld [vmem:[%s9493_s1 + $0x784] ss:$16 sps:$4 sm:$0xff]  }
 0x572   : > { %5437 = vmatprep.subr.bf16.mxu0 %v7937_v11  ;;  %5765 = vmatprep.subr.bf16.mxu1 %v7940_v14  ;;  %v8032_v11 = vld [vmem:[%s9493_s1 + $0x78c] ss:$16 sps:$4 sm:$0xff]   ;;  %v8027_v14 = vld [vmem:[%s9493_s1 + $0x780] ss:$16 sps:$4 sm:$0xff]  }
 0x575   : > { %5438 = vmatpush1.bf16.msra.mxu0 %v7935_v43  ;;  %5766 = vmatpush1.bf16.msra.mxu1 %v7938_v44  ;;  %v8030_v43 = vld [vmem:[%s9493_s1 + $0x788] ss:$16 sps:$4 sm:$0xff]   ;;  %v8035_v44 = vld [vmem:[%s9493_s1 + $0x7a4] ss:$16 sps:$4 sm:$0xff]  }
 0x576   : > { %5439 = vmatprep.subr.bf16.mxu0 %v7943_v45  ;;  %5767 = vmatprep.subr.bf16.mxu1 %v7946_v46  ;;  %v8038_v45 = vld [vmem:[%s9493_s1 + $0x7ac] ss:$16 sps:$4 sm:$0xff]   ;;  %v8033_v46 = vld [vmem:[%s9493_s1 + $0x7a0] ss:$16 sps:$4 sm:$0xff]  }
 0x579   : > { %5440 = vmatpush1.bf16.msra.mxu0 %v7941_v47  ;;  %5768 = vmatpush1.bf16.msra.mxu1 %v7944_v48  ;;  %v8036_v47 = vld [vmem:[%s9493_s1 + $0x7a8] ss:$16 sps:$4 sm:$0xff]   ;;  %v8041_v48 = vld [vmem:[%s9493_s1 + $0x7c4] ss:$16 sps:$4 sm:$0xff]  }
 0x57a   : > { %5441 = vmatprep.subr.bf16.mxu0 %v7949_v49  ;;  %5769 = vmatprep.subr.bf16.mxu1 %v7952_v50  ;;  %v8044_v49 = vld [vmem:[%s9493_s1 + $0x7cc] ss:$16 sps:$4 sm:$0xff]   ;;  %v8039_v50 = vld [vmem:[%s9493_s1 + $0x7c0] ss:$16 sps:$4 sm:$0xff]  }
 0x57d   : > { %5442 = vmatpush1.bf16.msra.mxu0 %v7947_v51  ;;  %5770 = vmatpush1.bf16.msra.mxu1 %v7950_v52  ;;  %v8042_v51 = vld [vmem:[%s9493_s1 + $0x7c8] ss:$16 sps:$4 sm:$0xff]   ;;  %v8047_v52 = vld [vmem:[%s9493_s1 + $0x7e4] ss:$16 sps:$4 sm:$0xff]  }
 0x57e   : > { %5452 = vmatprep.subr.bf16.mxu0 %v7957_v53  ;;  %5780 = vmatprep.subr.bf16.mxu1 %v7960_v55  ;;  %v8050_v53 = vld [vmem:[%s9493_s1 + $0x7ec] ss:$16 sps:$4 sm:$0xff]   ;;  %v8045_v55 = vld [vmem:[%s9493_s1 + $0x7e0] ss:$16 sps:$4 sm:$0xff]  }
 0x580   : > { %5444 = vmatmul.mubr.bf16.vlgmr.msra.gmra.mrb[0].mxu0 %v6736_v58  ;;  %5772 = vmatmul.mubr.bf16.vlgmr.msra.gmra.mrb[0].mxu1 %v6736_v58  ;;  %v8055_v58 = vld [vmem:[%s9493_s1 + $0x804] ss:$16 sps:$4 sm:$0xff]  }
 0x581   : > { %5453 = vmatpush1.bf16.msra.mxu0 %v7955_v56  ;;  %5781 = vmatpush1.bf16.msra.mxu1 %v7958_v59  ;;  %v8048_v56 = vld [vmem:[%s9493_s1 + $0x7e8] ss:$16 sps:$4 sm:$0xff]   ;;  %v8058_v59 = vld [vmem:[%s9493_s1 + $0x80c] ss:$16 sps:$4 sm:$0xff]  }
 0x582   : > { %5454 = vmatprep.subr.bf16.mxu0 %v7963_v61  ;;  %5782 = vmatprep.subr.bf16.mxu1 %v7966_v62  ;;  %v8053_v61 = vld [vmem:[%s9493_s1 + $0x800] ss:$16 sps:$4 sm:$0xff]   ;;  %v6738_v62 = vcombine.low %v9761_v60, %v9761_v60 }
 0x583   : > { %5484 = vmatprep.mubr.bf16.mxu0 %v6739_v63  ;;  %5812 = vmatprep.mubr.bf16.mxu1 %v6739_v63  ;;  %v9830_v63 = vld [vmem:[#allocation2 + $0x20] sm:$0xff]  ;;  %v8059_v60 = vld [vmem:[%s9493_s1 + $0x820] ss:$16 sps:$4 sm:$0xff]  }
 0x585   : > { %5455 = vmatpush1.bf16.msra.mxu0 %v7961_v57  ;;  %5783 = vmatpush1.bf16.msra.mxu1 %v7964_v0  ;;  %v8056_v57 = vld [vmem:[%s9493_s1 + $0x808] ss:$16 sps:$4 sm:$0xff]   ;;  %v8061_v0 = vld [vmem:[%s9493_s1 + $0x824] ss:$16 sps:$4 sm:$0xff]  }
 0x586   : > { %5456 = vmatprep.subr.bf16.mxu0 %v7969_v1  ;;  %5784 = vmatprep.subr.bf16.mxu1 %v7972_v2  ;;  %v8064_v1 = vld [vmem:[%s9493_s1 + $0x82c] ss:$16 sps:$4 sm:$0xff]   ;;  %v6741_v2 = vcombine.high %v9830_v63, %v9830_v63 }
 0x589   : > { %5457 = vmatpush1.bf16.msra.mxu0 %v7967_v5  ;;  %5785 = vmatpush1.bf16.msra.mxu1 %v7970_v7  ;;  %v8062_v5 = vld [vmem:[%s9493_s1 + $0x828] ss:$16 sps:$4 sm:$0xff]   ;;  %v8067_v7 = vld [vmem:[%s9493_s1 + $0x844] ss:$16 sps:$4 sm:$0xff]  }
 0x58a   : > { %5458 = vmatprep.subr.bf16.mxu0 %v7975_v9  ;;  %5786 = vmatprep.subr.bf16.mxu1 %v7978_v54  ;;  %v8070_v9 = vld [vmem:[%s9493_s1 + $0x84c] ss:$16 sps:$4 sm:$0xff]   ;;  %v8065_v54 = vld [vmem:[%s9493_s1 + $0x840] ss:$16 sps:$4 sm:$0xff]  }
 0x58d   : > { %5459 = vmatpush1.bf16.msra.mxu0 %v7973_v10  ;;  %5787 = vmatpush1.bf16.msra.mxu1 %v7976_v12  ;;  %v8068_v10 = vld [vmem:[%s9493_s1 + $0x848] ss:$16 sps:$4 sm:$0xff]   ;;  %v8073_v12 = vld [vmem:[%s9493_s1 + $0x864] ss:$16 sps:$4 sm:$0xff]  }
 0x58e   : > { %5460 = vmatprep.subr.bf16.mxu0 %v7981_v13  ;;  %5788 = vmatprep.subr.bf16.mxu1 %v7984_v15  ;;  %v8076_v13 = vld [vmem:[%s9493_s1 + $0x86c] ss:$16 sps:$4 sm:$0xff]   ;;  %v8071_v15 = vld [vmem:[%s9493_s1 + $0x860] ss:$16 sps:$4 sm:$0xff]  }
 0x591   : > { %5461 = vmatpush1.bf16.msra.mxu0 %v7979_v16  ;;  %5789 = vmatpush1.bf16.msra.mxu1 %v7982_v17  ;;  %v8074_v16 = vld [vmem:[%s9493_s1 + $0x868] ss:$16 sps:$4 sm:$0xff]   ;;  %v8079_v17 = vld [vmem:[%s9493_s1 + $0x884] ss:$16 sps:$4 sm:$0xff]  }
 0x592   : > { %5462 = vmatprep.subr.bf16.mxu0 %v7987_v4  ;;  %5790 = vmatprep.subr.bf16.mxu1 %v7990_v18  ;;  %v8082_v4 = vld [vmem:[%s9493_s1 + $0x88c] ss:$16 sps:$4 sm:$0xff]   ;;  %v8077_v18 = vld [vmem:[%s9493_s1 + $0x880] ss:$16 sps:$4 sm:$0xff]  }
 0x595   : > { %5463 = vmatpush1.bf16.msra.mxu0 %v7985_v19  ;;  %5791 = vmatpush1.bf16.msra.mxu1 %v7988_v6  ;;  %v8080_v19 = vld [vmem:[%s9493_s1 + $0x888] ss:$16 sps:$4 sm:$0xff]   ;;  %v8085_v6 = vld [vmem:[%s9493_s1 + $0x8a4] ss:$16 sps:$4 sm:$0xff]  }
 0x596   : > { %5464 = vmatprep.subr.bf16.mxu0 %v7993_v20  ;;  %5792 = vmatprep.subr.bf16.mxu1 %v7996_v21  ;;  %v8088_v20 = vld [vmem:[%s9493_s1 + $0x8ac] ss:$16 sps:$4 sm:$0xff]   ;;  %v8083_v21 = vld [vmem:[%s9493_s1 + $0x8a0] ss:$16 sps:$4 sm:$0xff]  }
 0x599   : > { %5465 = vmatpush1.bf16.msra.mxu0 %v7991_v22  ;;  %5793 = vmatpush1.bf16.msra.mxu1 %v7994_v23  ;;  %v8086_v22 = vld [vmem:[%s9493_s1 + $0x8a8] ss:$16 sps:$4 sm:$0xff]   ;;  %v8091_v23 = vld [vmem:[%s9493_s1 + $0x8c4] ss:$16 sps:$4 sm:$0xff]  }
 0x59a   : > { %5466 = vmatprep.subr.bf16.mxu0 %v7999_v24  ;;  %5794 = vmatprep.subr.bf16.mxu1 %v8002_v25  ;;  %v8094_v24 = vld [vmem:[%s9493_s1 + $0x8cc] ss:$16 sps:$4 sm:$0xff]   ;;  %v8089_v25 = vld [vmem:[%s9493_s1 + $0x8c0] ss:$16 sps:$4 sm:$0xff]  }
 0x59d   : > { %5467 = vmatpush1.bf16.msra.mxu0 %v7997_v26  ;;  %5795 = vmatpush1.bf16.msra.mxu1 %v8000_v27  ;;  %v8092_v26 = vld [vmem:[%s9493_s1 + $0x8c8] ss:$16 sps:$4 sm:$0xff]   ;;  %v8097_v27 = vld [vmem:[%s9493_s1 + $0x8e4] ss:$16 sps:$4 sm:$0xff]  }
 0x59e   : > { %5468 = vmatprep.subr.bf16.mxu0 %v8005_v28  ;;  %5796 = vmatprep.subr.bf16.mxu1 %v8008_v29  ;;  %v8100_v28 = vld [vmem:[%s9493_s1 + $0x8ec] ss:$16 sps:$4 sm:$0xff]   ;;  %v8095_v29 = vld [vmem:[%s9493_s1 + $0x8e0] ss:$16 sps:$4 sm:$0xff]  }
 0x5a1   : > { %5469 = vmatpush1.bf16.msra.mxu0 %v8003_v30  ;;  %5797 = vmatpush1.bf16.msra.mxu1 %v8006_v31  ;;  %v8098_v30 = vld [vmem:[%s9493_s1 + $0x8e8] ss:$16 sps:$4 sm:$0xff]   ;;  %v8103_v31 = vld [vmem:[%s9493_s1 + $0x904] ss:$16 sps:$4 sm:$0xff]  }
 0x5a2   : > { %5470 = vmatprep.subr.bf16.mxu0 %v8011_v32  ;;  %5798 = vmatprep.subr.bf16.mxu1 %v8014_v33  ;;  %v8106_v32 = vld [vmem:[%s9493_s1 + $0x90c] ss:$16 sps:$4 sm:$0xff]   ;;  %v8101_v33 = vld [vmem:[%s9493_s1 + $0x900] ss:$16 sps:$4 sm:$0xff]  }
 0x5a5   : > { %5471 = vmatpush1.bf16.msra.mxu0 %v8009_v34  ;;  %5799 = vmatpush1.bf16.msra.mxu1 %v8012_v35  ;;  %v8104_v34 = vld [vmem:[%s9493_s1 + $0x908] ss:$16 sps:$4 sm:$0xff]   ;;  %v8109_v35 = vld [vmem:[%s9493_s1 + $0x924] ss:$16 sps:$4 sm:$0xff]  }
 0x5a6   : > { %5472 = vmatprep.subr.bf16.mxu0 %v8017_v36  ;;  %5800 = vmatprep.subr.bf16.mxu1 %v8020_v37  ;;  %v8112_v36 = vld [vmem:[%s9493_s1 + $0x92c] ss:$16 sps:$4 sm:$0xff]   ;;  %v8107_v37 = vld [vmem:[%s9493_s1 + $0x920] ss:$16 sps:$4 sm:$0xff]  }
 0x5a9   : > { %5473 = vmatpush1.bf16.msra.mxu0 %v8015_v38  ;;  %5801 = vmatpush1.bf16.msra.mxu1 %v8018_v39  ;;  %v8110_v38 = vld [vmem:[%s9493_s1 + $0x928] ss:$16 sps:$4 sm:$0xff]   ;;  %v8115_v39 = vld [vmem:[%s9493_s1 + $0x944] ss:$16 sps:$4 sm:$0xff]  }
 0x5aa   : > { %5474 = vmatprep.subr.bf16.mxu0 %v8023_v40  ;;  %5802 = vmatprep.subr.bf16.mxu1 %v8026_v41  ;;  %v8118_v40 = vld [vmem:[%s9493_s1 + $0x94c] ss:$16 sps:$4 sm:$0xff]   ;;  %v8113_v41 = vld [vmem:[%s9493_s1 + $0x940] ss:$16 sps:$4 sm:$0xff]  }
 0x5ad   : > { %5475 = vmatpush1.bf16.msra.mxu0 %v8021_v42  ;;  %5803 = vmatpush1.bf16.msra.mxu1 %v8024_v8  ;;  %v8116_v42 = vld [vmem:[%s9493_s1 + $0x948] ss:$16 sps:$4 sm:$0xff]   ;;  %v8121_v8 = vld [vmem:[%s9493_s1 + $0x964] ss:$16 sps:$4 sm:$0xff]  }
 0x5ae   : > { %5476 = vmatprep.subr.bf16.mxu0 %v8029_v3  ;;  %5804 = vmatprep.subr.bf16.mxu1 %v8032_v11  ;;  %v8124_v3 = vld [vmem:[%s9493_s1 + $0x96c] ss:$16 sps:$4 sm:$0xff]   ;;  %v8119_v11 = vld [vmem:[%s9493_s1 + $0x960] ss:$16 sps:$4 sm:$0xff]  }
 0x5b1   : > { %5477 = vmatpush1.bf16.msra.mxu0 %v8027_v14  ;;  %5805 = vmatpush1.bf16.msra.mxu1 %v8030_v43  ;;  %v8122_v14 = vld [vmem:[%s9493_s1 + $0x968] ss:$16 sps:$4 sm:$0xff]   ;;  %v8127_v43 = vld [vmem:[%s9493_s1 + $0x984] ss:$16 sps:$4 sm:$0xff]  }
 0x5b2   : > { %5478 = vmatprep.subr.bf16.mxu0 %v8035_v44  ;;  %5806 = vmatprep.subr.bf16.mxu1 %v8038_v45  ;;  %v8130_v44 = vld [vmem:[%s9493_s1 + $0x98c] ss:$16 sps:$4 sm:$0xff]   ;;  %v8125_v45 = vld [vmem:[%s9493_s1 + $0x980] ss:$16 sps:$4 sm:$0xff]  }
 0x5b5   : > { %5479 = vmatpush1.bf16.msra.mxu0 %v8033_v46  ;;  %5807 = vmatpush1.bf16.msra.mxu1 %v8036_v47  ;;  %v8128_v46 = vld [vmem:[%s9493_s1 + $0x988] ss:$16 sps:$4 sm:$0xff]   ;;  %v8133_v47 = vld [vmem:[%s9493_s1 + $0x9a4] ss:$16 sps:$4 sm:$0xff]  }
 0x5b6   : > { %5480 = vmatprep.subr.bf16.mxu0 %v8041_v48  ;;  %5808 = vmatprep.subr.bf16.mxu1 %v8044_v49  ;;  %v8136_v48 = vld [vmem:[%s9493_s1 + $0x9ac] ss:$16 sps:$4 sm:$0xff]   ;;  %v8131_v49 = vld [vmem:[%s9493_s1 + $0x9a0] ss:$16 sps:$4 sm:$0xff]  }
 0x5b9   : > { %5481 = vmatpush1.bf16.msra.mxu0 %v8039_v50  ;;  %5809 = vmatpush1.bf16.msra.mxu1 %v8042_v51  ;;  %v8134_v50 = vld [vmem:[%s9493_s1 + $0x9a8] ss:$16 sps:$4 sm:$0xff]   ;;  %v8139_v51 = vld [vmem:[%s9493_s1 + $0x9c4] ss:$16 sps:$4 sm:$0xff]  }
 0x5ba   : > { %5482 = vmatprep.subr.bf16.mxu0 %v8047_v52  ;;  %5810 = vmatprep.subr.bf16.mxu1 %v8050_v53  ;;  %v8142_v52 = vld [vmem:[%s9493_s1 + $0x9cc] ss:$16 sps:$4 sm:$0xff]   ;;  %v8137_v53 = vld [vmem:[%s9493_s1 + $0x9c0] ss:$16 sps:$4 sm:$0xff]  }
 0x5bd   : > { %5483 = vmatpush1.bf16.msra.mxu0 %v8045_v55  ;;  %5811 = vmatpush1.bf16.msra.mxu1 %v8048_v56  ;;  %v8140_v55 = vld [vmem:[%s9493_s1 + $0x9c8] ss:$16 sps:$4 sm:$0xff]   ;;  %v8145_v56 = vld [vmem:[%s9493_s1 + $0x9e4] ss:$16 sps:$4 sm:$0xff]  }
 0x5be   : > { %5493 = vmatprep.subr.bf16.mxu0 %v8055_v58  ;;  %5821 = vmatprep.subr.bf16.mxu1 %v8058_v59  ;;  %v8148_v58 = vld [vmem:[%s9493_s1 + $0x9ec] ss:$16 sps:$4 sm:$0xff]   ;;  %v8143_v59 = vld [vmem:[%s9493_s1 + $0x9e0] ss:$16 sps:$4 sm:$0xff]  }
 0x5c0   : > { %5485 = vmatmul.mubr.bf16.vlgmr.msra.gmra.mrb[0].mxu0 %v6738_v62  ;;  %5813 = vmatmul.mubr.bf16.vlgmr.msra.gmra.mrb[0].mxu1 %v6738_v62  ;;  %v8153_v62 = vld [vmem:[%s9493_s1 + $0xa04] ss:$16 sps:$4 sm:$0xff]  }
 0x5c1   : > { %5494 = vmatpush1.bf16.msra.mxu0 %v8053_v61  ;;  %5822 = vmatpush1.bf16.msra.mxu1 %v8056_v57  ;;  %v8146_v61 = vld [vmem:[%s9493_s1 + $0x9e8] ss:$16 sps:$4 sm:$0xff]   ;;  %v8156_v57 = vld [vmem:[%s9493_s1 + $0xa0c] ss:$16 sps:$4 sm:$0xff]  }
 0x5c2   : > { %5495 = vmatprep.subr.bf16.mxu0 %v8061_v0  ;;  %5823 = vmatprep.subr.bf16.mxu1 %v8064_v1  ;;  %v9897_v0 = vld [vmem:[#allocation2 + $0x28] sm:$0xff]  ;;  %v6740_v1 = vcombine.low %v9830_v63, %v9830_v63 }
 0x5c3   : > { %5525 = vmatprep.mubr.bf16.mxu0 %v6741_v2  ;;  %5853 = vmatprep.mubr.bf16.mxu1 %v6741_v2  ;;  %v8151_v2 = vld [vmem:[%s9493_s1 + $0xa00] ss:$16 sps:$4 sm:$0xff]  }
 0x5c4   : > { %v8157_v63 = vld [vmem:[%s9493_s1 + $0xa20] ss:$16 sps:$4 sm:$0xff]  }
 0x5c5   : > { %5496 = vmatpush1.bf16.msra.mxu0 %v8059_v60  ;;  %5824 = vmatpush1.bf16.msra.mxu1 %v8062_v5  ;;  %v8154_v60 = vld [vmem:[%s9493_s1 + $0xa08] ss:$16 sps:$4 sm:$0xff]   ;;  %v8159_v5 = vld [vmem:[%s9493_s1 + $0xa24] ss:$16 sps:$4 sm:$0xff]  }
 0x5c6   : > { %5497 = vmatprep.subr.bf16.mxu0 %v8067_v7  ;;  %5825 = vmatprep.subr.bf16.mxu1 %v8070_v9  ;;  %v8162_v7 = vld [vmem:[%s9493_s1 + $0xa2c] ss:$16 sps:$4 sm:$0xff]   ;;  %v6743_v9 = vcombine.high %v9897_v0, %v9897_v0 }
 0x5c9   : > { %5498 = vmatpush1.bf16.msra.mxu0 %v8065_v54  ;;  %5826 = vmatpush1.bf16.msra.mxu1 %v8068_v10  ;;  %v8160_v54 = vld [vmem:[%s9493_s1 + $0xa28] ss:$16 sps:$4 sm:$0xff]   ;;  %v8165_v10 = vld [vmem:[%s9493_s1 + $0xa44] ss:$16 sps:$4 sm:$0xff]  }
 0x5ca   : > { %5499 = vmatprep.subr.bf16.mxu0 %v8073_v12  ;;  %5827 = vmatprep.subr.bf16.mxu1 %v8076_v13  ;;  %v8168_v12 = vld [vmem:[%s9493_s1 + $0xa4c] ss:$16 sps:$4 sm:$0xff]   ;;  %v8163_v13 = vld [vmem:[%s9493_s1 + $0xa40] ss:$16 sps:$4 sm:$0xff]  }
 0x5cd   : > { %5500 = vmatpush1.bf16.msra.mxu0 %v8071_v15  ;;  %5828 = vmatpush1.bf16.msra.mxu1 %v8074_v16  ;;  %v8166_v15 = vld [vmem:[%s9493_s1 + $0xa48] ss:$16 sps:$4 sm:$0xff]   ;;  %v8171_v16 = vld [vmem:[%s9493_s1 + $0xa64] ss:$16 sps:$4 sm:$0xff]  }
 0x5ce   : > { %5501 = vmatprep.subr.bf16.mxu0 %v8079_v17  ;;  %5829 = vmatprep.subr.bf16.mxu1 %v8082_v4  ;;  %v8174_v17 = vld [vmem:[%s9493_s1 + $0xa6c] ss:$16 sps:$4 sm:$0xff]   ;;  %v8169_v4 = vld [vmem:[%s9493_s1 + $0xa60] ss:$16 sps:$4 sm:$0xff]  }
 0x5d1   : > { %5502 = vmatpush1.bf16.msra.mxu0 %v8077_v18  ;;  %5830 = vmatpush1.bf16.msra.mxu1 %v8080_v19  ;;  %v8172_v18 = vld [vmem:[%s9493_s1 + $0xa68] ss:$16 sps:$4 sm:$0xff]   ;;  %v8177_v19 = vld [vmem:[%s9493_s1 + $0xa84] ss:$16 sps:$4 sm:$0xff]  }
 0x5d2   : > { %5503 = vmatprep.subr.bf16.mxu0 %v8085_v6  ;;  %5831 = vmatprep.subr.bf16.mxu1 %v8088_v20  ;;  %v8180_v6 = vld [vmem:[%s9493_s1 + $0xa8c] ss:$16 sps:$4 sm:$0xff]   ;;  %v8175_v20 = vld [vmem:[%s9493_s1 + $0xa80] ss:$16 sps:$4 sm:$0xff]  }
 0x5d5   : > { %5504 = vmatpush1.bf16.msra.mxu0 %v8083_v21  ;;  %5832 = vmatpush1.bf16.msra.mxu1 %v8086_v22  ;;  %v8178_v21 = vld [vmem:[%s9493_s1 + $0xa88] ss:$16 sps:$4 sm:$0xff]   ;;  %v8183_v22 = vld [vmem:[%s9493_s1 + $0xaa4] ss:$16 sps:$4 sm:$0xff]  }
 0x5d6   : > { %5505 = vmatprep.subr.bf16.mxu0 %v8091_v23  ;;  %5833 = vmatprep.subr.bf16.mxu1 %v8094_v24  ;;  %v8186_v23 = vld [vmem:[%s9493_s1 + $0xaac] ss:$16 sps:$4 sm:$0xff]   ;;  %v8181_v24 = vld [vmem:[%s9493_s1 + $0xaa0] ss:$16 sps:$4 sm:$0xff]  }
 0x5d9   : > { %5506 = vmatpush1.bf16.msra.mxu0 %v8089_v25  ;;  %5834 = vmatpush1.bf16.msra.mxu1 %v8092_v26  ;;  %v8184_v25 = vld [vmem:[%s9493_s1 + $0xaa8] ss:$16 sps:$4 sm:$0xff]   ;;  %v8189_v26 = vld [vmem:[%s9493_s1 + $0xac4] ss:$16 sps:$4 sm:$0xff]  }
 0x5da   : > { %5507 = vmatprep.subr.bf16.mxu0 %v8097_v27  ;;  %5835 = vmatprep.subr.bf16.mxu1 %v8100_v28  ;;  %v8192_v27 = vld [vmem:[%s9493_s1 + $0xacc] ss:$16 sps:$4 sm:$0xff]   ;;  %v8187_v28 = vld [vmem:[%s9493_s1 + $0xac0] ss:$16 sps:$4 sm:$0xff]  }
 0x5dd   : > { %5508 = vmatpush1.bf16.msra.mxu0 %v8095_v29  ;;  %5836 = vmatpush1.bf16.msra.mxu1 %v8098_v30  ;;  %v8190_v29 = vld [vmem:[%s9493_s1 + $0xac8] ss:$16 sps:$4 sm:$0xff]   ;;  %v8195_v30 = vld [vmem:[%s9493_s1 + $0xae4] ss:$16 sps:$4 sm:$0xff]  }
 0x5de   : > { %5509 = vmatprep.subr.bf16.mxu0 %v8103_v31  ;;  %5837 = vmatprep.subr.bf16.mxu1 %v8106_v32  ;;  %v8198_v31 = vld [vmem:[%s9493_s1 + $0xaec] ss:$16 sps:$4 sm:$0xff]   ;;  %v8193_v32 = vld [vmem:[%s9493_s1 + $0xae0] ss:$16 sps:$4 sm:$0xff]  }
 0x5e1   : > { %5510 = vmatpush1.bf16.msra.mxu0 %v8101_v33  ;;  %5838 = vmatpush1.bf16.msra.mxu1 %v8104_v34  ;;  %v8196_v33 = vld [vmem:[%s9493_s1 + $0xae8] ss:$16 sps:$4 sm:$0xff]   ;;  %v8201_v34 = vld [vmem:[%s9493_s1 + $0xb04] ss:$16 sps:$4 sm:$0xff]  }
 0x5e2   : > { %5511 = vmatprep.subr.bf16.mxu0 %v8109_v35  ;;  %5839 = vmatprep.subr.bf16.mxu1 %v8112_v36  ;;  %v8204_v35 = vld [vmem:[%s9493_s1 + $0xb0c] ss:$16 sps:$4 sm:$0xff]   ;;  %v8199_v36 = vld [vmem:[%s9493_s1 + $0xb00] ss:$16 sps:$4 sm:$0xff]  }
 0x5e5   : > { %5512 = vmatpush1.bf16.msra.mxu0 %v8107_v37  ;;  %5840 = vmatpush1.bf16.msra.mxu1 %v8110_v38  ;;  %v8202_v37 = vld [vmem:[%s9493_s1 + $0xb08] ss:$16 sps:$4 sm:$0xff]   ;;  %v8207_v38 = vld [vmem:[%s9493_s1 + $0xb24] ss:$16 sps:$4 sm:$0xff]  }
 0x5e6   : > { %5513 = vmatprep.subr.bf16.mxu0 %v8115_v39  ;;  %5841 = vmatprep.subr.bf16.mxu1 %v8118_v40  ;;  %v8210_v39 = vld [vmem:[%s9493_s1 + $0xb2c] ss:$16 sps:$4 sm:$0xff]   ;;  %v8205_v40 = vld [vmem:[%s9493_s1 + $0xb20] ss:$16 sps:$4 sm:$0xff]  }
 0x5e9   : > { %5514 = vmatpush1.bf16.msra.mxu0 %v8113_v41  ;;  %5842 = vmatpush1.bf16.msra.mxu1 %v8116_v42  ;;  %v8208_v41 = vld [vmem:[%s9493_s1 + $0xb28] ss:$16 sps:$4 sm:$0xff]   ;;  %v8213_v42 = vld [vmem:[%s9493_s1 + $0xb44] ss:$16 sps:$4 sm:$0xff]  }
 0x5ea   : > { %5515 = vmatprep.subr.bf16.mxu0 %v8121_v8  ;;  %5843 = vmatprep.subr.bf16.mxu1 %v8124_v3  ;;  %v8216_v8 = vld [vmem:[%s9493_s1 + $0xb4c] ss:$16 sps:$4 sm:$0xff]   ;;  %v8211_v3 = vld [vmem:[%s9493_s1 + $0xb40] ss:$16 sps:$4 sm:$0xff]  }
 0x5ed   : > { %5516 = vmatpush1.bf16.msra.mxu0 %v8119_v11  ;;  %5844 = vmatpush1.bf16.msra.mxu1 %v8122_v14  ;;  %v8214_v11 = vld [vmem:[%s9493_s1 + $0xb48] ss:$16 sps:$4 sm:$0xff]   ;;  %v8219_v14 = vld [vmem:[%s9493_s1 + $0xb64] ss:$16 sps:$4 sm:$0xff]  }
 0x5ee   : > { %5517 = vmatprep.subr.bf16.mxu0 %v8127_v43  ;;  %5845 = vmatprep.subr.bf16.mxu1 %v8130_v44  ;;  %v8222_v43 = vld [vmem:[%s9493_s1 + $0xb6c] ss:$16 sps:$4 sm:$0xff]   ;;  %v8217_v44 = vld [vmem:[%s9493_s1 + $0xb60] ss:$16 sps:$4 sm:$0xff]  }
 0x5f1   : > { %5518 = vmatpush1.bf16.msra.mxu0 %v8125_v45  ;;  %5846 = vmatpush1.bf16.msra.mxu1 %v8128_v46  ;;  %v8220_v45 = vld [vmem:[%s9493_s1 + $0xb68] ss:$16 sps:$4 sm:$0xff]   ;;  %v8225_v46 = vld [vmem:[%s9493_s1 + $0xb84] ss:$16 sps:$4 sm:$0xff]  }
 0x5f2   : > { %5519 = vmatprep.subr.bf16.mxu0 %v8133_v47  ;;  %5847 = vmatprep.subr.bf16.mxu1 %v8136_v48  ;;  %v8228_v47 = vld [vmem:[%s9493_s1 + $0xb8c] ss:$16 sps:$4 sm:$0xff]   ;;  %v8223_v48 = vld [vmem:[%s9493_s1 + $0xb80] ss:$16 sps:$4 sm:$0xff]  }
 0x5f5   : > { %5520 = vmatpush1.bf16.msra.mxu0 %v8131_v49  ;;  %5848 = vmatpush1.bf16.msra.mxu1 %v8134_v50  ;;  %v8226_v49 = vld [vmem:[%s9493_s1 + $0xb88] ss:$16 sps:$4 sm:$0xff]   ;;  %v8231_v50 = vld [vmem:[%s9493_s1 + $0xba4] ss:$16 sps:$4 sm:$0xff]  }
 0x5f6   : > { %5521 = vmatprep.subr.bf16.mxu0 %v8139_v51  ;;  %5849 = vmatprep.subr.bf16.mxu1 %v8142_v52  ;;  %v8234_v51 = vld [vmem:[%s9493_s1 + $0xbac] ss:$16 sps:$4 sm:$0xff]   ;;  %v8229_v52 = vld [vmem:[%s9493_s1 + $0xba0] ss:$16 sps:$4 sm:$0xff]  }
 0x5f9   : > { %5522 = vmatpush1.bf16.msra.mxu0 %v8137_v53  ;;  %5850 = vmatpush1.bf16.msra.mxu1 %v8140_v55  ;;  %v8232_v53 = vld [vmem:[%s9493_s1 + $0xba8] ss:$16 sps:$4 sm:$0xff]   ;;  %v8237_v55 = vld [vmem:[%s9493_s1 + $0xbc4] ss:$16 sps:$4 sm:$0xff]  }
 0x5fa   : > { %5523 = vmatprep.subr.bf16.mxu0 %v8145_v56  ;;  %5851 = vmatprep.subr.bf16.mxu1 %v8148_v58  ;;  %v8240_v56 = vld [vmem:[%s9493_s1 + $0xbcc] ss:$16 sps:$4 sm:$0xff]   ;;  %v8235_v58 = vld [vmem:[%s9493_s1 + $0xbc0] ss:$16 sps:$4 sm:$0xff]  }
 0x5fd   : > { %5524 = vmatpush1.bf16.msra.mxu0 %v8143_v59  ;;  %5852 = vmatpush1.bf16.msra.mxu1 %v8146_v61  ;;  %v8238_v59 = vld [vmem:[%s9493_s1 + $0xbc8] ss:$16 sps:$4 sm:$0xff]   ;;  %v8243_v61 = vld [vmem:[%s9493_s1 + $0xbe4] ss:$16 sps:$4 sm:$0xff]  }
 0x5fe   : > { %5534 = vmatprep.subr.bf16.mxu0 %v8153_v62  ;;  %5862 = vmatprep.subr.bf16.mxu1 %v8156_v57  ;;  %v8246_v62 = vld [vmem:[%s9493_s1 + $0xbec] ss:$16 sps:$4 sm:$0xff]   ;;  %v8241_v57 = vld [vmem:[%s9493_s1 + $0xbe0] ss:$16 sps:$4 sm:$0xff]  }
 0x600   : > { %5526 = vmatmul.mubr.bf16.vlgmr.msra.gmra.mrb[0].mxu0 %v6740_v1  ;;  %5854 = vmatmul.mubr.bf16.vlgmr.msra.gmra.mrb[0].mxu1 %v6740_v1  ;;  %v8244_v1 = vld [vmem:[%s9493_s1 + $0xbe8] ss:$16 sps:$4 sm:$0xff]  }
 0x601   : > { %5535 = vmatpush1.bf16.msra.mxu0 %v8151_v2  ;;  %5863 = vmatpush1.bf16.msra.mxu1 %v8154_v60  ;;  %v8251_v2 = vld [vmem:[%s9493_s1 + $0xc04] ss:$16 sps:$4 sm:$0xff]   ;;  %v8254_v60 = vld [vmem:[%s9493_s1 + $0xc0c] ss:$16 sps:$4 sm:$0xff]  }
 0x602   : > { %5536 = vmatprep.subr.bf16.mxu0 %v8159_v5  ;;  %5864 = vmatprep.subr.bf16.mxu1 %v8162_v7  ;;  %v6742_v5 = vcombine.low %v9897_v0, %v9897_v0  ;;  %v9969_v7 = vld [vmem:[#allocation2 + $0x30] sm:$0xff]  ;;  %v8255_v0 = vld [vmem:[%s9493_s1 + $0xc20] ss:$16 sps:$4 sm:$0xff]  }
 0x603   : > { %5566 = vmatprep.mubr.bf16.mxu0 %v6743_v9  ;;  %5894 = vmatprep.mubr.bf16.mxu1 %v6743_v9  ;;  %v8249_v9 = vld [vmem:[%s9493_s1 + $0xc00] ss:$16 sps:$4 sm:$0xff]  }
 0x605   : > { %5537 = vmatpush1.bf16.msra.mxu0 %v8157_v63  ;;  %5865 = vmatpush1.bf16.msra.mxu1 %v8160_v54  ;;  %v8252_v63 = vld [vmem:[%s9493_s1 + $0xc08] ss:$16 sps:$4 sm:$0xff]   ;;  %v8257_v54 = vld [vmem:[%s9493_s1 + $0xc24] ss:$16 sps:$4 sm:$0xff]  }
 0x606   : > { %5538 = vmatprep.subr.bf16.mxu0 %v8165_v10  ;;  %5866 = vmatprep.subr.bf16.mxu1 %v8168_v12  ;;  %v8260_v10 = vld [vmem:[%s9493_s1 + $0xc2c] ss:$16 sps:$4 sm:$0xff]   ;;  %v6745_v12 = vcombine.high %v9969_v7, %v9969_v7 }
 0x609   : > { %5539 = vmatpush1.bf16.msra.mxu0 %v8163_v13  ;;  %5867 = vmatpush1.bf16.msra.mxu1 %v8166_v15  ;;  %v8258_v13 = vld [vmem:[%s9493_s1 + $0xc28] ss:$16 sps:$4 sm:$0xff]   ;;  %v8263_v15 = vld [vmem:[%s9493_s1 + $0xc44] ss:$16 sps:$4 sm:$0xff]  }
 0x60a   : > { %5540 = vmatprep.subr.bf16.mxu0 %v8171_v16  ;;  %5868 = vmatprep.subr.bf16.mxu1 %v8174_v17  ;;  %v8266_v16 = vld [vmem:[%s9493_s1 + $0xc4c] ss:$16 sps:$4 sm:$0xff]   ;;  %v8261_v17 = vld [vmem:[%s9493_s1 + $0xc40] ss:$16 sps:$4 sm:$0xff]  }
 0x60d   : > { %5541 = vmatpush1.bf16.msra.mxu0 %v8169_v4  ;;  %5869 = vmatpush1.bf16.msra.mxu1 %v8172_v18  ;;  %v8264_v4 = vld [vmem:[%s9493_s1 + $0xc48] ss:$16 sps:$4 sm:$0xff]   ;;  %v8269_v18 = vld [vmem:[%s9493_s1 + $0xc64] ss:$16 sps:$4 sm:$0xff]  }
 0x60e   : > { %5542 = vmatprep.subr.bf16.mxu0 %v8177_v19  ;;  %5870 = vmatprep.subr.bf16.mxu1 %v8180_v6  ;;  %v8272_v19 = vld [vmem:[%s9493_s1 + $0xc6c] ss:$16 sps:$4 sm:$0xff]   ;;  %v8267_v6 = vld [vmem:[%s9493_s1 + $0xc60] ss:$16 sps:$4 sm:$0xff]  }
 0x611   : > { %5543 = vmatpush1.bf16.msra.mxu0 %v8175_v20  ;;  %5871 = vmatpush1.bf16.msra.mxu1 %v8178_v21  ;;  %v8270_v20 = vld [vmem:[%s9493_s1 + $0xc68] ss:$16 sps:$4 sm:$0xff]   ;;  %v8275_v21 = vld [vmem:[%s9493_s1 + $0xc84] ss:$16 sps:$4 sm:$0xff]  }
 0x612   : > { %5544 = vmatprep.subr.bf16.mxu0 %v8183_v22  ;;  %5872 = vmatprep.subr.bf16.mxu1 %v8186_v23  ;;  %v8278_v22 = vld [vmem:[%s9493_s1 + $0xc8c] ss:$16 sps:$4 sm:$0xff]   ;;  %v8273_v23 = vld [vmem:[%s9493_s1 + $0xc80] ss:$16 sps:$4 sm:$0xff]  }
 0x615   : > { %5545 = vmatpush1.bf16.msra.mxu0 %v8181_v24  ;;  %5873 = vmatpush1.bf16.msra.mxu1 %v8184_v25  ;;  %v8276_v24 = vld [vmem:[%s9493_s1 + $0xc88] ss:$16 sps:$4 sm:$0xff]   ;;  %v8281_v25 = vld [vmem:[%s9493_s1 + $0xca4] ss:$16 sps:$4 sm:$0xff]  }
 0x616   : > { %5546 = vmatprep.subr.bf16.mxu0 %v8189_v26  ;;  %5874 = vmatprep.subr.bf16.mxu1 %v8192_v27  ;;  %v8284_v26 = vld [vmem:[%s9493_s1 + $0xcac] ss:$16 sps:$4 sm:$0xff]   ;;  %v8279_v27 = vld [vmem:[%s9493_s1 + $0xca0] ss:$16 sps:$4 sm:$0xff]  }
 0x619   : > { %5547 = vmatpush1.bf16.msra.mxu0 %v8187_v28  ;;  %5875 = vmatpush1.bf16.msra.mxu1 %v8190_v29  ;;  %v8282_v28 = vld [vmem:[%s9493_s1 + $0xca8] ss:$16 sps:$4 sm:$0xff]   ;;  %v8287_v29 = vld [vmem:[%s9493_s1 + $0xcc4] ss:$16 sps:$4 sm:$0xff]  }
 0x61a   : > { %5548 = vmatprep.subr.bf16.mxu0 %v8195_v30  ;;  %5876 = vmatprep.subr.bf16.mxu1 %v8198_v31  ;;  %v8290_v30 = vld [vmem:[%s9493_s1 + $0xccc] ss:$16 sps:$4 sm:$0xff]   ;;  %v8285_v31 = vld [vmem:[%s9493_s1 + $0xcc0] ss:$16 sps:$4 sm:$0xff]  }
 0x61d   : > { %5549 = vmatpush1.bf16.msra.mxu0 %v8193_v32  ;;  %5877 = vmatpush1.bf16.msra.mxu1 %v8196_v33  ;;  %v8288_v32 = vld [vmem:[%s9493_s1 + $0xcc8] ss:$16 sps:$4 sm:$0xff]   ;;  %v8293_v33 = vld [vmem:[%s9493_s1 + $0xce4] ss:$16 sps:$4 sm:$0xff]  }
 0x61e   : > { %5550 = vmatprep.subr.bf16.mxu0 %v8201_v34  ;;  %5878 = vmatprep.subr.bf16.mxu1 %v8204_v35  ;;  %v8296_v34 = vld [vmem:[%s9493_s1 + $0xcec] ss:$16 sps:$4 sm:$0xff]   ;;  %v8291_v35 = vld [vmem:[%s9493_s1 + $0xce0] ss:$16 sps:$4 sm:$0xff]  }
 0x621   : > { %5551 = vmatpush1.bf16.msra.mxu0 %v8199_v36  ;;  %5879 = vmatpush1.bf16.msra.mxu1 %v8202_v37  ;;  %v8294_v36 = vld [vmem:[%s9493_s1 + $0xce8] ss:$16 sps:$4 sm:$0xff]   ;;  %v8299_v37 = vld [vmem:[%s9493_s1 + $0xd04] ss:$16 sps:$4 sm:$0xff]  }
 0x622   : > { %5552 = vmatprep.subr.bf16.mxu0 %v8207_v38  ;;  %5880 = vmatprep.subr.bf16.mxu1 %v8210_v39  ;;  %v8302_v38 = vld [vmem:[%s9493_s1 + $0xd0c] ss:$16 sps:$4 sm:$0xff]   ;;  %v8297_v39 = vld [vmem:[%s9493_s1 + $0xd00] ss:$16 sps:$4 sm:$0xff]  }
 0x625   : > { %5553 = vmatpush1.bf16.msra.mxu0 %v8205_v40  ;;  %5881 = vmatpush1.bf16.msra.mxu1 %v8208_v41  ;;  %v8300_v40 = vld [vmem:[%s9493_s1 + $0xd08] ss:$16 sps:$4 sm:$0xff]   ;;  %v8305_v41 = vld [vmem:[%s9493_s1 + $0xd24] ss:$16 sps:$4 sm:$0xff]  }
 0x626   : > { %5554 = vmatprep.subr.bf16.mxu0 %v8213_v42  ;;  %5882 = vmatprep.subr.bf16.mxu1 %v8216_v8  ;;  %v8308_v42 = vld [vmem:[%s9493_s1 + $0xd2c] ss:$16 sps:$4 sm:$0xff]   ;;  %v8303_v8 = vld [vmem:[%s9493_s1 + $0xd20] ss:$16 sps:$4 sm:$0xff]  }
 0x629   : > { %5555 = vmatpush1.bf16.msra.mxu0 %v8211_v3  ;;  %5883 = vmatpush1.bf16.msra.mxu1 %v8214_v11  ;;  %v8306_v3 = vld [vmem:[%s9493_s1 + $0xd28] ss:$16 sps:$4 sm:$0xff]   ;;  %v8311_v11 = vld [vmem:[%s9493_s1 + $0xd44] ss:$16 sps:$4 sm:$0xff]  }
 0x62a   : > { %5556 = vmatprep.subr.bf16.mxu0 %v8219_v14  ;;  %5884 = vmatprep.subr.bf16.mxu1 %v8222_v43  ;;  %v8314_v14 = vld [vmem:[%s9493_s1 + $0xd4c] ss:$16 sps:$4 sm:$0xff]   ;;  %v8309_v43 = vld [vmem:[%s9493_s1 + $0xd40] ss:$16 sps:$4 sm:$0xff]  }
 0x62d   : > { %5557 = vmatpush1.bf16.msra.mxu0 %v8217_v44  ;;  %5885 = vmatpush1.bf16.msra.mxu1 %v8220_v45  ;;  %v8312_v44 = vld [vmem:[%s9493_s1 + $0xd48] ss:$16 sps:$4 sm:$0xff]   ;;  %v8317_v45 = vld [vmem:[%s9493_s1 + $0xd64] ss:$16 sps:$4 sm:$0xff]  }
 0x62e   : > { %5558 = vmatprep.subr.bf16.mxu0 %v8225_v46  ;;  %5886 = vmatprep.subr.bf16.mxu1 %v8228_v47  ;;  %v8320_v46 = vld [vmem:[%s9493_s1 + $0xd6c] ss:$16 sps:$4 sm:$0xff]   ;;  %v8315_v47 = vld [vmem:[%s9493_s1 + $0xd60] ss:$16 sps:$4 sm:$0xff]  }
 0x631   : > { %5559 = vmatpush1.bf16.msra.mxu0 %v8223_v48  ;;  %5887 = vmatpush1.bf16.msra.mxu1 %v8226_v49  ;;  %v8318_v48 = vld [vmem:[%s9493_s1 + $0xd68] ss:$16 sps:$4 sm:$0xff]   ;;  %v8323_v49 = vld [vmem:[%s9493_s1 + $0xd84] ss:$16 sps:$4 sm:$0xff]  }
 0x632   : > { %5560 = vmatprep.subr.bf16.mxu0 %v8231_v50  ;;  %5888 = vmatprep.subr.bf16.mxu1 %v8234_v51  ;;  %v8326_v50 = vld [vmem:[%s9493_s1 + $0xd8c] ss:$16 sps:$4 sm:$0xff]   ;;  %v8321_v51 = vld [vmem:[%s9493_s1 + $0xd80] ss:$16 sps:$4 sm:$0xff]  }
 0x635   : > { %5561 = vmatpush1.bf16.msra.mxu0 %v8229_v52  ;;  %5889 = vmatpush1.bf16.msra.mxu1 %v8232_v53  ;;  %v8324_v52 = vld [vmem:[%s9493_s1 + $0xd88] ss:$16 sps:$4 sm:$0xff]   ;;  %v8329_v53 = vld [vmem:[%s9493_s1 + $0xda4] ss:$16 sps:$4 sm:$0xff]  }
 0x636   : > { %5562 = vmatprep.subr.bf16.mxu0 %v8237_v55  ;;  %5890 = vmatprep.subr.bf16.mxu1 %v8240_v56  ;;  %v8332_v55 = vld [vmem:[%s9493_s1 + $0xdac] ss:$16 sps:$4 sm:$0xff]   ;;  %v8327_v56 = vld [vmem:[%s9493_s1 + $0xda0] ss:$16 sps:$4 sm:$0xff]  }
 0x639   : > { %5563 = vmatpush1.bf16.msra.mxu0 %v8235_v58  ;;  %5891 = vmatpush1.bf16.msra.mxu1 %v8238_v59  ;;  %v8330_v58 = vld [vmem:[%s9493_s1 + $0xda8] ss:$16 sps:$4 sm:$0xff]   ;;  %v8335_v59 = vld [vmem:[%s9493_s1 + $0xdc4] ss:$16 sps:$4 sm:$0xff]  }
 0x63a   : > { %5564 = vmatprep.subr.bf16.mxu0 %v8243_v61  ;;  %5892 = vmatprep.subr.bf16.mxu1 %v8246_v62  ;;  %v8338_v61 = vld [vmem:[%s9493_s1 + $0xdcc] ss:$16 sps:$4 sm:$0xff]   ;;  %v8333_v62 = vld [vmem:[%s9493_s1 + $0xdc0] ss:$16 sps:$4 sm:$0xff]  }
 0x63d   : > { %5565 = vmatpush1.bf16.msra.mxu0 %v8241_v57  ;;  %5893 = vmatpush1.bf16.msra.mxu1 %v8244_v1  ;;  %v8336_v57 = vld [vmem:[%s9493_s1 + $0xdc8] ss:$16 sps:$4 sm:$0xff]   ;;  %v8341_v1 = vld [vmem:[%s9493_s1 + $0xde4] ss:$16 sps:$4 sm:$0xff]  }
 0x63e   : > { %5575 = vmatprep.subr.bf16.mxu0 %v8251_v2  ;;  %5903 = vmatprep.subr.bf16.mxu1 %v8254_v60  ;;  %v8344_v2 = vld [vmem:[%s9493_s1 + $0xdec] ss:$16 sps:$4 sm:$0xff]   ;;  %v8339_v60 = vld [vmem:[%s9493_s1 + $0xde0] ss:$16 sps:$4 sm:$0xff]  }
 0x640   : > { %5567 = vmatmul.mubr.bf16.vlgmr.msra.gmra.mrb[0].mxu0 %v6742_v5  ;;  %5895 = vmatmul.mubr.bf16.vlgmr.msra.gmra.mrb[0].mxu1 %v6742_v5  ;;  %v8342_v5 = vld [vmem:[%s9493_s1 + $0xde8] ss:$16 sps:$4 sm:$0xff]  }
 0x641   : > { %5576 = vmatpush1.bf16.msra.mxu0 %v8249_v9  ;;  %5904 = vmatpush1.bf16.msra.mxu1 %v8252_v63  ;;  %v8349_v9 = vld [vmem:[%s9493_s1 + $0xe04] ss:$16 sps:$4 sm:$0xff]   ;;  %v8352_v63 = vld [vmem:[%s9493_s1 + $0xe0c] ss:$16 sps:$4 sm:$0xff]  }
 0x642   : > { %5577 = vmatprep.subr.bf16.mxu0 %v8257_v54  ;;  %5905 = vmatprep.subr.bf16.mxu1 %v8260_v10  ;;  %v6744_v54 = vcombine.low %v9969_v7, %v9969_v7  ;;  %v10039_v10 = vld [vmem:[#allocation2 + $0x38] sm:$0xff] }
 0x643   : > { %5607 = vmatprep.mubr.bf16.mxu0 %v6745_v12  ;;  %5935 = vmatprep.mubr.bf16.mxu1 %v6745_v12  ;;  %v8347_v12 = vld [vmem:[%s9493_s1 + $0xe00] ss:$16 sps:$4 sm:$0xff]  }
 0x644   : > { %v8353_v7 = vld [vmem:[%s9493_s1 + $0xe20] ss:$16 sps:$4 sm:$0xff]  }
 0x645   : > { %5578 = vmatpush1.bf16.msra.mxu0 %v8255_v0  ;;  %5906 = vmatpush1.bf16.msra.mxu1 %v8258_v13  ;;  %v8350_v0 = vld [vmem:[%s9493_s1 + $0xe08] ss:$16 sps:$4 sm:$0xff]   ;;  %v8355_v13 = vld [vmem:[%s9493_s1 + $0xe24] ss:$16 sps:$4 sm:$0xff]  }
 0x646   : > { %5579 = vmatprep.subr.bf16.mxu0 %v8263_v15  ;;  %5907 = vmatprep.subr.bf16.mxu1 %v8266_v16  ;;  %v8358_v15 = vld [vmem:[%s9493_s1 + $0xe2c] ss:$16 sps:$4 sm:$0xff]   ;;  %v6747_v16 = vcombine.high %v10039_v10, %v10039_v10 }
 0x649   : > { %5580 = vmatpush1.bf16.msra.mxu0 %v8261_v17  ;;  %5908 = vmatpush1.bf16.msra.mxu1 %v8264_v4  ;;  %v8356_v17 = vld [vmem:[%s9493_s1 + $0xe28] ss:$16 sps:$4 sm:$0xff]   ;;  %v8361_v4 = vld [vmem:[%s9493_s1 + $0xe44] ss:$16 sps:$4 sm:$0xff]  }
 0x64a   : > { %5581 = vmatprep.subr.bf16.mxu0 %v8269_v18  ;;  %5909 = vmatprep.subr.bf16.mxu1 %v8272_v19  ;;  %v8364_v18 = vld [vmem:[%s9493_s1 + $0xe4c] ss:$16 sps:$4 sm:$0xff]   ;;  %v8359_v19 = vld [vmem:[%s9493_s1 + $0xe40] ss:$16 sps:$4 sm:$0xff]  }
 0x64d   : > { %5582 = vmatpush1.bf16.msra.mxu0 %v8267_v6  ;;  %5910 = vmatpush1.bf16.msra.mxu1 %v8270_v20  ;;  %v8362_v6 = vld [vmem:[%s9493_s1 + $0xe48] ss:$16 sps:$4 sm:$0xff]   ;;  %v8367_v20 = vld [vmem:[%s9493_s1 + $0xe64] ss:$16 sps:$4 sm:$0xff]  }
 0x64e   : > { %5583 = vmatprep.subr.bf16.mxu0 %v8275_v21  ;;  %5911 = vmatprep.subr.bf16.mxu1 %v8278_v22  ;;  %v8370_v21 = vld [vmem:[%s9493_s1 + $0xe6c] ss:$16 sps:$4 sm:$0xff]   ;;  %v8365_v22 = vld [vmem:[%s9493_s1 + $0xe60] ss:$16 sps:$4 sm:$0xff]  }
 0x651   : > { %5584 = vmatpush1.bf16.msra.mxu0 %v8273_v23  ;;  %5912 = vmatpush1.bf16.msra.mxu1 %v8276_v24  ;;  %v8368_v23 = vld [vmem:[%s9493_s1 + $0xe68] ss:$16 sps:$4 sm:$0xff]   ;;  %v8373_v24 = vld [vmem:[%s9493_s1 + $0xe84] ss:$16 sps:$4 sm:$0xff]  }
 0x652   : > { %5585 = vmatprep.subr.bf16.mxu0 %v8281_v25  ;;  %5913 = vmatprep.subr.bf16.mxu1 %v8284_v26  ;;  %v8376_v25 = vld [vmem:[%s9493_s1 + $0xe8c] ss:$16 sps:$4 sm:$0xff]   ;;  %v8371_v26 = vld [vmem:[%s9493_s1 + $0xe80] ss:$16 sps:$4 sm:$0xff]  }
 0x655   : > { %5586 = vmatpush1.bf16.msra.mxu0 %v8279_v27  ;;  %5914 = vmatpush1.bf16.msra.mxu1 %v8282_v28  ;;  %v8374_v27 = vld [vmem:[%s9493_s1 + $0xe88] ss:$16 sps:$4 sm:$0xff]   ;;  %v8379_v28 = vld [vmem:[%s9493_s1 + $0xea4] ss:$16 sps:$4 sm:$0xff]  }
 0x656   : > { %5587 = vmatprep.subr.bf16.mxu0 %v8287_v29  ;;  %5915 = vmatprep.subr.bf16.mxu1 %v8290_v30  ;;  %v8382_v29 = vld [vmem:[%s9493_s1 + $0xeac] ss:$16 sps:$4 sm:$0xff]   ;;  %v8377_v30 = vld [vmem:[%s9493_s1 + $0xea0] ss:$16 sps:$4 sm:$0xff]  }
 0x659   : > { %5588 = vmatpush1.bf16.msra.mxu0 %v8285_v31  ;;  %5916 = vmatpush1.bf16.msra.mxu1 %v8288_v32  ;;  %v8380_v31 = vld [vmem:[%s9493_s1 + $0xea8] ss:$16 sps:$4 sm:$0xff]   ;;  %v8385_v32 = vld [vmem:[%s9493_s1 + $0xec4] ss:$16 sps:$4 sm:$0xff]  }
 0x65a   : > { %5589 = vmatprep.subr.bf16.mxu0 %v8293_v33  ;;  %5917 = vmatprep.subr.bf16.mxu1 %v8296_v34  ;;  %v8388_v33 = vld [vmem:[%s9493_s1 + $0xecc] ss:$16 sps:$4 sm:$0xff]   ;;  %v8383_v34 = vld [vmem:[%s9493_s1 + $0xec0] ss:$16 sps:$4 sm:$0xff]  }
 0x65d   : > { %5590 = vmatpush1.bf16.msra.mxu0 %v8291_v35  ;;  %5918 = vmatpush1.bf16.msra.mxu1 %v8294_v36  ;;  %v8386_v35 = vld [vmem:[%s9493_s1 + $0xec8] ss:$16 sps:$4 sm:$0xff]   ;;  %v8391_v36 = vld [vmem:[%s9493_s1 + $0xee4] ss:$16 sps:$4 sm:$0xff]  }
 0x65e   : > { %5591 = vmatprep.subr.bf16.mxu0 %v8299_v37  ;;  %5919 = vmatprep.subr.bf16.mxu1 %v8302_v38  ;;  %v8394_v37 = vld [vmem:[%s9493_s1 + $0xeec] ss:$16 sps:$4 sm:$0xff]   ;;  %v8389_v38 = vld [vmem:[%s9493_s1 + $0xee0] ss:$16 sps:$4 sm:$0xff]  }
 0x661   : > { %5592 = vmatpush1.bf16.msra.mxu0 %v8297_v39  ;;  %5920 = vmatpush1.bf16.msra.mxu1 %v8300_v40  ;;  %v8392_v39 = vld [vmem:[%s9493_s1 + $0xee8] ss:$16 sps:$4 sm:$0xff]   ;;  %v8397_v40 = vld [vmem:[%s9493_s1 + $0xf04] ss:$16 sps:$4 sm:$0xff]  }
 0x662   : > { %5593 = vmatprep.subr.bf16.mxu0 %v8305_v41  ;;  %5921 = vmatprep.subr.bf16.mxu1 %v8308_v42  ;;  %v8400_v41 = vld [vmem:[%s9493_s1 + $0xf0c] ss:$16 sps:$4 sm:$0xff]   ;;  %v8395_v42 = vld [vmem:[%s9493_s1 + $0xf00] ss:$16 sps:$4 sm:$0xff]  }
 0x665   : > { %5594 = vmatpush1.bf16.msra.mxu0 %v8303_v8  ;;  %5922 = vmatpush1.bf16.msra.mxu1 %v8306_v3  ;;  %v8398_v8 = vld [vmem:[%s9493_s1 + $0xf08] ss:$16 sps:$4 sm:$0xff]   ;;  %v8403_v3 = vld [vmem:[%s9493_s1 + $0xf24] ss:$16 sps:$4 sm:$0xff]  }
 0x666   : > { %5595 = vmatprep.subr.bf16.mxu0 %v8311_v11  ;;  %5923 = vmatprep.subr.bf16.mxu1 %v8314_v14  ;;  %v8406_v11 = vld [vmem:[%s9493_s1 + $0xf2c] ss:$16 sps:$4 sm:$0xff]   ;;  %v8401_v14 = vld [vmem:[%s9493_s1 + $0xf20] ss:$16 sps:$4 sm:$0xff]  }
 0x669   : > { %5596 = vmatpush1.bf16.msra.mxu0 %v8309_v43  ;;  %5924 = vmatpush1.bf16.msra.mxu1 %v8312_v44  ;;  %v8404_v43 = vld [vmem:[%s9493_s1 + $0xf28] ss:$16 sps:$4 sm:$0xff]   ;;  %v8409_v44 = vld [vmem:[%s9493_s1 + $0xf44] ss:$16 sps:$4 sm:$0xff]  }
 0x66a   : > { %5597 = vmatprep.subr.bf16.mxu0 %v8317_v45  ;;  %5925 = vmatprep.subr.bf16.mxu1 %v8320_v46  ;;  %v8412_v45 = vld [vmem:[%s9493_s1 + $0xf4c] ss:$16 sps:$4 sm:$0xff]   ;;  %v8407_v46 = vld [vmem:[%s9493_s1 + $0xf40] ss:$16 sps:$4 sm:$0xff]  }
 0x66d   : > { %5598 = vmatpush1.bf16.msra.mxu0 %v8315_v47  ;;  %5926 = vmatpush1.bf16.msra.mxu1 %v8318_v48  ;;  %v8410_v47 = vld [vmem:[%s9493_s1 + $0xf48] ss:$16 sps:$4 sm:$0xff]   ;;  %v8415_v48 = vld [vmem:[%s9493_s1 + $0xf64] ss:$16 sps:$4 sm:$0xff]  }
 0x66e   : > { %5599 = vmatprep.subr.bf16.mxu0 %v8323_v49  ;;  %5927 = vmatprep.subr.bf16.mxu1 %v8326_v50  ;;  %v8418_v49 = vld [vmem:[%s9493_s1 + $0xf6c] ss:$16 sps:$4 sm:$0xff]   ;;  %v8413_v50 = vld [vmem:[%s9493_s1 + $0xf60] ss:$16 sps:$4 sm:$0xff]  }
 0x671   : > { %5600 = vmatpush1.bf16.msra.mxu0 %v8321_v51  ;;  %5928 = vmatpush1.bf16.msra.mxu1 %v8324_v52  ;;  %v8416_v51 = vld [vmem:[%s9493_s1 + $0xf68] ss:$16 sps:$4 sm:$0xff]   ;;  %v8421_v52 = vld [vmem:[%s9493_s1 + $0xf84] ss:$16 sps:$4 sm:$0xff]  }
 0x672   : > { %5601 = vmatprep.subr.bf16.mxu0 %v8329_v53  ;;  %5929 = vmatprep.subr.bf16.mxu1 %v8332_v55  ;;  %v8424_v53 = vld [vmem:[%s9493_s1 + $0xf8c] ss:$16 sps:$4 sm:$0xff]   ;;  %v8419_v55 = vld [vmem:[%s9493_s1 + $0xf80] ss:$16 sps:$4 sm:$0xff]  }
 0x675   : > { %5602 = vmatpush1.bf16.msra.mxu0 %v8327_v56  ;;  %5930 = vmatpush1.bf16.msra.mxu1 %v8330_v58  ;;  %v8422_v56 = vld [vmem:[%s9493_s1 + $0xf88] ss:$16 sps:$4 sm:$0xff]   ;;  %v8427_v58 = vld [vmem:[%s9493_s1 + $0xfa4] ss:$16 sps:$4 sm:$0xff]  }
 0x676   : > { %5603 = vmatprep.subr.bf16.mxu0 %v8335_v59  ;;  %5931 = vmatprep.subr.bf16.mxu1 %v8338_v61  ;;  %v8430_v59 = vld [vmem:[%s9493_s1 + $0xfac] ss:$16 sps:$4 sm:$0xff]   ;;  %v8425_v61 = vld [vmem:[%s9493_s1 + $0xfa0] ss:$16 sps:$4 sm:$0xff]  }
 0x679   : > { %5604 = vmatpush1.bf16.msra.mxu0 %v8333_v62  ;;  %5932 = vmatpush1.bf16.msra.mxu1 %v8336_v57  ;;  %v8428_v62 = vld [vmem:[%s9493_s1 + $0xfa8] ss:$16 sps:$4 sm:$0xff]   ;;  %v8433_v57 = vld [vmem:[%s9493_s1 + $0xfc4] ss:$16 sps:$4 sm:$0xff]  }
 0x67a   : > { %5605 = vmatprep.subr.bf16.mxu0 %v8341_v1  ;;  %5933 = vmatprep.subr.bf16.mxu1 %v8344_v2  ;;  %v8436_v1 = vld [vmem:[%s9493_s1 + $0xfcc] ss:$16 sps:$4 sm:$0xff]   ;;  %v8431_v2 = vld [vmem:[%s9493_s1 + $0xfc0] ss:$16 sps:$4 sm:$0xff]  }
 0x67d   : > { %5606 = vmatpush1.bf16.msra.mxu0 %v8339_v60  ;;  %5934 = vmatpush1.bf16.msra.mxu1 %v8342_v5  ;;  %v8434_v60 = vld [vmem:[%s9493_s1 + $0xfc8] ss:$16 sps:$4 sm:$0xff]   ;;  %v8439_v5 = vld [vmem:[%s9493_s1 + $0xfe4] ss:$16 sps:$4 sm:$0xff]  }
 0x67e   : > { %5616 = vmatprep.subr.bf16.mxu0 %v8349_v9  ;;  %5944 = vmatprep.subr.bf16.mxu1 %v8352_v63  ;;  %v8442_v9 = vld [vmem:[%s9493_s1 + $0xfec] ss:$16 sps:$4 sm:$0xff]   ;;  %v8437_v63 = vld [vmem:[%s9493_s1 + $0xfe0] ss:$16 sps:$4 sm:$0xff]  }
 0x680   : > { %5608 = vmatmul.mubr.bf16.vlgmr.msra.gmra.mrb[0].mxu0 %v6744_v54  ;;  %5936 = vmatmul.mubr.bf16.vlgmr.msra.gmra.mrb[0].mxu1 %v6744_v54  ;;  %v8440_v54 = vld [vmem:[%s9493_s1 + $0xfe8] ss:$16 sps:$4 sm:$0xff]   ;;  %s10434_s1 = sld [smem:[#allocation50_spill]] }
 0x681   : > { %5617 = vmatpush1.bf16.msra.mxu0 %v8347_v12  ;;  %5945 = vmatpush1.bf16.msra.mxu1 %v8350_v0  ;;  %v6746_v12 = vcombine.low %v10039_v10, %v10039_v10  ;;  %v2693_v0 = vlaneseq  ;;  %v8961_v10 = vmov 1934713408  }
 0x682   : > { %5618 = vmatprep.subr.bf16.mxu0 %v8355_v13  ;;  %5946 = vmatprep.subr.bf16.mxu1 %v8358_v15 }
 0x683   : > { %5648 = vmatprep.mubr.bf16.mxu0 %v6747_v16  ;;  %5976 = vmatprep.mubr.bf16.mxu1 %v6747_v16  ;;  %v2694_v13 = vshrl.u32 %v2693_v0, 7 }
 0x685   : > { %5619 = vmatpush1.bf16.msra.mxu0 %v8353_v7  ;;  %5947 = vmatpush1.bf16.msra.mxu1 %v8356_v17  ;;  %v2695_v15 = vsub.s32 0, %v2694_v13  ;;  %v2703_v16 = vsub.s32 2, %v2694_v13  ;;  %v8960_v7 = vmov 1983009808  }
 0x686   : > { %5620 = vmatprep.subr.bf16.mxu0 %v8361_v4  ;;  %5948 = vmatprep.subr.bf16.mxu1 %v8364_v18  ;;  %v5988_v17 = vunpack.c.l.s4 %v8960_v7  ;;  %v2691_v4 = vld [vmem:[%s541_s4] sm:$0xf]  ;;  %v2699_v18 = vsub.s32 1, %v2694_v13  ;;  %s10238_s5 = scalar_lea.hbm %s10434_s1, %s7265_s10  ;;  %s6278_s4 = scalar_lea.sflag [#allocation5], %s595_s8 }
 0x689   : > { %5621 = vmatpush1.bf16.msra.mxu0 %v8359_v19  ;;  %5949 = vmatpush1.bf16.msra.mxu1 %v8362_v6  ;;  %v2707_v19 = vsub.s32 3, %v2694_v13  ;;  %v2696_v6 = vrot.slane %v2691_v4, %v2695_v15 }
 0x68a   : > { %5622 = vmatprep.subr.bf16.mxu0 %v8367_v20  ;;  %5950 = vmatprep.subr.bf16.mxu1 %v8370_v21  ;;  %v2704_v20 = vrot.slane %v2691_v4, %v2703_v16  ;;  %v5989_v21 = vunpack.c.0.s8 %v5988_v17 }
 0x68d   : > { %5623 = vmatpush1.bf16.msra.mxu0 %v8365_v22  ;;  %5951 = vmatpush1.bf16.msra.mxu1 %v8368_v23  ;;  %v2700_v22 = vrot.slane %v2691_v4, %v2699_v18  ;;  %v2708_v23 = vrot.slane %v2691_v4, %v2707_v19 }
 0x68e   : > { %5624 = vmatprep.subr.bf16.mxu0 %v8373_v24  ;;  %5952 = vmatprep.subr.bf16.mxu1 %v8376_v25  ;;  %v6020_v24 = vunpack.c.l.s4 %v8961_v10 }
 0x691   : > { %5625 = vmatpush1.bf16.msra.mxu0 %v8371_v26  ;;  %5953 = vmatpush1.bf16.msra.mxu1 %v8374_v27 }
 0x692   : > { %5626 = vmatprep.subr.bf16.mxu0 %v8379_v28  ;;  %5954 = vmatprep.subr.bf16.mxu1 %v8382_v29  ;;  %v10109_v29 = vsub.s32 %v5989_v21, %v2694_v13 }
 0x695   : > { %5627 = vmatpush1.bf16.msra.mxu0 %v8377_v30  ;;  %5955 = vmatpush1.bf16.msra.mxu1 %v8380_v31 }
 0x696   : > { %5628 = vmatprep.subr.bf16.mxu0 %v8385_v32  ;;  %5956 = vmatprep.subr.bf16.mxu1 %v8388_v33 }
 0x699   : > { %5629 = vmatpush1.bf16.msra.mxu0 %v8383_v34  ;;  %5957 = vmatpush1.bf16.msra.mxu1 %v8386_v35 }
 0x69a   : > { %5630 = vmatprep.subr.bf16.mxu0 %v8391_v36  ;;  %5958 = vmatprep.subr.bf16.mxu1 %v8394_v37  ;;  %v6021_v36 = vunpack.c.0.s8 %v6020_v24 }
 0x69d   : > { %5631 = vmatpush1.bf16.msra.mxu0 %v8389_v38  ;;  %5959 = vmatpush1.bf16.msra.mxu1 %v8392_v39 }
 0x69e   : > { %5632 = vmatprep.subr.bf16.mxu0 %v8397_v40  ;;  %5960 = vmatprep.subr.bf16.mxu1 %v8400_v41 }
 0x6a1   : > { %5633 = vmatpush1.bf16.msra.mxu0 %v8395_v42  ;;  %5961 = vmatpush1.bf16.msra.mxu1 %v8398_v8 }
 0x6a2   : > { %5634 = vmatprep.subr.bf16.mxu0 %v8403_v3  ;;  %5962 = vmatprep.subr.bf16.mxu1 %v8406_v11 }
 0x6a5   : > { %5635 = vmatpush1.bf16.msra.mxu0 %v8401_v14  ;;  %5963 = vmatpush1.bf16.msra.mxu1 %v8404_v43  ;;  %v10115_v43 = vsub.s32 %v6021_v36, %v2694_v13 }
 0x6a6   : > { %5636 = vmatprep.subr.bf16.mxu0 %v8409_v44  ;;  %5964 = vmatprep.subr.bf16.mxu1 %v8412_v45 }
 0x6a9   : > { %5637 = vmatpush1.bf16.msra.mxu0 %v8407_v46  ;;  %5965 = vmatpush1.bf16.msra.mxu1 %v8410_v47 }
 0x6aa   : > { %5638 = vmatprep.subr.bf16.mxu0 %v8415_v48  ;;  %5966 = vmatprep.subr.bf16.mxu1 %v8418_v49 }
 0x6ad   : > { %5639 = vmatpush1.bf16.msra.mxu0 %v8413_v50  ;;  %5967 = vmatpush1.bf16.msra.mxu1 %v8416_v51 }
 0x6ae   : > { %5640 = vmatprep.subr.bf16.mxu0 %v8421_v52  ;;  %5968 = vmatprep.subr.bf16.mxu1 %v8424_v53  ;;  %v8962_v52 = vmov 0.0  }
 0x6b1   : > { %5641 = vmatpush1.bf16.msra.mxu0 %v8419_v55  ;;  %5969 = vmatpush1.bf16.msra.mxu1 %v8422_v56 }
 0x6b2   : > { %5642 = vmatprep.subr.bf16.mxu0 %v8427_v58  ;;  %5970 = vmatprep.subr.bf16.mxu1 %v8430_v59 }
 0x6b5   : > { %5643 = vmatpush1.bf16.msra.mxu0 %v8425_v61  ;;  %5971 = vmatpush1.bf16.msra.mxu1 %v8428_v62 }
 0x6b6   : > { %5644 = vmatprep.subr.bf16.mxu0 %v8433_v57  ;;  %5972 = vmatprep.subr.bf16.mxu1 %v8436_v1 }
 0x6b9   : > { %5645 = vmatpush1.bf16.msra.mxu0 %v8431_v2  ;;  %5973 = vmatpush1.bf16.msra.mxu1 %v8434_v60 }
 0x6ba   : > { %5646 = vmatprep.subr.bf16.mxu0 %v8439_v5  ;;  %5974 = vmatprep.subr.bf16.mxu1 %v8442_v9 }
 0x6bd   : > { %5647 = vmatpush1.bf16.msra.mxu0 %v8437_v63  ;;  %5975 = vmatpush1.bf16.msra.mxu1 %v8440_v54 }
 0x6c0   : > { %5649 = vmatmul.mubr.bf16.vlgmr.msra.gmra.mrb[0].mxu0 %v6746_v12  ;;  %5977 = vmatmul.mubr.bf16.vlgmr.msra.gmra.mrb[0].mxu1 %v6746_v12 }
 0x793   : > { %v5650_v25 = vpop.f32.mrb[0].mxu0  ;;  %v5978_v26 = vpop.f32.mrb[0].mxu1 }
 0x794   : > { %v7279_v27 = vadd.f32 %v5650_v25, %v2696_v6  ;;  %v7281_v28 = vadd.f32 %v5978_v26, %v2704_v20  ;;  %v5652_v30 = vpop.f32.mrb[1].mxu0  ;;  %v5980_v31 = vpop.f32.mrb[1].mxu1 }
 0x795   : > { %v7280_v32 = vadd.f32 %v5652_v30, %v2700_v22  ;;  %v7282_v33 = vadd.f32 %v5980_v31, %v2708_v23  ;;  %v5654_v34 = vpop.f32.mrb[2].mxu0  ;;  %v5982_v35 = vpop.f32.mrb[2].mxu1 }
 0x796   : > { %v5985_v37 = vcombine.low %v7279_v27, %v7281_v28  ;;  %v5986_v38 = vcombine.high %v7279_v27, %v7281_v28  ;;  %v5655_v39 = vpop.f32.mrb[3].mxu0  ;;  %v5983_v40 = vpop.f32.mrb[3].mxu1 }
 0x797   : > { %v6001_v41 = vcombine.low %v7280_v32, %v7282_v33  ;;  %v6002_v42 = vcombine.high %v7280_v32, %v7282_v33 }
 0x798   : > { %v5993_v8 = vrot.slane %v5985_v37, %v10109_v29  ;;  %v6000_v3 = vrot.slane %v5986_v38, %v10109_v29 }
 0x799   : > { %v6009_v11 = vrot.slane %v6001_v41, %v10109_v29  ;;  %v6016_v14 = vrot.slane %v6002_v42, %v10109_v29 }
 0x79b   : > { %v6017_v44 = vcombine.low %v5993_v8, %v6009_v11  ;;  %v6018_v45 = vcombine.high %v5993_v8, %v6009_v11  ;;  %v6033_v46 = vcombine.low %v6000_v3, %v6016_v14  ;;  %v6034_v47 = vcombine.high %v6000_v3, %v6016_v14 }
 0x79d   : > { %v10118_v48 = vrot.slane %v6018_v45, %v10115_v43  ;;  %v10121_v49 = vrot.slane %v6017_v44, %v10115_v43  ;;  %v10131_v55 = vrot.slane %v6033_v46, %v10115_v43  ;;  %v10141_v61 = vrot.slane %v6034_v47, %v10115_v43 }
 0x79f   : > { %v6060_v50 = vsel %vm6053_vm0, %v10118_v48, 0.0  ;;  %v6054_v51 = vsel %vm6053_vm0, %v10121_v49, 0.0  ;;  %v10128_v53 = vcombine.high %v10118_v48, %v8962_v52  ;;  %v6066_v58 = vsel %vm6053_vm0, %v10131_v55, 0.0 }
 0x7a0   : > { %6061 = vadd.xlane.f32.xlu1 %v6060_v50  ;;  %6055 = vadd.xlane.f32.xlu0 %v6054_v51  ;;  %v10138_v59 = vcombine.high %v10131_v55, %v8962_v52  ;;  %v6072_v57 = vsel %vm6053_vm0, %v10141_v61, 0.0  ;;  %v10148_v1 = vcombine.high %v10141_v61, %v8962_v52  ;;  %v10151_v2 = vcombine.high %v10121_v49, %v8962_v52 }
 0x7a1   : > { %v6063_v56 = vsel %vm6053_vm0, %v10128_v53, 0.0  ;;  %v6087_v63 = vmul.f32 %v10121_v49, %v10121_v49  ;;  %v6090_v0 = vmul.f32 %v10128_v53, %v10128_v53  ;;  %v6089_v13 = vmul.f32 %v10118_v48, %v10118_v48 }
 0x7a2   : > { %v6069_v62 = vsel %vm6053_vm0, %v10138_v59, 0.0  ;;  %v6075_v60 = vsel %vm6053_vm0, %v10148_v1, 0.0  ;;  %v6057_v5 = vsel %vm6053_vm0, %v10151_v2, 0.0  ;;  %v6088_v9 = vmul.f32 %v10151_v2, %v10151_v2 }
 0x7a3   : > { %v6095_v12 = vsel %vm6053_vm0, %v6087_v63, 0.0  ;;  %v6104_v15 = vsel %vm6053_vm0, %v6090_v0, 0.0  ;;  %v6101_v16 = vsel %vm6053_vm0, %v6089_v13, 0.0  ;;  %v6092_v7 = vmul.f32 %v10138_v59, %v10138_v59 }
 0x7a4   : > { %6064 = vadd.xlane.f32.xlu1 %v6063_v56  ;;  %6067 = vadd.xlane.f32.xlu0 %v6066_v58  ;;  %v6098_v54 = vsel %vm6053_vm0, %v6088_v9, 0.0  ;;  %v6091_v17 = vmul.f32 %v10131_v55, %v10131_v55  ;;  %v6094_v19 = vmul.f32 %v10148_v1, %v10148_v1  ;;  %v6093_v6 = vmul.f32 %v10141_v61, %v10141_v61 }
 0x7a5   : > { %v6110_v4 = vsel %vm6053_vm0, %v6092_v7, 0.0 }
 0x7a6   : > { %v6107_v18 = vsel %vm6053_vm0, %v6091_v17, 0.0  ;;  %v6116_v20 = vsel %vm6053_vm0, %v6094_v19, 0.0  ;;  %v6113_v21 = vsel %vm6053_vm0, %v6093_v6, 0.0 }
 0x7a8   : > { %6070 = vadd.xlane.f32.xlu1 %v6069_v62  ;;  %6073 = vadd.xlane.f32.xlu0 %v6072_v57 }
 0x7ac   : > { %6076 = vadd.xlane.f32.xlu1 %v6075_v60  ;;  %6058 = vadd.xlane.f32.xlu0 %v6057_v5 }
 0x7b0   : > { %6099 = vadd.xlane.f32.xlu1 %v6098_v54  ;;  %6096 = vadd.xlane.f32.xlu0 %v6095_v12 }
 0x7b4   : > { %6105 = vadd.xlane.f32.xlu1 %v6104_v15  ;;  %6102 = vadd.xlane.f32.xlu0 %v6101_v16 }
 0x7b8   : > { %6111 = vadd.xlane.f32.xlu1 %v6110_v4  ;;  %6108 = vadd.xlane.f32.xlu0 %v6107_v18 }
 0x7bc   : > { %6117 = vadd.xlane.f32.xlu1 %v6116_v20  ;;  %6114 = vadd.xlane.f32.xlu0 %v6113_v21 }
 0x82d   : > { %v6062_v22 = vpop.xlane.xlu1 %6061  ;;  %v6056_v23 = vpop.xlane.xlu0 %6055 }
 0x82e   : > { %v10181_v30 = vmul.f32 0.0078125, %v6056_v23  ;;  %v10185_v32 = vmul.f32 0.0078125, %v6062_v22 }
 0x830   : > { %v6127_v36 = vmul.f32 %v10181_v30, %v10181_v30  ;;  %v6129_v8 = vmul.f32 %v10185_v32, %v10185_v32 }
 0x831   : > { %v6065_v10 = vpop.xlane.xlu1 %6064  ;;  %v6068_v24 = vpop.xlane.xlu0 %6067 }
 0x832   : > { %v10187_v33 = vmul.f32 0.0078125, %v6065_v10  ;;  %v10193_v40 = vmul.f32 0.0078125, %v6068_v24 }
 0x834   : > { %v6130_v3 = vmul.f32 %v10187_v33, %v10187_v33  ;;  %v6131_v51 = vmul.f32 %v10193_v40, %v10193_v40 }
 0x835   : > { %v6071_v25 = vpop.xlane.xlu1 %6070  ;;  %v6074_v26 = vpop.xlane.xlu0 %6073 }
 0x836   : > { %v10199_v11 = vmul.f32 0.0078125, %v6071_v25  ;;  %v10205_v62 = vmul.f32 0.0078125, %v6074_v26  ;;  %v6143_v25 = vsub.f32 %v10121_v49, %v10181_v30 }
 0x838   : > { %v6132_v58 = vmul.f32 %v10199_v11, %v10199_v11  ;;  %v6133_v15 = vmul.f32 %v10205_v62, %v10205_v62  ;;  %v6148_v49 = vsub.f32 %v10138_v59, %v10199_v11  ;;  %v6149_v59 = vsub.f32 %v10141_v61, %v10205_v62 }
 0x839   : > { %v6077_v27 = vpop.xlane.xlu1 %6076  ;;  %v6059_v28 = vpop.xlane.xlu0 %6058 }
 0x83a   : > { %v10183_v31 = vmul.f32 0.0078125, %v6059_v28  ;;  %v6086_v57 = vmul.f32 0.0078125, %v6077_v27  ;;  %v6146_v27 = vsub.f32 %v10128_v53, %v10187_v33 }
 0x83c   : > { %v6128_v37 = vmul.f32 %v10183_v31, %v10183_v31  ;;  %v6134_v16 = vmul.f32 %v6086_v57, %v6086_v57  ;;  %v6144_v26 = vsub.f32 %v10151_v2, %v10183_v31  ;;  %v6147_v31 = vsub.f32 %v10131_v55, %v10193_v40 }
 0x83d   : > { %v6100_v34 = vpop.xlane.xlu1 %6099  ;;  %v6097_v35 = vpop.xlane.xlu0 %6096 }
 0x83e   : > { %v6120_v38 = vmul.f32 0.0078125, %v6100_v34  ;;  %v6119_v39 = vmul.f32 0.0078125, %v6097_v35  ;;  %v6145_v34 = vsub.f32 %v10118_v48, %v10185_v32 }
 0x840   : > { %v6136_v41 = vsub.f32 %v6120_v38, %v6128_v37  ;;  %v6135_v42 = vsub.f32 %v6119_v39, %v6127_v36  ;;  %v7260_v38 = vld [vmem:[#allocation18] ss:$0 sm:$0xff] }
 0x841   : > { %v6106_v14 = vpop.xlane.xlu1 %6105  ;;  %v6103_v44 = vpop.xlane.xlu0 %6102 }
 0x842   : > { %v6152_v45 = vadd.f32 1e-05, %v6136_v41  ;;  %v6151_v46 = vadd.f32 1e-05, %v6135_v42  ;;  %v6122_v47 = vmul.f32 0.0078125, %v6106_v14  ;;  %v6121_v50 = vmul.f32 0.0078125, %v6103_v44 }
 0x844   : > { %8445 = vrsqrt.f32 %v6152_v45  ;;  %v6138_v52 = vsub.f32 %v6122_v47, %v6130_v3  ;;  %v6137_v56 = vsub.f32 %v6121_v50, %v6129_v8  ;;  %v7261_v3 = vld [vmem:[#allocation20] ss:$0 sm:$0xff]  ;;  %v6150_v45 = vsub.f32 %v10148_v1, %v6086_v57 }
 0x845   : > { %8447 = vrsqrt.f32 %v6151_v46  ;;  %v6112_v60 = vpop.xlane.xlu1 %6111  ;;  %v6109_v5 = vpop.xlane.xlu0 %6108 }
 0x846   : > { %v6154_v9 = vadd.f32 1e-05, %v6138_v52  ;;  %v6153_v63 = vadd.f32 1e-05, %v6137_v56  ;;  %v6124_v54 = vmul.f32 0.0078125, %v6112_v60  ;;  %v6123_v12 = vmul.f32 0.0078125, %v6109_v5 }
 0x848   : > { %8449 = vrsqrt.f32 %v6154_v9  ;;  %v6140_v0 = vsub.f32 %v6124_v54, %v6132_v58  ;;  %v6139_v13 = vsub.f32 %v6123_v12, %v6131_v51 }
 0x849   : > { %8451 = vrsqrt.f32 %v6153_v63  ;;  %v6118_v7 = vpop.xlane.xlu1 %6117  ;;  %v6115_v17 = vpop.xlane.xlu0 %6114 }
 0x84a   : > { %v6156_v4 = vadd.f32 1e-05, %v6140_v0  ;;  %v6155_v18 = vadd.f32 1e-05, %v6139_v13  ;;  %v6126_v19 = vmul.f32 0.0078125, %v6118_v7  ;;  %v6125_v6 = vmul.f32 0.0078125, %v6115_v17 }
 0x84c   : > { %8453 = vrsqrt.f32 %v6156_v4  ;;  %v6142_v20 = vsub.f32 %v6126_v19, %v6134_v16  ;;  %v6141_v21 = vsub.f32 %v6125_v6, %v6133_v15 }
 0x84d   : > { %8455 = vrsqrt.f32 %v6155_v18 }
 0x84e   : > { %v8446_v22 = vpop.eup %8445  ;;  %v6158_v23 = vadd.f32 1e-05, %v6142_v20  ;;  %v6157_v10 = vadd.f32 1e-05, %v6141_v21 }
 0x84f   : > { %v8448_v24 = vpop.eup %8447  ;;  %v6168_v35 = vmul.f32 %v8446_v22, %v6144_v26 }
 0x850   : > { %8457 = vrsqrt.f32 %v6158_v23  ;;  %v6167_v36 = vmul.f32 %v8448_v24, %v6143_v25 }
 0x851   : > { %8459 = vrsqrt.f32 %v6157_v10  ;;  %v6183_v53 = vmul.f32 %v7260_v38, %v6168_v35 }
 0x852   : > { %v8450_v28 = vpop.eup %8449  ;;  %v6182_v33 = vmul.f32 %v7260_v38, %v6167_v36 }
 0x853   : > { %v8452_v37 = vpop.eup %8451  ;;  %v6170_v39 = vmul.f32 %v8450_v28, %v6146_v27  ;;  %v6198_v11 = vadd.f32 %v7261_v3, %v6183_v53 }
 0x854   : > { %v6169_v41 = vmul.f32 %v8452_v37, %v6145_v34  ;;  %v6197_v47 = vadd.f32 %v7261_v3, %v6182_v33 }
 0x855   : > { %v6185_v30 = vmul.f32 %v7260_v38, %v6170_v39 }
 0x856   : > { %v8454_v2 = vpop.eup %8453  ;;  %v6184_v42 = vmul.f32 %v7260_v38, %v6169_v41 }
 0x857   : > { %v8456_v8 = vpop.eup %8455  ;;  %v6172_v48 = vmul.f32 %v8454_v2, %v6148_v49  ;;  %v6200_v32 = vadd.f32 %v7261_v3, %v6185_v30 }
 0x858   : > { %v6199_v14 = vadd.f32 %v7261_v3, %v6184_v42  ;;  %v6171_v44 = vmul.f32 %v8456_v8, %v6147_v31 }
 0x859   : > { %v6187_v55 = vmul.f32 %v7260_v38, %v6172_v48  ;;  %v6213_v58 = vcombine.low %v6198_v11, %v6200_v32 }
 0x85a   : > { %v8458_v46 = vpop.eup %8457  ;;  %v6186_v51 = vmul.f32 %v7260_v38, %v6171_v44  ;;  %v6205_v56 = vcombine.low %v6197_v47, %v6199_v14 }
 0x85b   : > { %v8460_v50 = vpop.eup %8459  ;;  %v6174_v40 = vmul.f32 %v8458_v46, %v6150_v45  ;;  %v6202_v9 = vadd.f32 %v7261_v3, %v6187_v55  ;;  %v6220_v62 = vrot.slane %v6213_v58, %v10109_v29 }
 0x85c   : > { %v6173_v52 = vmul.f32 %v8460_v50, %v6149_v59  ;;  %v6201_v1 = vadd.f32 %v7261_v3, %v6186_v51  ;;  %v6212_v61 = vrot.slane %v6205_v56, %v10109_v29 }
 0x85d   : > { %v6189_v60 = vmul.f32 %v7260_v38, %v6174_v40 }
 0x85e   : > { %v6188_v5 = vmul.f32 %v7260_v38, %v6173_v52  ;;  %v6237_v15 = vcombine.low %v6212_v61, %v6220_v62  ;;  %v6238_v16 = vcombine.high %v6212_v61, %v6220_v62 }
 0x85f   : > { %v6204_v63 = vadd.f32 %v7261_v3, %v6189_v60 }
 0x860   : > { %v6203_v57 = vadd.f32 %v7261_v3, %v6188_v5  ;;  %v6245_v4 = vrot.slane %v6237_v15, %v10115_v43  ;;  %v6252_v18 = vrot.slane %v6238_v16, %v10115_v43 }
 0x861   : > { %v6229_v54 = vcombine.low %v6202_v9, %v6204_v63 }
 0x862   : > { %v6221_v12 = vcombine.low %v6201_v1, %v6203_v57 }
 0x863   : > { %v6236_v0 = vrot.slane %v6229_v54, %v10109_v29 }
 0x864   : > { %v6228_v13 = vrot.slane %v6221_v12, %v10109_v29 }
 0x866   : > { %v6253_v7 = vcombine.low %v6228_v13, %v6236_v0  ;;  %v6254_v17 = vcombine.high %v6228_v13, %v6236_v0 }
 0x868   : > { %v6261_v19 = vrot.slane %v6253_v7, %v10115_v43  ;;  %v6268_v29 = vrot.slane %v6254_v17, %v10115_v43 }
 0x86a   : > { %v6269_v6 = vcombine.low %v6245_v4, %v6261_v19  ;;  %v6270_v20 = vcombine.high %v6245_v4, %v6261_v19  ;;  %v6271_v21 = vcombine.low %v6252_v18, %v6268_v29  ;;  %v6272_v22 = vcombine.high %v6252_v18, %v6268_v29 }
 0x86c   : > { %6273 = vst [vmem:[%s9509_s25] sm:$0xff] %v6269_v6  ;;  %6274 = vst [vmem:[%s9509_s25 + $0x8] sm:$0xff] %v6270_v20 }
 0x86d   : > { %6275 = vst [vmem:[%s9509_s25 + $0x10] sm:$0xff] %v6271_v21  ;;  %6276 = vst [vmem:[%s9509_s25 + $0x18] sm:$0xff] %v6272_v22 }
 0x86e   : > { %8788 = shalt.err (!%p8785_p6)
}
 0x86f   : > { %s8789_s8 = scalar_lea.hbm %s10238_s5, 512  ;;  %s8793_s9 = scalar_lea.hbm %s10434_s1, 2048 }
 0x870   : > { %p8790_p5 = scmp.ne.s32.totalorder %s10238_s5, %s8789_s8  ;;  %p8794_p4 = scmp.lt.u32.totalorder %s10238_s5, %s10434_s1 }
 0x871   : > { %p8795_p0 = scmp.lt.u32.totalorder %s8793_s9, %s8789_s8  ;;  %p8797_p2 = scmp.lt.u32.totalorder %s8789_s8, %s10238_s5 }
 0x872   : > { %p8791_p3 = pnand %p8790_p5, %p10435_p7 }
 0x873   : > { %p8796_p9 = por %p8795_p0, %p8794_p4 }
 0x874   : > { %p8792_p11 = pneg %p8791_p3 }
 0x875   : > { %p8798_p13 = por %p8797_p2, %p8796_p9 }
 0x877   : > { %p8799_p12 = pnand %p8798_p13, %p8792_p11 }
 0x879   : > { %8802 = shalt.err (!%p8799_p12)
}
 0x87a   : > { %7377 = dma.vmem_to_hbm [thread:$0]  (%p10435_p7), %s10240_s17, 512, %s10238_s5, %s6278_s4  }
 0x87b PF: > { %s10436_s10 = sld [smem:[#allocation29_spill]]  ;;  %p7435_p8 = scmp.ge.s32.totalorder %s8941_s30, 2 }
 0x87c   : > { %p10437_p1 = scmp.ne.s32.totalorder %s10406_s7, 0 }
 0x87e   : > { %p7415_p10 = pnand %p7435_p8, %p10437_p1 }
 0x881   : > { %s6306_s20 = sand.u32 1, %s10436_s10  }
 0x882   : > { %s6307_s3 = scalar_lea.sflag [#allocation5], %s6306_s20 }
 0x883   : > { %8884 = dma.done.wait (!%p7415_p10), %s6307_s3, 512  }
 0x884   : > { %8886 = vsyncadd (!%p7415_p10), %s6307_s3, 4294966784  ;;  %s34_s30 = sadd.s32 1, %s8941_s30   ;;  %s10439_s17 = sld [smem:[#allocation30_spill]] }
 0x885   : > { %p10274_p6 = scmp.ge.s32.totalorder %s34_s30, 6   ;;  %s10440_s18 = sld [smem:[#allocation31_spill]] }
 0x886   : > { %s10441_s2 = sld [smem:[#allocation33_spill]]  ;;  %s10442_s24 = sld [smem:[#allocation34_spill]] }
 0x887   : > { %s10443_s5 = smov %s9379_s19  ;;  %s10444_s27 = sld [smem:[#allocation37_spill]] }
 0x888   : > { %s10445_s7 = smov %s10461_s26  ;;  %s10447_s19 = smov %s10463_s15 }
 0x889   : > { %s10448_s20 = smov %s8905_s21  ;;  %s10449_s21 = smov %s8909_s22 }
 0x88a   : > { %s10450_s22 = smov %s9371_s13  ;;  %s10452_s25 = smov %s10443_s5 }
 0x88b   : > { %s10453_s26 = smov %s8933_s28  ;;  %s10454_s28 = smov %s10457_s16 }
 0x88c   : > { %s10451_s23 = smov %s10441_s2  ;;  %s10455_s29 = smov %s10445_s7 }
 0x88d   :  { %33 = sbr.rel (!%p10274_p6) target bundleno = 29 (0x1d), region = 169 }
 0x894   :  { %6312 = vsyncpa [#allocation4], 1 }
 0x895   :  { %6314 = vsyncpa [#allocation4 + $0x1], 1 }
 0x896   :  { %6315 = vsyncpa [#allocation7], 1 }
 0x897   :  { %6316 = vsyncpa [#allocation10], 1 }
 0x898   :  { %6317 = vsyncpa [#allocation13], 1 }
 0x899   :  { %6318 = vsyncpa [#allocation16], 1 }
 0x89a   :  { %6320 = vsyncpa [#allocation16 + $0x1], 1 }
 0x89b   :  { %6321 = vsyncpa [#allocation19], 1 }
 0x89c   :  { %6322 = vsyncpa [#allocation5], 1 }
 0x89d   :  { %6324 = vsyncpa [#allocation5 + $0x1], 1 }

</bundles_post_ra>
